<compile_context>
chip_gen: v6e
topology: v6e:2x2x1
jax: 0.10.0
libtpu: 0.0.40
codegen_flags: <defaults>
</compile_context>

<pallas_src>
import functools

import jax
import jax.numpy as jnp
from jax import lax
from jax.experimental import pallas as pl
from jax.experimental.pallas import tpu as pltpu


# ---------------------------------------------------------------------------
# Fused Pallas kernel: stem + BasicBlock + coalesce head, both backbones in
# one 2*N*H*W-lane channel-major slab (weights shared).
# ---------------------------------------------------------------------------
def _net_kernel(H, W,
                x_ref, m_ref, pc_ref, pa_ref,
                ws_ref, bs_ref, w1_ref, b1_ref, w2_ref, b2_ref,
                whc_ref, wha_ref, bh_ref,
                o_ref, patches_ref):
    """All activations stay in VMEM/vregs.

    x_ref       : (Cpad, L)        channel-major input slab, L = 2*N*H*W lanes
    m_ref       : (16, L)          9 precomputed border-tap masks (rows 0..8)
    pc_ref      : (L, N)           pooling matrix for the cos (x1) half
    pa_ref      : (L, N)           pooling matrix for the ani (x2) half
    w*_ref      : (feat, 9*Cin)    BN-folded conv weights (tap-major, ch fastest)
    b*_ref      : (feat, 1)        BN-folded biases
    whc/wha_ref : (ncls, feat)     coalesce 1x1-conv halves (pre-transposed)
    bh_ref      : (ncls, 1)        coalesce bias
    o_ref       : (ncls, N)        logits (transposed once on the host)
    patches_ref : (9*C, L) scratch im2col slab, reused by every conv
    """
    f32 = jnp.float32
    L = x_ref.shape[-1]
    offsets = [(dy, dx) for dy in (-1, 0, 1) for dx in (-1, 0, 1)]

    def conv3x3(act, wf, bias, residual=None):
        # (C, L) -> im2col via XLU lane rolls + precomputed masks into the
        # persistent VMEM scratch -> one MXU matmul -> (Cout, L).
        C = act.shape[0]
        for t, (dy, dx) in enumerate(offsets):
            s = dy * W + dx
            if s == 0:
                tap = act
            else:
                # out[..., p] = act[..., (p + s) % L]; wrap killed by the mask.
                tap = pltpu.roll(act, (-s) % L, 1) * m_ref[pl.ds(t, 1), :]
            patches_ref[pl.ds(t * C, C), :] = tap
        y = jnp.dot(wf, patches_ref[pl.ds(0, 9 * C), :],
                    preferred_element_type=f32) + bias
        if residual is not None:
            y = y + residual
        return jnp.maximum(y, 0.0)

    x = x_ref[...].astype(f32)
    y0 = conv3x3(x, ws_ref[...], bs_ref[...])                 # stem
    h1 = conv3x3(y0, w1_ref[...], b1_ref[...])                # block conv1
    y1 = conv3x3(h1, w2_ref[...], b2_ref[...], residual=y0)   # block conv2 + skip

    # Coalesce head: global-average-pool commuted before the (linear) 1x1
    # conv.  Per-backbone-half pooling matmul, then the matching half of the
    # head weight; sum + bias == concat-channels + 1x1 conv + GAP.
    pooled_c = jnp.dot(y1, pc_ref[...], preferred_element_type=f32)   # (feat, N)
    pooled_a = jnp.dot(y1, pa_ref[...], preferred_element_type=f32)   # (feat, N)
    logits = (jnp.dot(whc_ref[...], pooled_c, preferred_element_type=f32)
              + jnp.dot(wha_ref[...], pooled_a, preferred_element_type=f32)
              + bh_ref[...])                                          # (ncls, N)
    o_ref[...] = logits.astype(o_ref.dtype)


# ---------------------------------------------------------------------------
# Host-side glue: layout transform, one-time parameter / constant packing.
# ---------------------------------------------------------------------------
def _to_cmajor(x_nchw, c_pad):
    """NCHW -> channel-major (Cpad, N*H*W); batch folded into the lane axis."""
    n, c, h, w = x_nchw.shape
    x = jnp.transpose(x_nchw, (1, 0, 2, 3)).reshape(c, n * h * w)
    if c_pad > c:
        x = jnp.pad(x, ((0, c_pad - c), (0, 0)))
    return x.astype(jnp.float32)


def _fold_conv(p, cin_pad=None):
    """Fold BN into the conv: (Cout, 9*Cin) weight (tap-major) and (Cout, 1) bias."""
    w, scale, shift = p["w"], p["scale"], p["shift"]
    _, _, cin, cout = w.shape
    if cin_pad is not None and cin_pad > cin:
        w = jnp.pad(w, ((0, 0), (0, 0), (0, cin_pad - cin), (0, 0)))
    wf = (w * scale.reshape(1, 1, 1, cout)).reshape(-1, cout).T
    return wf.astype(jnp.float32), shift.reshape(cout, 1).astype(jnp.float32)


def pack_net_params(params):
    """One-time prep: BN fold, channel padding.  Weights are shared between the
    two backbones (same `model` wrapped twice), so each weight is packed ONCE."""
    feat = params["cos"]["stem"]["w"].shape[-1]
    cin = params["cos"]["stem"]["w"].shape[-2]
    cpad = ((cin + 7) // 8) * 8               # pad input channels to a sublane tile
    packed = {}
    for name, pad in (("stem", cpad), ("blk1", None), ("blk2", None)):
        wf, b = _fold_conv(params["cos"][name], pad)
        packed[f"w_{name}"] = wf              # (feat, 9*Cin)
        packed[f"b_{name}"] = b               # (feat, 1)
    cw = params["coalesce_w"].astype(jnp.float32)          # (2*feat, ncls)
    packed["wh_cos"] = cw[:feat].T                         # (ncls, feat)
    packed["wh_ani"] = cw[feat:].T                         # (ncls, feat)
    packed["b_head"] = params["coalesce_b"].reshape(-1, 1).astype(jnp.float32)
    return packed


def precompute_constants(n_img, h, w):
    """Host-precomputed geometry constants (one-time DMA instead of per-call
    in-kernel iota/mod/where work): 9 border-tap masks and the two per-half
    global-average-pool matrices for the combined 2*N*H*W-lane slab."""
    hw = h * w
    L = 2 * n_img * hw
    pos = jnp.arange(L)
    hh = (pos % hw) // w
    ww = pos % w
    rows = []
    for dy in (-1, 0, 1):
        for dx in (-1, 0, 1):
            ok = (hh + dy >= 0) & (hh + dy < h) & (ww + dx >= 0) & (ww + dx < w)
            rows.append(ok.astype(jnp.float32))
    masks = jnp.pad(jnp.stack(rows), ((0, 16 - 9), (0, 0)))           # (16, L)

    img = pos // hw                                                   # 0 .. 2N-1
    cols = jnp.arange(n_img)
    pool_cos = jnp.where(img[:, None] == cols[None, :],
                         1.0 / hw, 0.0).astype(jnp.float32)           # (L, N)
    pool_ani = jnp.where(img[:, None] == (n_img + cols)[None, :],
                         1.0 / hw, 0.0).astype(jnp.float32)           # (L, N)
    return {"masks": masks, "pool_cos": pool_cos, "pool_ani": pool_ani}


def net_forward(packed, geom, x1_nchw, x2_nchw, is_train=True):
    """Forward pass of Net (NCHW inputs, PyTorch convention) -> (N, num_classes)."""
    if not is_train:
        # TODO(synk): eval path feeds a feat-channel map into the 2*feat-channel
        # coalesce head in the original module (shape mismatch / ambiguous);
        # only the training path is implemented.
        raise NotImplementedError("only the training path (is_train=True) is implemented")

    n, _, h, w = x1_nchw.shape
    feat = packed["w_stem"].shape[0]
    cpad = packed["w_stem"].shape[1] // 9
    ncls = packed["wh_cos"].shape[0]
    L = 2 * n * h * w

    # Both backbones share weights -> one combined channel-major slab
    # (lane-dense: L = 2*N*H*W lanes), convs run once over everything.
    x_slab = jnp.concatenate(
        [_to_cmajor(x1_nchw, cpad), _to_cmajor(x2_nchw, cpad)], axis=1)

    logits_t = pl.pallas_call(
        functools.partial(_net_kernel, h, w),
        out_shape=jax.ShapeDtypeStruct((ncls, n), jnp.float32),
        scratch_shapes=[pltpu.VMEM((9 * max(cpad, feat), L), jnp.float32)],
    )(x_slab, geom["masks"], geom["pool_cos"], geom["pool_ani"],
      packed["w_stem"], packed["b_stem"],
      packed["w_blk1"], packed["b_blk1"],
      packed["w_blk2"], packed["b_blk2"],
      packed["wh_cos"], packed["wh_ani"], packed["b_head"])

    return logits_t.T                                    # (N, num_classes)


# ---------------------------------------------------------------------------
# Synthetic "Net" parameters (backbones share weights, like the original).
# ---------------------------------------------------------------------------
def _init_conv(key, cin, cout):
    kw, ks, kb = jax.random.split(key, 3)
    return {
        "w": 0.1 * jax.random.normal(kw, (3, 3, cin, cout), jnp.float32),   # HWIO
        "scale": 1.0 + 0.1 * jax.random.normal(ks, (cout,), jnp.float32),   # BN scale
        "shift": 0.1 * jax.random.normal(kb, (cout,), jnp.float32),         # BN shift
    }


def init_net_params(key, cin=4, feat=8, num_classes=10):
    k0, k1, k2, kw, kb = jax.random.split(key, 5)
    backbone = {
        "stem": _init_conv(k0, cin, feat),
        "blk1": _init_conv(k1, feat, feat),
        "blk2": _init_conv(k2, feat, feat),
    }
    # The PyTorch Net wraps the SAME model's children twice -> shared weights.
    return {
        "cos": backbone,
        "ani": backbone,
        "coalesce_w": 0.1 * jax.random.normal(kw, (2 * feat, num_classes), jnp.float32),
        "coalesce_b": 0.1 * jax.random.normal(kb, (num_classes,), jnp.float32),
    }


# ---------------------------------------------------------------------------
# Pure-JAX reference (verification only).
# ---------------------------------------------------------------------------
def _ref_conv(x, p, residual=None):
    y = lax.conv_general_dilated(x, p["w"], (1, 1), "SAME",
                                 dimension_numbers=("NHWC", "HWIO", "NHWC"))
    y = y * p["scale"] + p["shift"]
    if residual is not None:
        y = y + residual
    return jnp.maximum(y, 0.0)


def _ref_backbone(p, x):
    y = _ref_conv(x, p["stem"])
    h = _ref_conv(y, p["blk1"])
    return _ref_conv(h, p["blk2"], residual=y)


def ref_forward(params, x1_nchw, x2_nchw):
    x1 = jnp.transpose(x1_nchw, (0, 2, 3, 1)).astype(jnp.float32)
    x2 = jnp.transpose(x2_nchw, (0, 2, 3, 1)).astype(jnp.float32)
    x = jnp.concatenate([_ref_backbone(params["cos"], x1),
                         _ref_backbone(params["ani"], x2)], axis=-1)
    y = jnp.einsum("nhwc,cf->nhwf", x, params["coalesce_w"]) + params["coalesce_b"]
    return jnp.mean(y, axis=(1, 2))


# ---------------------------------------------------------------------------
if __name__ == "__main__":
    key = jax.random.PRNGKey(0)
    k_p, k_x1, k_x2 = jax.random.split(key, 3)

    N, C, H, W = 2, 4, 16, 16                      # small NCHW inputs
    x1 = jax.random.normal(k_x1, (N, C, H, W), jnp.float32)
    x2 = jax.random.normal(k_x2, (N, C, H, W), jnp.float32)

    params = init_net_params(k_p, cin=C, feat=8, num_classes=10)
    packed = pack_net_params(params)               # one-time BN fold / packing
    geom = precompute_constants(N, H, W)           # one-time masks / pool matrices

    fwd = jax.jit(functools.partial(net_forward, is_train=True))
    out = jax.block_until_ready(fwd(packed, geom, x1, x2))

    ref = ref_forward(params, x1, x2)
    assert out.shape == (N, 10), out.shape
    assert jnp.allclose(out, ref, rtol=1e-4, atol=1e-4), (out, ref)

    print("KERNEL_OK")
</pallas_src>

<mosaic_0001>
module attributes {stable_mosaic.version = 11 : i64} {
  func.func @_net_kernel(%arg0: memref<8x1024xf32, #tpu.memory_space<vmem>>, %arg1: memref<16x1024xf32, #tpu.memory_space<vmem>>, %arg2: memref<1024x2xf32, #tpu.memory_space<vmem>>, %arg3: memref<1024x2xf32, #tpu.memory_space<vmem>>, %arg4: memref<8x72xf32, #tpu.memory_space<vmem>>, %arg5: memref<8x1xf32, #tpu.memory_space<vmem>>, %arg6: memref<8x72xf32, #tpu.memory_space<vmem>>, %arg7: memref<8x1xf32, #tpu.memory_space<vmem>>, %arg8: memref<8x72xf32, #tpu.memory_space<vmem>>, %arg9: memref<8x1xf32, #tpu.memory_space<vmem>>, %arg10: memref<10x8xf32, #tpu.memory_space<vmem>>, %arg11: memref<10x8xf32, #tpu.memory_space<vmem>>, %arg12: memref<10x1xf32, #tpu.memory_space<vmem>>, %arg13: memref<10x2xf32, #tpu.memory_space<vmem>>, %arg14: memref<72x1024xf32, #tpu.memory_space<vmem>>) attributes {dimension_semantics = [], scalar_prefetch = 0 : i64, scratch_operands = 1 : i64, tpu.core_type = #tpu.core_type<tc>} {
    %c0 = arith.constant 0 : index
    %c0_0 = arith.constant 0 : index
    %0 = vector.load %arg0[%c0, %c0_0] : memref<8x1024xf32, #tpu.memory_space<vmem>>, vector<8x1024xf32>
    %c0_1 = arith.constant 0 : index
    %c0_2 = arith.constant 0 : index
    %1 = vector.load %arg4[%c0_1, %c0_2] : memref<8x72xf32, #tpu.memory_space<vmem>>, vector<8x72xf32>
    %c0_3 = arith.constant 0 : index
    %c0_4 = arith.constant 0 : index
    %2 = vector.load %arg5[%c0_3, %c0_4] : memref<8x1xf32, #tpu.memory_space<vmem>>, vector<8x1xf32>
    %c17_i32 = arith.constant 17 : i32
    %3 = tpu.dynamic_rotate %0 by %c17_i32 dim 1 : vector<8x1024xf32>, i32 -> vector<8x1024xf32>
    %c0_5 = arith.constant 0 : index
    %c0_6 = arith.constant 0 : index
    %4 = vector.load %arg1[%c0_5, %c0_6] : memref<16x1024xf32, #tpu.memory_space<vmem>>, vector<1x1024xf32>
    %5 = vector.broadcast %4 : vector<1x1024xf32> to vector<8x1024xf32>
    %6 = arith.mulf %3, %5 : vector<8x1024xf32>
    %c0_7 = arith.constant 0 : index
    %c0_8 = arith.constant 0 : index
    %7 = vector.load %arg14[%c0_7, %c0_8] : memref<72x1024xf32, #tpu.memory_space<vmem>>, vector<8x1024xf32>
    tpu.vector_store %arg14[%c0_7, %c0_8], %6 {strides = array<i32>} : memref<72x1024xf32, #tpu.memory_space<vmem>>, vector<8x1024xf32>,
    %c16_i32 = arith.constant 16 : i32
    %8 = tpu.dynamic_rotate %0 by %c16_i32 dim 1 : vector<8x1024xf32>, i32 -> vector<8x1024xf32>
    %c1 = arith.constant 1 : index
    %c0_9 = arith.constant 0 : index
    %9 = vector.load %arg1[%c1, %c0_9] : memref<16x1024xf32, #tpu.memory_space<vmem>>, vector<1x1024xf32>
    %10 = vector.broadcast %9 : vector<1x1024xf32> to vector<8x1024xf32>
    %11 = arith.mulf %8, %10 : vector<8x1024xf32>
    %c8 = arith.constant 8 : index
    %c0_10 = arith.constant 0 : index
    %12 = vector.load %arg14[%c8, %c0_10] : memref<72x1024xf32, #tpu.memory_space<vmem>>, vector<8x1024xf32>
    tpu.vector_store %arg14[%c8, %c0_10], %11 {strides = array<i32>} : memref<72x1024xf32, #tpu.memory_space<vmem>>, vector<8x1024xf32>,
    %c15_i32 = arith.constant 15 : i32
    %13 = tpu.dynamic_rotate %0 by %c15_i32 dim 1 : vector<8x1024xf32>, i32 -> vector<8x1024xf32>
    %c2 = arith.constant 2 : index
    %c0_11 = arith.constant 0 : index
    %14 = vector.load %arg1[%c2, %c0_11] : memref<16x1024xf32, #tpu.memory_space<vmem>>, vector<1x1024xf32>
    %15 = vector.broadcast %14 : vector<1x1024xf32> to vector<8x1024xf32>
    %16 = arith.mulf %13, %15 : vector<8x1024xf32>
    %c16 = arith.constant 16 : index
    %c0_12 = arith.constant 0 : index
    %17 = vector.load %arg14[%c16, %c0_12] : memref<72x1024xf32, #tpu.memory_space<vmem>>, vector<8x1024xf32>
    tpu.vector_store %arg14[%c16, %c0_12], %16 {strides = array<i32>} : memref<72x1024xf32, #tpu.memory_space<vmem>>, vector<8x1024xf32>,
    %c1_i32 = arith.constant 1 : i32
    %18 = tpu.dynamic_rotate %0 by %c1_i32 dim 1 : vector<8x1024xf32>, i32 -> vector<8x1024xf32>
    %c3 = arith.constant 3 : index
    %c0_13 = arith.constant 0 : index
    %19 = vector.load %arg1[%c3, %c0_13] : memref<16x1024xf32, #tpu.memory_space<vmem>>, vector<1x1024xf32>
    %20 = vector.broadcast %19 : vector<1x1024xf32> to vector<8x1024xf32>
    %21 = arith.mulf %18, %20 : vector<8x1024xf32>
    %c24 = arith.constant 24 : index
    %c0_14 = arith.constant 0 : index
    %22 = vector.load %arg14[%c24, %c0_14] : memref<72x1024xf32, #tpu.memory_space<vmem>>, vector<8x1024xf32>
    tpu.vector_store %arg14[%c24, %c0_14], %21 {strides = array<i32>} : memref<72x1024xf32, #tpu.memory_space<vmem>>, vector<8x1024xf32>,
    %c32 = arith.constant 32 : index
    %c0_15 = arith.constant 0 : index
    %23 = vector.load %arg14[%c32, %c0_15] : memref<72x1024xf32, #tpu.memory_space<vmem>>, vector<8x1024xf32>
    tpu.vector_store %arg14[%c32, %c0_15], %0 {strides = array<i32>} : memref<72x1024xf32, #tpu.memory_space<vmem>>, vector<8x1024xf32>,
    %c1023_i32 = arith.constant 1023 : i32
    %24 = tpu.dynamic_rotate %0 by %c1023_i32 dim 1 : vector<8x1024xf32>, i32 -> vector<8x1024xf32>
    %c5 = arith.constant 5 : index
    %c0_16 = arith.constant 0 : index
    %25 = vector.load %arg1[%c5, %c0_16] : memref<16x1024xf32, #tpu.memory_space<vmem>>, vector<1x1024xf32>
    %26 = vector.broadcast %25 : vector<1x1024xf32> to vector<8x1024xf32>
    %27 = arith.mulf %24, %26 : vector<8x1024xf32>
    %c40 = arith.constant 40 : index
    %c0_17 = arith.constant 0 : index
    %28 = vector.load %arg14[%c40, %c0_17] : memref<72x1024xf32, #tpu.memory_space<vmem>>, vector<8x1024xf32>
    tpu.vector_store %arg14[%c40, %c0_17], %27 {strides = array<i32>} : memref<72x1024xf32, #tpu.memory_space<vmem>>, vector<8x1024xf32>,
    %c1009_i32 = arith.constant 1009 : i32
    %29 = tpu.dynamic_rotate %0 by %c1009_i32 dim 1 : vector<8x1024xf32>, i32 -> vector<8x1024xf32>
    %c6 = arith.constant 6 : index
    %c0_18 = arith.constant 0 : index
    %30 = vector.load %arg1[%c6, %c0_18] : memref<16x1024xf32, #tpu.memory_space<vmem>>, vector<1x1024xf32>
    %31 = vector.broadcast %30 : vector<1x1024xf32> to vector<8x1024xf32>
    %32 = arith.mulf %29, %31 : vector<8x1024xf32>
    %c48 = arith.constant 48 : index
    %c0_19 = arith.constant 0 : index
    %33 = vector.load %arg14[%c48, %c0_19] : memref<72x1024xf32, #tpu.memory_space<vmem>>, vector<8x1024xf32>
    tpu.vector_store %arg14[%c48, %c0_19], %32 {strides = array<i32>} : memref<72x1024xf32, #tpu.memory_space<vmem>>, vector<8x1024xf32>,
    %c1008_i32 = arith.constant 1008 : i32
    %34 = tpu.dynamic_rotate %0 by %c1008_i32 dim 1 : vector<8x1024xf32>, i32 -> vector<8x1024xf32>
    %c7 = arith.constant 7 : index
    %c0_20 = arith.constant 0 : index
    %35 = vector.load %arg1[%c7, %c0_20] : memref<16x1024xf32, #tpu.memory_space<vmem>>, vector<1x1024xf32>
    %36 = vector.broadcast %35 : vector<1x1024xf32> to vector<8x1024xf32>
    %37 = arith.mulf %34, %36 : vector<8x1024xf32>
    %c56 = arith.constant 56 : index
    %c0_21 = arith.constant 0 : index
    %38 = vector.load %arg14[%c56, %c0_21] : memref<72x1024xf32, #tpu.memory_space<vmem>>, vector<8x1024xf32>
    tpu.vector_store %arg14[%c56, %c0_21], %37 {strides = array<i32>} : memref<72x1024xf32, #tpu.memory_space<vmem>>, vector<8x1024xf32>,
    %c1007_i32 = arith.constant 1007 : i32
    %39 = tpu.dynamic_rotate %0 by %c1007_i32 dim 1 : vector<8x1024xf32>, i32 -> vector<8x1024xf32>
    %c8_22 = arith.constant 8 : index
    %c0_23 = arith.constant 0 : index
    %40 = vector.load %arg1[%c8_22, %c0_23] : memref<16x1024xf32, #tpu.memory_space<vmem>>, vector<1x1024xf32>
    %41 = vector.broadcast %40 : vector<1x1024xf32> to vector<8x1024xf32>
    %42 = arith.mulf %39, %41 : vector<8x1024xf32>
    %c64 = arith.constant 64 : index
    %c0_24 = arith.constant 0 : index
    %43 = vector.load %arg14[%c64, %c0_24] : memref<72x1024xf32, #tpu.memory_space<vmem>>, vector<8x1024xf32>
    tpu.vector_store %arg14[%c64, %c0_24], %42 {strides = array<i32>} : memref<72x1024xf32, #tpu.memory_space<vmem>>, vector<8x1024xf32>,
    %c0_25 = arith.constant 0 : index
    %c0_26 = arith.constant 0 : index
    %44 = vector.load %arg14[%c0_25, %c0_26] : memref<72x1024xf32, #tpu.memory_space<vmem>>, vector<72x1024xf32>
    %cst = arith.constant dense<0.000000e+00> : vector<8x1024xf32>
    %45 = tpu.matmul %1, %44, %cst {dimension_numbers = #tpu.dot_dimension_numbers<[1], [0], [0], [1], [0, 0, 1, 1], [], []>} : vector<8x72xf32>, vector<72x1024xf32>, vector<8x1024xf32> -> vector<8x1024xf32>
    %46 = vector.broadcast %2 : vector<8x1xf32> to vector<8x1024xf32>
    %47 = arith.addf %45, %46 : vector<8x1024xf32>
    %cst_27 = arith.constant 0.000000e+00 : f32
    %48 = vector.broadcast %cst_27 : f32 to vector<8x1024xf32>
    %49 = arith.maximumf %47, %48 : vector<8x1024xf32>
    %c0_28 = arith.constant 0 : index
    %c0_29 = arith.constant 0 : index
    %50 = vector.load %arg6[%c0_28, %c0_29] : memref<8x72xf32, #tpu.memory_space<vmem>>, vector<8x72xf32>
    %c0_30 = arith.constant 0 : index
    %c0_31 = arith.constant 0 : index
    %51 = vector.load %arg7[%c0_30, %c0_31] : memref<8x1xf32, #tpu.memory_space<vmem>>, vector<8x1xf32>
    %c17_i32_32 = arith.constant 17 : i32
    %52 = tpu.dynamic_rotate %49 by %c17_i32_32 dim 1 : vector<8x1024xf32>, i32 -> vector<8x1024xf32>
    %c0_33 = arith.constant 0 : index
    %c0_34 = arith.constant 0 : index
    %53 = vector.load %arg1[%c0_33, %c0_34] : memref<16x1024xf32, #tpu.memory_space<vmem>>, vector<1x1024xf32>
    %54 = vector.broadcast %53 : vector<1x1024xf32> to vector<8x1024xf32>
    %55 = arith.mulf %52, %54 : vector<8x1024xf32>
    %c0_35 = arith.constant 0 : index
    %c0_36 = arith.constant 0 : index
    %56 = vector.load %arg14[%c0_35, %c0_36] : memref<72x1024xf32, #tpu.memory_space<vmem>>, vector<8x1024xf32>
    tpu.vector_store %arg14[%c0_35, %c0_36], %55 {strides = array<i32>} : memref<72x1024xf32, #tpu.memory_space<vmem>>, vector<8x1024xf32>,
    %c16_i32_37 = arith.constant 16 : i32
    %57 = tpu.dynamic_rotate %49 by %c16_i32_37 dim 1 : vector<8x1024xf32>, i32 -> vector<8x1024xf32>
    %c1_38 = arith.constant 1 : index
    %c0_39 = arith.constant 0 : index
    %58 = vector.load %arg1[%c1_38, %c0_39] : memref<16x1024xf32, #tpu.memory_space<vmem>>, vector<1x1024xf32>
    %59 = vector.broadcast %58 : vector<1x1024xf32> to vector<8x1024xf32>
    %60 = arith.mulf %57, %59 : vector<8x1024xf32>
    %c8_40 = arith.constant 8 : index
    %c0_41 = arith.constant 0 : index
    %61 = vector.load %arg14[%c8_40, %c0_41] : memref<72x1024xf32, #tpu.memory_space<vmem>>, vector<8x1024xf32>
    tpu.vector_store %arg14[%c8_40, %c0_41], %60 {strides = array<i32>} : memref<72x1024xf32, #tpu.memory_space<vmem>>, vector<8x1024xf32>,
    %c15_i32_42 = arith.constant 15 : i32
    %62 = tpu.dynamic_rotate %49 by %c15_i32_42 dim 1 : vector<8x1024xf32>, i32 -> vector<8x1024xf32>
    %c2_43 = arith.constant 2 : index
    %c0_44 = arith.constant 0 : index
    %63 = vector.load %arg1[%c2_43, %c0_44] : memref<16x1024xf32, #tpu.memory_space<vmem>>, vector<1x1024xf32>
    %64 = vector.broadcast %63 : vector<1x1024xf32> to vector<8x1024xf32>
    %65 = arith.mulf %62, %64 : vector<8x1024xf32>
    %c16_45 = arith.constant 16 : index
    %c0_46 = arith.constant 0 : index
    %66 = vector.load %arg14[%c16_45, %c0_46] : memref<72x1024xf32, #tpu.memory_space<vmem>>, vector<8x1024xf32>
    tpu.vector_store %arg14[%c16_45, %c0_46], %65 {strides = array<i32>} : memref<72x1024xf32, #tpu.memory_space<vmem>>, vector<8x1024xf32>,
    %c1_i32_47 = arith.constant 1 : i32
    %67 = tpu.dynamic_rotate %49 by %c1_i32_47 dim 1 : vector<8x1024xf32>, i32 -> vector<8x1024xf32>
    %c3_48 = arith.constant 3 : index
    %c0_49 = arith.constant 0 : index
    %68 = vector.load %arg1[%c3_48, %c0_49] : memref<16x1024xf32, #tpu.memory_space<vmem>>, vector<1x1024xf32>
    %69 = vector.broadcast %68 : vector<1x1024xf32> to vector<8x1024xf32>
    %70 = arith.mulf %67, %69 : vector<8x1024xf32>
    %c24_50 = arith.constant 24 : index
    %c0_51 = arith.constant 0 : index
    %71 = vector.load %arg14[%c24_50, %c0_51] : memref<72x1024xf32, #tpu.memory_space<vmem>>, vector<8x1024xf32>
    tpu.vector_store %arg14[%c24_50, %c0_51], %70 {strides = array<i32>} : memref<72x1024xf32, #tpu.memory_space<vmem>>, vector<8x1024xf32>,
    %c32_52 = arith.constant 32 : index
    %c0_53 = arith.constant 0 : index
    %72 = vector.load %arg14[%c32_52, %c0_53] : memref<72x1024xf32, #tpu.memory_space<vmem>>, vector<8x1024xf32>
    tpu.vector_store %arg14[%c32_52, %c0_53], %49 {strides = array<i32>} : memref<72x1024xf32, #tpu.memory_space<vmem>>, vector<8x1024xf32>,
    %c1023_i32_54 = arith.constant 1023 : i32
    %73 = tpu.dynamic_rotate %49 by %c1023_i32_54 dim 1 : vector<8x1024xf32>, i32 -> vector<8x1024xf32>
    %c5_55 = arith.constant 5 : index
    %c0_56 = arith.constant 0 : index
    %74 = vector.load %arg1[%c5_55, %c0_56] : memref<16x1024xf32, #tpu.memory_space<vmem>>, vector<1x1024xf32>
    %75 = vector.broadcast %74 : vector<1x1024xf32> to vector<8x1024xf32>
    %76 = arith.mulf %73, %75 : vector<8x1024xf32>
    %c40_57 = arith.constant 40 : index
    %c0_58 = arith.constant 0 : index
    %77 = vector.load %arg14[%c40_57, %c0_58] : memref<72x1024xf32, #tpu.memory_space<vmem>>, vector<8x1024xf32>
    tpu.vector_store %arg14[%c40_57, %c0_58], %76 {strides = array<i32>} : memref<72x1024xf32, #tpu.memory_space<vmem>>, vector<8x1024xf32>,
    %c1009_i32_59 = arith.constant 1009 : i32
    %78 = tpu.dynamic_rotate %49 by %c1009_i32_59 dim 1 : vector<8x1024xf32>, i32 -> vector<8x1024xf32>
    %c6_60 = arith.constant 6 : index
    %c0_61 = arith.constant 0 : index
    %79 = vector.load %arg1[%c6_60, %c0_61] : memref<16x1024xf32, #tpu.memory_space<vmem>>, vector<1x1024xf32>
    %80 = vector.broadcast %79 : vector<1x1024xf32> to vector<8x1024xf32>
    %81 = arith.mulf %78, %80 : vector<8x1024xf32>
    %c48_62 = arith.constant 48 : index
    %c0_63 = arith.constant 0 : index
    %82 = vector.load %arg14[%c48_62, %c0_63] : memref<72x1024xf32, #tpu.memory_space<vmem>>, vector<8x1024xf32>
    tpu.vector_store %arg14[%c48_62, %c0_63], %81 {strides = array<i32>} : memref<72x1024xf32, #tpu.memory_space<vmem>>, vector<8x1024xf32>,
    %c1008_i32_64 = arith.constant 1008 : i32
    %83 = tpu.dynamic_rotate %49 by %c1008_i32_64 dim 1 : vector<8x1024xf32>, i32 -> vector<8x1024xf32>
    %c7_65 = arith.constant 7 : index
    %c0_66 = arith.constant 0 : index
    %84 = vector.load %arg1[%c7_65, %c0_66] : memref<16x1024xf32, #tpu.memory_space<vmem>>, vector<1x1024xf32>
    %85 = vector.broadcast %84 : vector<1x1024xf32> to vector<8x1024xf32>
    %86 = arith.mulf %83, %85 : vector<8x1024xf32>
    %c56_67 = arith.constant 56 : index
    %c0_68 = arith.constant 0 : index
    %87 = vector.load %arg14[%c56_67, %c0_68] : memref<72x1024xf32, #tpu.memory_space<vmem>>, vector<8x1024xf32>
    tpu.vector_store %arg14[%c56_67, %c0_68], %86 {strides = array<i32>} : memref<72x1024xf32, #tpu.memory_space<vmem>>, vector<8x1024xf32>,
    %c1007_i32_69 = arith.constant 1007 : i32
    %88 = tpu.dynamic_rotate %49 by %c1007_i32_69 dim 1 : vector<8x1024xf32>, i32 -> vector<8x1024xf32>
    %c8_70 = arith.constant 8 : index
    %c0_71 = arith.constant 0 : index
    %89 = vector.load %arg1[%c8_70, %c0_71] : memref<16x1024xf32, #tpu.memory_space<vmem>>, vector<1x1024xf32>
    %90 = vector.broadcast %89 : vector<1x1024xf32> to vector<8x1024xf32>
    %91 = arith.mulf %88, %90 : vector<8x1024xf32>
    %c64_72 = arith.constant 64 : index
    %c0_73 = arith.constant 0 : index
    %92 = vector.load %arg14[%c64_72, %c0_73] : memref<72x1024xf32, #tpu.memory_space<vmem>>, vector<8x1024xf32>
    tpu.vector_store %arg14[%c64_72, %c0_73], %91 {strides = array<i32>} : memref<72x1024xf32, #tpu.memory_space<vmem>>, vector<8x1024xf32>,
    %c0_74 = arith.constant 0 : index
    %c0_75 = arith.constant 0 : index
    %93 = vector.load %arg14[%c0_74, %c0_75] : memref<72x1024xf32, #tpu.memory_space<vmem>>, vector<72x1024xf32>
    %cst_76 = arith.constant dense<0.000000e+00> : vector<8x1024xf32>
    %94 = tpu.matmul %50, %93, %cst_76 {dimension_numbers = #tpu.dot_dimension_numbers<[1], [0], [0], [1], [0, 0, 1, 1], [], []>} : vector<8x72xf32>, vector<72x1024xf32>, vector<8x1024xf32> -> vector<8x1024xf32>
    %95 = vector.broadcast %51 : vector<8x1xf32> to vector<8x1024xf32>
    %96 = arith.addf %94, %95 : vector<8x1024xf32>
    %cst_77 = arith.constant 0.000000e+00 : f32
    %97 = vector.broadcast %cst_77 : f32 to vector<8x1024xf32>
    %98 = arith.maximumf %96, %97 : vector<8x1024xf32>
    %c0_78 = arith.constant 0 : index
    %c0_79 = arith.constant 0 : index
    %99 = vector.load %arg8[%c0_78, %c0_79] : memref<8x72xf32, #tpu.memory_space<vmem>>, vector<8x72xf32>
    %c0_80 = arith.constant 0 : index
    %c0_81 = arith.constant 0 : index
    %100 = vector.load %arg9[%c0_80, %c0_81] : memref<8x1xf32, #tpu.memory_space<vmem>>, vector<8x1xf32>
    %c17_i32_82 = arith.constant 17 : i32
    %101 = tpu.dynamic_rotate %98 by %c17_i32_82 dim 1 : vector<8x1024xf32>, i32 -> vector<8x1024xf32>
    %c0_83 = arith.constant 0 : index
    %c0_84 = arith.constant 0 : index
    %102 = vector.load %arg1[%c0_83, %c0_84] : memref<16x1024xf32, #tpu.memory_space<vmem>>, vector<1x1024xf32>
    %103 = vector.broadcast %102 : vector<1x1024xf32> to vector<8x1024xf32>
    %104 = arith.mulf %101, %103 : vector<8x1024xf32>
    %c0_85 = arith.constant 0 : index
    %c0_86 = arith.constant 0 : index
    %105 = vector.load %arg14[%c0_85, %c0_86] : memref<72x1024xf32, #tpu.memory_space<vmem>>, vector<8x1024xf32>
    tpu.vector_store %arg14[%c0_85, %c0_86], %104 {strides = array<i32>} : memref<72x1024xf32, #tpu.memory_space<vmem>>, vector<8x1024xf32>,
    %c16_i32_87 = arith.constant 16 : i32
    %106 = tpu.dynamic_rotate %98 by %c16_i32_87 dim 1 : vector<8x1024xf32>, i32 -> vector<8x1024xf32>
    %c1_88 = arith.constant 1 : index
    %c0_89 = arith.constant 0 : index
    %107 = vector.load %arg1[%c1_88, %c0_89] : memref<16x1024xf32, #tpu.memory_space<vmem>>, vector<1x1024xf32>
    %108 = vector.broadcast %107 : vector<1x1024xf32> to vector<8x1024xf32>
    %109 = arith.mulf %106, %108 : vector<8x1024xf32>
    %c8_90 = arith.constant 8 : index
    %c0_91 = arith.constant 0 : index
    %110 = vector.load %arg14[%c8_90, %c0_91] : memref<72x1024xf32, #tpu.memory_space<vmem>>, vector<8x1024xf32>
    tpu.vector_store %arg14[%c8_90, %c0_91], %109 {strides = array<i32>} : memref<72x1024xf32, #tpu.memory_space<vmem>>, vector<8x1024xf32>,
    %c15_i32_92 = arith.constant 15 : i32
    %111 = tpu.dynamic_rotate %98 by %c15_i32_92 dim 1 : vector<8x1024xf32>, i32 -> vector<8x1024xf32>
    %c2_93 = arith.constant 2 : index
    %c0_94 = arith.constant 0 : index
    %112 = vector.load %arg1[%c2_93, %c0_94] : memref<16x1024xf32, #tpu.memory_space<vmem>>, vector<1x1024xf32>
    %113 = vector.broadcast %112 : vector<1x1024xf32> to vector<8x1024xf32>
    %114 = arith.mulf %111, %113 : vector<8x1024xf32>
    %c16_95 = arith.constant 16 : index
    %c0_96 = arith.constant 0 : index
    %115 = vector.load %arg14[%c16_95, %c0_96] : memref<72x1024xf32, #tpu.memory_space<vmem>>, vector<8x1024xf32>
    tpu.vector_store %arg14[%c16_95, %c0_96], %114 {strides = array<i32>} : memref<72x1024xf32, #tpu.memory_space<vmem>>, vector<8x1024xf32>,
    %c1_i32_97 = arith.constant 1 : i32
    %116 = tpu.dynamic_rotate %98 by %c1_i32_97 dim 1 : vector<8x1024xf32>, i32 -> vector<8x1024xf32>
    %c3_98 = arith.constant 3 : index
    %c0_99 = arith.constant 0 : index
    %117 = vector.load %arg1[%c3_98, %c0_99] : memref<16x1024xf32, #tpu.memory_space<vmem>>, vector<1x1024xf32>
    %118 = vector.broadcast %117 : vector<1x1024xf32> to vector<8x1024xf32>
    %119 = arith.mulf %116, %118 : vector<8x1024xf32>
    %c24_100 = arith.constant 24 : index
    %c0_101 = arith.constant 0 : index
    %120 = vector.load %arg14[%c24_100, %c0_101] : memref<72x1024xf32, #tpu.memory_space<vmem>>, vector<8x1024xf32>
    tpu.vector_store %arg14[%c24_100, %c0_101], %119 {strides = array<i32>} : memref<72x1024xf32, #tpu.memory_space<vmem>>, vector<8x1024xf32>,
    %c32_102 = arith.constant 32 : index
    %c0_103 = arith.constant 0 : index
    %121 = vector.load %arg14[%c32_102, %c0_103] : memref<72x1024xf32, #tpu.memory_space<vmem>>, vector<8x1024xf32>
    tpu.vector_store %arg14[%c32_102, %c0_103], %98 {strides = array<i32>} : memref<72x1024xf32, #tpu.memory_space<vmem>>, vector<8x1024xf32>,
    %c1023_i32_104 = arith.constant 1023 : i32
    %122 = tpu.dynamic_rotate %98 by %c1023_i32_104 dim 1 : vector<8x1024xf32>, i32 -> vector<8x1024xf32>
    %c5_105 = arith.constant 5 : index
    %c0_106 = arith.constant 0 : index
    %123 = vector.load %arg1[%c5_105, %c0_106] : memref<16x1024xf32, #tpu.memory_space<vmem>>, vector<1x1024xf32>
    %124 = vector.broadcast %123 : vector<1x1024xf32> to vector<8x1024xf32>
    %125 = arith.mulf %122, %124 : vector<8x1024xf32>
    %c40_107 = arith.constant 40 : index
    %c0_108 = arith.constant 0 : index
    %126 = vector.load %arg14[%c40_107, %c0_108] : memref<72x1024xf32, #tpu.memory_space<vmem>>, vector<8x1024xf32>
    tpu.vector_store %arg14[%c40_107, %c0_108], %125 {strides = array<i32>} : memref<72x1024xf32, #tpu.memory_space<vmem>>, vector<8x1024xf32>,
    %c1009_i32_109 = arith.constant 1009 : i32
    %127 = tpu.dynamic_rotate %98 by %c1009_i32_109 dim 1 : vector<8x1024xf32>, i32 -> vector<8x1024xf32>
    %c6_110 = arith.constant 6 : index
    %c0_111 = arith.constant 0 : index
    %128 = vector.load %arg1[%c6_110, %c0_111] : memref<16x1024xf32, #tpu.memory_space<vmem>>, vector<1x1024xf32>
    %129 = vector.broadcast %128 : vector<1x1024xf32> to vector<8x1024xf32>
    %130 = arith.mulf %127, %129 : vector<8x1024xf32>
    %c48_112 = arith.constant 48 : index
    %c0_113 = arith.constant 0 : index
    %131 = vector.load %arg14[%c48_112, %c0_113] : memref<72x1024xf32, #tpu.memory_space<vmem>>, vector<8x1024xf32>
    tpu.vector_store %arg14[%c48_112, %c0_113], %130 {strides = array<i32>} : memref<72x1024xf32, #tpu.memory_space<vmem>>, vector<8x1024xf32>,
    %c1008_i32_114 = arith.constant 1008 : i32
    %132 = tpu.dynamic_rotate %98 by %c1008_i32_114 dim 1 : vector<8x1024xf32>, i32 -> vector<8x1024xf32>
    %c7_115 = arith.constant 7 : index
    %c0_116 = arith.constant 0 : index
    %133 = vector.load %arg1[%c7_115, %c0_116] : memref<16x1024xf32, #tpu.memory_space<vmem>>, vector<1x1024xf32>
    %134 = vector.broadcast %133 : vector<1x1024xf32> to vector<8x1024xf32>
    %135 = arith.mulf %132, %134 : vector<8x1024xf32>
    %c56_117 = arith.constant 56 : index
    %c0_118 = arith.constant 0 : index
    %136 = vector.load %arg14[%c56_117, %c0_118] : memref<72x1024xf32, #tpu.memory_space<vmem>>, vector<8x1024xf32>
    tpu.vector_store %arg14[%c56_117, %c0_118], %135 {strides = array<i32>} : memref<72x1024xf32, #tpu.memory_space<vmem>>, vector<8x1024xf32>,
    %c1007_i32_119 = arith.constant 1007 : i32
    %137 = tpu.dynamic_rotate %98 by %c1007_i32_119 dim 1 : vector<8x1024xf32>, i32 -> vector<8x1024xf32>
    %c8_120 = arith.constant 8 : index
    %c0_121 = arith.constant 0 : index
    %138 = vector.load %arg1[%c8_120, %c0_121] : memref<16x1024xf32, #tpu.memory_space<vmem>>, vector<1x1024xf32>
    %139 = vector.broadcast %138 : vector<1x1024xf32> to vector<8x1024xf32>
    %140 = arith.mulf %137, %139 : vector<8x1024xf32>
    %c64_122 = arith.constant 64 : index
    %c0_123 = arith.constant 0 : index
    %141 = vector.load %arg14[%c64_122, %c0_123] : memref<72x1024xf32, #tpu.memory_space<vmem>>, vector<8x1024xf32>
    tpu.vector_store %arg14[%c64_122, %c0_123], %140 {strides = array<i32>} : memref<72x1024xf32, #tpu.memory_space<vmem>>, vector<8x1024xf32>,
    %c0_124 = arith.constant 0 : index
    %c0_125 = arith.constant 0 : index
    %142 = vector.load %arg14[%c0_124, %c0_125] : memref<72x1024xf32, #tpu.memory_space<vmem>>, vector<72x1024xf32>
    %cst_126 = arith.constant dense<0.000000e+00> : vector<8x1024xf32>
    %143 = tpu.matmul %99, %142, %cst_126 {dimension_numbers = #tpu.dot_dimension_numbers<[1], [0], [0], [1], [0, 0, 1, 1], [], []>} : vector<8x72xf32>, vector<72x1024xf32>, vector<8x1024xf32> -> vector<8x1024xf32>
    %144 = vector.broadcast %100 : vector<8x1xf32> to vector<8x1024xf32>
    %145 = arith.addf %143, %144 : vector<8x1024xf32>
    %146 = arith.addf %145, %49 : vector<8x1024xf32>
    %cst_127 = arith.constant 0.000000e+00 : f32
    %147 = vector.broadcast %cst_127 : f32 to vector<8x1024xf32>
    %148 = arith.maximumf %146, %147 : vector<8x1024xf32>
    %c0_128 = arith.constant 0 : index
    %c0_129 = arith.constant 0 : index
    %149 = vector.load %arg2[%c0_128, %c0_129] : memref<1024x2xf32, #tpu.memory_space<vmem>>, vector<1024x2xf32>
    %cst_130 = arith.constant dense<0.000000e+00> : vector<8x2xf32>
    %150 = tpu.matmul %148, %149, %cst_130 {dimension_numbers = #tpu.dot_dimension_numbers<[1], [0], [0], [1], [0, 0, 1, 1], [], []>} : vector<8x1024xf32>, vector<1024x2xf32>, vector<8x2xf32> -> vector<8x2xf32>
    %c0_131 = arith.constant 0 : index
    %c0_132 = arith.constant 0 : index
    %151 = vector.load %arg3[%c0_131, %c0_132] : memref<1024x2xf32, #tpu.memory_space<vmem>>, vector<1024x2xf32>
    %cst_133 = arith.constant dense<0.000000e+00> : vector<8x2xf32>
    %152 = tpu.matmul %148, %151, %cst_133 {dimension_numbers = #tpu.dot_dimension_numbers<[1], [0], [0], [1], [0, 0, 1, 1], [], []>} : vector<8x1024xf32>, vector<1024x2xf32>, vector<8x2xf32> -> vector<8x2xf32>
    %c0_134 = arith.constant 0 : index
    %c0_135 = arith.constant 0 : index
    %153 = vector.load %arg10[%c0_134, %c0_135] : memref<10x8xf32, #tpu.memory_space<vmem>>, vector<10x8xf32>
    %cst_136 = arith.constant dense<0.000000e+00> : vector<10x2xf32>
    %154 = tpu.matmul %153, %150, %cst_136 {dimension_numbers = #tpu.dot_dimension_numbers<[1], [0], [0], [1], [0, 0, 1, 1], [], []>} : vector<10x8xf32>, vector<8x2xf32>, vector<10x2xf32> -> vector<10x2xf32>
    %c0_137 = arith.constant 0 : index
    %c0_138 = arith.constant 0 : index
    %155 = vector.load %arg11[%c0_137, %c0_138] : memref<10x8xf32, #tpu.memory_space<vmem>>, vector<10x8xf32>
    %cst_139 = arith.constant dense<0.000000e+00> : vector<10x2xf32>
    %156 = tpu.matmul %155, %152, %cst_139 {dimension_numbers = #tpu.dot_dimension_numbers<[1], [0], [0], [1], [0, 0, 1, 1], [], []>} : vector<10x8xf32>, vector<8x2xf32>, vector<10x2xf32> -> vector<10x2xf32>
    %157 = arith.addf %154, %156 : vector<10x2xf32>
    %c0_140 = arith.constant 0 : index
    %c0_141 = arith.constant 0 : index
    %158 = vector.load %arg12[%c0_140, %c0_141] : memref<10x1xf32, #tpu.memory_space<vmem>>, vector<10x1xf32>
    %159 = vector.broadcast %158 : vector<10x1xf32> to vector<10x2xf32>
    %160 = arith.addf %157, %159 : vector<10x2xf32>
    %c0_142 = arith.constant 0 : index
    %c0_143 = arith.constant 0 : index
    %161 = vector.load %arg13[%c0_142, %c0_143] : memref<10x2xf32, #tpu.memory_space<vmem>>, vector<10x2xf32>
    tpu.vector_store %arg13[%c0_142, %c0_143], %160 {strides = array<i32>} : memref<10x2xf32, #tpu.memory_space<vmem>>, vector<10x2xf32>,
    return
  }
}

</mosaic_0001>

<bundles_post_ra>
// kernel: net_forward.1
= control target key start
LH: loop header
LB: loop body
LE: loop exit
PB: predicated region body
PF: predicated region fallthrough
CT: control target
= control target key end

     0   :  { %s4611_s29 = smov 111   ;;  %s4612_s15 = smov 112   ;;  %v7509_v6 = vmov 0.0   ;;  %v70_v9 = vlaneseq  ;;  %v4620_v29 = vmov 0   ;;  %vm828_vm8 = vcmask 588800   ;;  %s7495_s0 = inlined_call_operand.vmem [shape: f32[8,1024], index: 0, kind: input, shape index: {}]   ;;  %s7496_s1 = inlined_call_operand.vmem [shape: f32[16,1024], index: 1, kind: input, shape index: {}]   ;;  %s7497_s5 = inlined_call_operand.vmem [shape: f32[8,1], index: 5, kind: input, shape index: {}]   ;;  %s7498_s4 = inlined_call_operand.vmem [shape: f32[8,72], index: 4, kind: input, shape index: {}]   ;;  %s7499_s7 = inlined_call_operand.vmem [shape: f32[8,1], index: 7, kind: input, shape index: {}]   ;;  %s7500_s6 = inlined_call_operand.vmem [shape: f32[8,72], index: 6, kind: input, shape index: {}]   ;;  %s7501_s12 = inlined_call_operand.vmem [shape: f32[10,1], index: 12, kind: input, shape index: {}]   ;;  %s7502_s9 = inlined_call_operand.vmem [shape: f32[8,1], index: 9, kind: input, shape index: {}]   ;;  %s7503_s8 = inlined_call_operand.vmem [shape: f32[8,72], index: 8, kind: input, shape index: {}]   ;;  %s7504_s2 = inlined_call_operand.vmem [shape: f32[1024,2], index: 2, kind: input, shape index: {}]   ;;  %s7505_s3 = inlined_call_operand.vmem [shape: f32[1024,2], index: 3, kind: input, shape index: {}]   ;;  %s7506_s10 = inlined_call_operand.vmem [shape: f32[10,8], index: 10, kind: input, shape index: {}]   ;;  %s7507_s11 = inlined_call_operand.vmem [shape: f32[10,8], index: 11, kind: input, shape index: {}]   ;;  %s7508_s13 = inlined_call_operand.vmem [shape: f32[10,2], index: 13, kind: output, shape index: {}]  }
   0x1   :  { %v4694_v0 = vld [vmem:[%s7495_s0 + $0x8] sm:$0xff]  ;;  %v4699_v1 = vld [vmem:[%s7495_s0] sm:$0xff]  ;;  %v4708_v2 = vld [vmem:[%s7495_s0 + $0x10] sm:$0xff]  ;;  %s4613_s20 = smov 113   ;;  %s4614_s21 = smov 127   ;;  %896 = vmatprep.mubr.f32.mxu0 %v7509_v6  ;;  %967 = vmatprep.mubr.f32.mxu1 %v7509_v6  ;;  %vm4060_vm9 = vcmask 64512  }
   0x2   :  { %667 = vrot.lane.b32.xlu0 %v4694_v0, %s4611_s29  ;;  %665 = vrot.lane.b32.xlu1 %v4699_v1, %s4611_s29  ;;  %v4717_v3 = vld [vmem:[%s7495_s0 + $0x18] sm:$0xff]  ;;  %v4726_v4 = vld [vmem:[%s7495_s0 + $0x20] sm:$0xff]  ;;  %s4615_s22 = smov 1   ;;  %s4616_s25 = smov 15   ;;  %v4845_v10 = vshrl.u32 %v70_v9, 7  ;;  %v4853_v13 = vand.u32 127, %v70_v9 }
   0x3   :  { %v4763_v5 = vld [vmem:[%s7495_s0 + $0x38] sm:$0xff]  ;;  %s4617_s26 = smov 16   ;;  %s4619_s27 = smov 17   ;;  %v4806_v7 = vld [vmem:[%s7495_s0 + $0x28] sm:$0xff]  ;;  %v4811_v8 = vld [vmem:[%s7495_s0 + $0x30] sm:$0xff]  ;;  %4609 = vset.pattern.permute.xlu0 %v4620_v29  ;;  %4610 = vset.pattern.permute.xlu1 %v4620_v29  ;;  %vm4239_vm10 = vcmask 9216  }
   0x4   :  { %v4257_v11 = vld [vmem:[%s7496_s1 + $0x40] ss:$8 sm:$0xf]  ;;  %v4860_v14 = vsub.s32 0, %v4845_v10  ;;  %v4863_v15 = vsub.s32 1, %v4845_v10  ;;  %vm681_vm0 = vcmp.lt.s32.totalorder %v4853_v13, 111 }
   0x5   :  { %v4258_v12 = vld [vmem:[%s7496_s1 + $0x40] ss:$8 sm:$0xf0]  ;;  %v4255_v17 = vld [vmem:[%s7496_s1 + $0x7] ss:$8 sm:$0xf] }
   0x6   :  { %669 = vrot.lane.b32.xlu0 %v4708_v2, %s4611_s29  ;;  %581 = vrot.lane.b32.xlu1 %v4694_v0, %s4612_s15  ;;  %7540 = vst [vmem:[#allocation3_spill] sm:$0xff] %v4860_v14  ;;  %7541 = vst [vmem:[#allocation4_spill] sm:$0xff] %v4863_v15  ;;  %v4865_v16 = vor.u32 %v4258_v12, %v4257_v11  ;;  %v4256_v18 = vld [vmem:[%s7496_s1 + $0x7] ss:$8 sm:$0xf0]  ;;  %v4890_v27 = vsub.s32 3, %v4845_v10 }
   0x7   :  { %v4882_v22 = vor.u32 %v4256_v18, %v4255_v17  ;;  %v4899_v30 = vsub.s32 2, %v4845_v10  ;;  %vm595_vm1 = vcmp.lt.s32.totalorder %v4853_v13, 112  ;;  %v4253_v34 = vld [vmem:[%s7496_s1 + $0x6] ss:$8 sm:$0xf]  ;;  %vm509_vm2 = vcmp.lt.s32.totalorder %v4853_v13, 113 }
   0x8   :  { %v702_v21 = vrot.slane %v4865_v16, %v4863_v15  ;;  %v698_v23 = vrot.slane %v4865_v16, %v4860_v14  ;;  %7542 = vst [vmem:[#allocation5_spill] sm:$0xff] %v4890_v27  ;;  %v4254_v35 = vld [vmem:[%s7496_s1 + $0x6] ss:$8 sm:$0xf0]  ;;  %v710_v39 = vrot.slane %v4865_v16, %v4890_v27  ;;  %vm423_vm3 = vcmp.lt.s32.totalorder %v4853_v13, 127 }
   0x9   :  { %7543 = vst [vmem:[#allocation6_spill] sm:$0xff] %v4899_v30  ;;  %v616_v32 = vrot.slane %v4882_v22, %v4863_v15  ;;  %v612_v41 = vrot.slane %v4882_v22, %v4860_v14  ;;  %v4920_v42 = vor.u32 %v4254_v35, %v4253_v34  ;;  %v706_v43 = vrot.slane %v4865_v16, %v4899_v30  ;;  %v53_v44 = vld [vmem:[%s7497_s5] sm:$0xff] }
   0xa   :  { %583 = vrot.lane.b32.xlu0 %v4708_v2, %s4612_s15  ;;  %671 = vrot.lane.b32.xlu1 %v4717_v3, %s4611_s29  ;;  %v624_v58 = vrot.slane %v4882_v22, %v4890_v27  ;;  %v620_v59 = vrot.slane %v4882_v22, %v4899_v30  ;;  %v4251_v60 = vld [vmem:[%s7496_s1 + $0x5] ss:$8 sm:$0xf]  ;;  %vm329_vm4 = vcmp.lt.s32.totalorder %v4853_v13, 1  ;;  %vm243_vm5 = vcmp.lt.s32.totalorder %v4853_v13, 15 }
   0xb   :  { %v530_v52 = vrot.slane %v4920_v42, %v4863_v15  ;;  %v4252_v61 = vld [vmem:[%s7496_s1 + $0x5] ss:$8 sm:$0xf0]  ;;  %v526_v18 = vrot.slane %v4920_v42, %v4860_v14  ;;  %v538_v34 = vrot.slane %v4920_v42, %v4890_v27  ;;  %v534_v35 = vrot.slane %v4920_v42, %v4899_v30 }
   0xc   :  { %vm157_vm6 = vcmp.lt.s32.totalorder %v4853_v13, 16  ;;  %vm72_vm7 = vcmp.lt.s32.totalorder %v4853_v13, 17  ;;  %v3269_v13 = vld [vmem:[%s7504_s2 + $0xe8] sm:$0xff]  ;;  %vm4237_vm11 = vcmask 15360  }
   0xe   :  { %673 = vrot.lane.b32.xlu0 %v4726_v4, %s4611_s29  ;;  %579 = vrot.lane.b32.xlu1 %v4699_v1, %s4612_s15 }
  0x12   :  { %495 = vrot.lane.b32.xlu0 %v4694_v0, %s4613_s20  ;;  %497 = vrot.lane.b32.xlu1 %v4708_v2, %s4613_s20 }
  0x16   :  { %585 = vrot.lane.b32.xlu0 %v4717_v3, %s4612_s15  ;;  %587 = vrot.lane.b32.xlu1 %v4726_v4, %s4612_s15 }
  0x1a   :  { %493 = vrot.lane.b32.xlu0 %v4699_v1, %s4613_s20  ;;  %409 = vrot.lane.b32.xlu1 %v4694_v0, %s4614_s21 }
  0x1e   :  { %411 = vrot.lane.b32.xlu0 %v4708_v2, %s4614_s21  ;;  %499 = vrot.lane.b32.xlu1 %v4717_v3, %s4613_s20 }
  0x22   :  { %501 = vrot.lane.b32.xlu0 %v4726_v4, %s4613_s20  ;;  %407 = vrot.lane.b32.xlu1 %v4699_v1, %s4614_s21 }
  0x26   :  { %413 = vrot.lane.b32.xlu0 %v4717_v3, %s4614_s21  ;;  %415 = vrot.lane.b32.xlu1 %v4726_v4, %s4614_s21 }
  0x2a   :  { %313 = vrot.lane.b32.xlu0 %v4699_v1, %s4615_s22  ;;  %315 = vrot.lane.b32.xlu1 %v4694_v0, %s4615_s22 }
  0x2e   :  { %327 = vrot.lane.b32.xlu0 %v4763_v5, %s4615_s22  ;;  %227 = vrot.lane.b32.xlu1 %v4699_v1, %s4616_s25 }
  0x32   :  { %229 = vrot.lane.b32.xlu0 %v4694_v0, %s4616_s25  ;;  %317 = vrot.lane.b32.xlu1 %v4708_v2, %s4615_s22 }
  0x36   :  { %319 = vrot.lane.b32.xlu0 %v4717_v3, %s4615_s22  ;;  %241 = vrot.lane.b32.xlu1 %v4763_v5, %s4616_s25 }
  0x3a   :  { %141 = vrot.lane.b32.xlu0 %v4699_v1, %s4617_s26  ;;  %143 = vrot.lane.b32.xlu1 %v4694_v0, %s4617_s26 }
  0x3e   :  { %231 = vrot.lane.b32.xlu0 %v4708_v2, %s4616_s25  ;;  %233 = vrot.lane.b32.xlu1 %v4717_v3, %s4616_s25 }
  0x42   :  { %155 = vrot.lane.b32.xlu0 %v4763_v5, %s4617_s26  ;;  %54 = vrot.lane.b32.xlu1 %v4699_v1, %s4619_s27 }
  0x46   :  { %56 = vrot.lane.b32.xlu0 %v4694_v0, %s4619_s27  ;;  %145 = vrot.lane.b32.xlu1 %v4708_v2, %s4617_s26 }
  0x4a   :  { %147 = vrot.lane.b32.xlu0 %v4717_v3, %s4617_s26  ;;  %68 = vrot.lane.b32.xlu1 %v4763_v5, %s4619_s27 }
  0x4e   :  { %58 = vrot.lane.b32.xlu0 %v4708_v2, %s4619_s27  ;;  %60 = vrot.lane.b32.xlu1 %v4717_v3, %s4619_s27 }
  0x52   :  { %675 = vrot.lane.b32.xlu0 %v4806_v7, %s4611_s29  ;;  %677 = vrot.lane.b32.xlu1 %v4811_v8, %s4611_s29 }
  0x56   :  { %589 = vrot.lane.b32.xlu0 %v4806_v7, %s4612_s15  ;;  %591 = vrot.lane.b32.xlu1 %v4811_v8, %s4612_s15 }
  0x5a   :  { %679 = vrot.lane.b32.xlu0 %v4763_v5, %s4611_s29  ;;  %503 = vrot.lane.b32.xlu1 %v4806_v7, %s4613_s20 }
  0x5e   :  { %505 = vrot.lane.b32.xlu0 %v4811_v8, %s4613_s20  ;;  %593 = vrot.lane.b32.xlu1 %v4763_v5, %s4612_s15 }
  0x62   :  { %417 = vrot.lane.b32.xlu0 %v4806_v7, %s4614_s21  ;;  %419 = vrot.lane.b32.xlu1 %v4811_v8, %s4614_s21 }
  0x66   :  { %507 = vrot.lane.b32.xlu0 %v4763_v5, %s4613_s20  ;;  %421 = vrot.lane.b32.xlu1 %v4763_v5, %s4614_s21 }
  0x6a   :  { %321 = vrot.lane.b32.xlu0 %v4726_v4, %s4615_s22  ;;  %323 = vrot.lane.b32.xlu1 %v4806_v7, %s4615_s22 }
  0x6e   :  { %235 = vrot.lane.b32.xlu0 %v4726_v4, %s4616_s25  ;;  %237 = vrot.lane.b32.xlu1 %v4806_v7, %s4616_s25 }
  0x72   :  { %325 = vrot.lane.b32.xlu0 %v4811_v8, %s4615_s22  ;;  %149 = vrot.lane.b32.xlu1 %v4726_v4, %s4617_s26 }
  0x74   :  { %v668_v19 = vpop.permute.xlu0 %667  ;;  %v4873_v20 = vpop.permute.xlu1 %665 }
  0x75   :  { %v688_v26 = vsel %vm681_vm0, %v4873_v20, %v668_v19 }
  0x76   :  { %151 = vrot.lane.b32.xlu0 %v4806_v7, %s4617_s26  ;;  %239 = vrot.lane.b32.xlu1 %v4811_v8, %s4616_s25  ;;  %v735_v33 = vmul.f32 %v698_v23, %v688_v26 }
  0x78   :  { %v670_v24 = vpop.permute.xlu0 %669  ;;  %v582_v25 = vpop.permute.xlu1 %581 }
  0x79   :  { %v687_v28 = vsel %vm681_vm0, %v668_v19, %v670_v24  ;;  %v4963_v19 = vor.u32 %v4252_v61, %v4251_v60  ;;  %v4248_v60 = vld [vmem:[%s7496_s1 + $0x2] ss:$8 sm:$0xf0] }
  0x7a   :  { %62 = vrot.lane.b32.xlu0 %v4726_v4, %s4619_s27  ;;  %64 = vrot.lane.b32.xlu1 %v4806_v7, %s4619_s27  ;;  %v736_v31 = vmul.f32 %v702_v21, %v687_v28 }
  0x7b   :  { %v444_v26 = vrot.slane %v4963_v19, %v4863_v15 }
  0x7c   :  { %846 = vmatprep.subr.mxu0 %v736_v31  ;;  %v584_v36 = vpop.permute.xlu0 %583  ;;  %v672_v37 = vpop.permute.xlu1 %671 }
  0x7d   :  { %v601_v38 = vsel %vm595_vm1, %v582_v25, %v584_v36  ;;  %847 = vmatpush1.msra.mxu0 %v735_v33  ;;  %v686_v47 = vsel %vm681_vm0, %v670_v24, %v672_v37  ;;  %v440_v33 = vrot.slane %v4963_v19, %v4860_v14 }
  0x7e   :  { %153 = vrot.lane.b32.xlu0 %v4811_v8, %s4617_s26  ;;  %66 = vrot.lane.b32.xlu1 %v4811_v8, %s4619_s27  ;;  %v650_v40 = vmul.f32 %v616_v32, %v601_v38  ;;  %v737_v53 = vmul.f32 %v706_v43, %v686_v47 }
  0x80   :  { %v4927_v45 = vpop.permute.xlu0 %673  ;;  %848 = vmatprep.subr.mxu0 %v650_v40  ;;  %v4929_v46 = vpop.permute.xlu1 %579 }
  0x81   :  { %v602_v48 = vsel %vm595_vm1, %v4929_v46, %v582_v25  ;;  %v685_v49 = vsel %vm681_vm0, %v672_v37, %v4927_v45  ;;  %v4250_v37 = vld [vmem:[%s7496_s1 + $0x3] ss:$8 sm:$0xf0] }
  0x82   :  { %v649_v50 = vmul.f32 %v612_v41, %v602_v48  ;;  %v738_v51 = vmul.f32 %v710_v39, %v685_v49  ;;  %825 = vperm.xlu0 %4609, %v53_v44   ;;  %v452_v44 = vrot.slane %v4963_v19, %v4890_v27  ;;  %v448_v49 = vrot.slane %v4963_v19, %v4899_v30 }
  0x84   :  { %v496_v54 = vpop.permute.xlu0 %495  ;;  %849 = vmatpush1.msra.mxu0 %v649_v50  ;;  %917 = vmatprep.subr.mxu1 %v738_v51  ;;  %v498_v55 = vpop.permute.xlu1 %497 }
  0x85   :  { %v515_v56 = vsel %vm509_vm2, %v496_v54, %v498_v55  ;;  %918 = vmatpush1.msra.mxu1 %v737_v53 }
  0x86   :  { %v564_v57 = vmul.f32 %v530_v52, %v515_v56 }
  0x88   :  { %v586_v62 = vpop.permute.xlu0 %585  ;;  %850 = vmatprep.subr.mxu0 %v564_v57  ;;  %v4954_v63 = vpop.permute.xlu1 %587 }
  0x89   :  { %v600_v9 = vsel %vm595_vm1, %v584_v36, %v586_v62  ;;  %v599_v11 = vsel %vm595_vm1, %v586_v62, %v4954_v63  ;;  %v4249_v36 = vld [vmem:[%s7496_s1 + $0x3] ss:$8 sm:$0xf] }
  0x8a   :  { %v652_v12 = vmul.f32 %v624_v58, %v599_v11  ;;  %v651_v17 = vmul.f32 %v620_v59, %v600_v9  ;;  %v5003_v50 = vor.u32 %v4250_v37, %v4249_v36  ;;  %v4247_v59 = vld [vmem:[%s7496_s1 + $0x2] ss:$8 sm:$0xf] }
  0x8b   :  { %v5027_v11 = vor.u32 %v4248_v60, %v4247_v59 }
  0x8c   :  { %v4965_v21 = vpop.permute.xlu0 %493  ;;  %919 = vmatprep.subr.mxu1 %v652_v12  ;;  %v410_v23 = vpop.permute.xlu1 %409  ;;  %v350_v58 = vrot.slane %v5003_v50, %v4863_v15 }
  0x8d   :  { %v516_v24 = vsel %vm509_vm2, %v4965_v21, %v496_v54  ;;  %920 = vmatpush1.msra.mxu1 %v651_v17 }
  0x8e   :  { %v563_v25 = vmul.f32 %v526_v18, %v516_v24  ;;  %v264_v24 = vrot.slane %v5027_v11, %v4863_v15 }
  0x90   :  { %v412_v28 = vpop.permute.xlu0 %411  ;;  %851 = vmatpush1.msra.mxu0 %v563_v25  ;;  %v500_v29 = vpop.permute.xlu1 %499 }
  0x91   :  { %v429_v31 = vsel %vm423_vm3, %v410_v23, %v412_v28  ;;  %v514_v38 = vsel %vm509_vm2, %v498_v55, %v500_v29 }
  0x92   :  { %v478_v32 = vmul.f32 %v444_v26, %v429_v31  ;;  %v565_v51 = vmul.f32 %v534_v35, %v514_v38  ;;  %v260_v31 = vrot.slane %v5027_v11, %v4860_v14 }
  0x94   :  { %v4989_v39 = vpop.permute.xlu0 %501  ;;  %852 = vmatprep.subr.mxu0 %v478_v32  ;;  %v4991_v40 = vpop.permute.xlu1 %407  ;;  %v358_v32 = vrot.slane %v5003_v50, %v4890_v27 }
  0x95   :  { %v513_v41 = vsel %vm509_vm2, %v500_v29, %v4989_v39  ;;  %v430_v43 = vsel %vm423_vm3, %v4991_v40, %v410_v23 }
  0x96   :  { %v477_v47 = vmul.f32 %v440_v33, %v430_v43  ;;  %v566_v48 = vmul.f32 %v538_v34, %v513_v41  ;;  %v354_v34 = vrot.slane %v5003_v50, %v4899_v30 }
  0x98   :  { %v414_v52 = vpop.permute.xlu0 %413  ;;  %853 = vmatpush1.msra.mxu0 %v477_v47  ;;  %921 = vmatprep.subr.mxu1 %v566_v48  ;;  %v5005_v53 = vpop.permute.xlu1 %415 }
  0x99   :  { %v428_v54 = vsel %vm423_vm3, %v412_v28, %v414_v52  ;;  %v427_v55 = vsel %vm423_vm3, %v414_v52, %v5005_v53  ;;  %922 = vmatpush1.msra.mxu1 %v565_v51  ;;  %854 = vmatprep.subr.mxu0 %v4694_v0 }
  0x9a   :  { %v480_v56 = vmul.f32 %v452_v44, %v427_v55  ;;  %v479_v57 = vmul.f32 %v448_v49, %v428_v54  ;;  %855 = vmatpush1.msra.mxu0 %v4699_v1  ;;  %v346_v1 = vrot.slane %v5003_v50, %v4860_v14  ;;  %v272_v55 = vrot.slane %v5027_v11, %v4890_v27 }
  0x9c   :  { %v314_v61 = vpop.permute.xlu0 %313  ;;  %923 = vmatprep.subr.mxu1 %v480_v56  ;;  %v316_v0 = vpop.permute.xlu1 %315  ;;  %v268_v56 = vrot.slane %v5027_v11, %v4899_v30 }
  0x9d   :  { %v336_v62 = vsel %vm329_vm4, %v314_v61, %v316_v0  ;;  %924 = vmatpush1.msra.mxu1 %v479_v57  ;;  %v81_v57 = vld [vmem:[%s7496_s1] ss:$8 sm:$0xf] }
  0x9e   :  { %v384_v9 = vmul.f32 %v350_v58, %v336_v62  ;;  %925 = vmatprep.subr.mxu1 %v4717_v3  ;;  %v4245_v3 = vld [vmem:[%s7496_s1 + $0x1] ss:$8 sm:$0xf]  ;;  %v82_v58 = vld [vmem:[%s7496_s1] ss:$8 sm:$0xf0] }
  0x9f   :  { %926 = vmatpush1.msra.mxu1 %v4708_v2  ;;  %v4246_v2 = vld [vmem:[%s7496_s1 + $0x1] ss:$8 sm:$0xf0] }
  0xa0   :  { %v5031_v12 = vpop.permute.xlu0 %327  ;;  %856 = vmatprep.subr.mxu0 %v384_v9  ;;  %v228_v17 = vpop.permute.xlu1 %227  ;;  %v5051_v33 = vor.u32 %v4246_v2, %v4245_v3 }
  0xa1   :  { %v337_v18 = vsel %vm329_vm4, %v5031_v12, %v314_v61 }
  0xa2   :  { %v383_v23 = vmul.f32 %v346_v1, %v337_v18  ;;  %v178_v47 = vrot.slane %v5051_v33, %v4863_v15  ;;  %v174_v1 = vrot.slane %v5051_v33, %v4860_v14 }
  0xa4   :  { %v230_v25 = vpop.permute.xlu0 %229  ;;  %857 = vmatpush1.msra.mxu0 %v383_v23  ;;  %v318_v26 = vpop.permute.xlu1 %317 }
  0xa5   :  { %v250_v28 = vsel %vm243_vm5, %v228_v17, %v230_v25  ;;  %v335_v35 = vsel %vm329_vm4, %v316_v0, %v318_v26 }
  0xa6   :  { %v298_v29 = vmul.f32 %v264_v24, %v250_v28  ;;  %v385_v48 = vmul.f32 %v354_v34, %v335_v35  ;;  %v182_v34 = vrot.slane %v5051_v33, %v4899_v30  ;;  %v5110_v35 = vsub.s32 4, %v4845_v10 }
  0xa8   :  { %v5057_v36 = vpop.permute.xlu0 %319  ;;  %858 = vmatprep.subr.mxu0 %v298_v29  ;;  %v5059_v37 = vpop.permute.xlu1 %241 }
  0xa9   :  { %v334_v38 = vsel %vm329_vm4, %v318_v26, %v5057_v36  ;;  %v251_v41 = vsel %vm243_vm5, %v5059_v37, %v228_v17  ;;  %v5091_v17 = vor.u32 %v82_v58, %v81_v57 }
  0xaa   :  { %v297_v43 = vmul.f32 %v260_v31, %v251_v41  ;;  %v386_v44 = vmul.f32 %v358_v32, %v334_v38  ;;  %v186_v32 = vrot.slane %v5051_v33, %v4890_v27 }
  0xab   :  { %v92_v2 = vrot.slane %v5091_v17, %v4863_v15  ;;  %v88_v31 = vrot.slane %v5091_v17, %v4860_v14 }
  0xac   :  { %v142_v49 = vpop.permute.xlu0 %141  ;;  %859 = vmatpush1.msra.mxu0 %v297_v43  ;;  %927 = vmatprep.subr.mxu1 %v386_v44  ;;  %v144_v51 = vpop.permute.xlu1 %143  ;;  %v5119_v44 = vsub.s32 5, %v4845_v10 }
  0xad   :  { %v164_v52 = vsel %vm157_vm6, %v142_v49, %v144_v51  ;;  %928 = vmatpush1.msra.mxu1 %v385_v48 }
  0xae   :  { %v212_v54 = vmul.f32 %v178_v47, %v164_v52 }
  0xb0   :  { %v232_v59 = vpop.permute.xlu0 %231  ;;  %860 = vmatprep.subr.mxu0 %v212_v54  ;;  %v5082_v60 = vpop.permute.xlu1 %233  ;;  %v5132_v54 = vld [vmem:[%s7498_s4] sm:$0xff] }
  0xb1   :  { %v249_v61 = vsel %vm243_vm5, %v230_v25, %v232_v59  ;;  %v248_v0 = vsel %vm243_vm5, %v232_v59, %v5082_v60 }
  0xb2   :  { %v300_v62 = vmul.f32 %v272_v55, %v248_v0  ;;  %v299_v9 = vmul.f32 %v268_v56, %v249_v61  ;;  %v96_v55 = vrot.slane %v5091_v17, %v4899_v30  ;;  %v714_v0 = vrot.slane %v4865_v16, %v5110_v35 }
  0xb4   :  { %v5093_v18 = vpop.permute.xlu0 %155  ;;  %929 = vmatprep.subr.mxu1 %v300_v62  ;;  %v55_v23 = vpop.permute.xlu1 %54 }
  0xb5   :  { %v165_v24 = vsel %vm157_vm6, %v5093_v18, %v142_v49  ;;  %930 = vmatpush1.msra.mxu1 %v299_v9  ;;  %v100_v49 = vrot.slane %v5091_v17, %v4890_v27 }
  0xb6   :  { %v211_v3 = vmul.f32 %v174_v1, %v165_v24  ;;  %v718_v1 = vrot.slane %v4865_v16, %v5119_v44 }
  0xb8   :  { %v57_v25 = vpop.permute.xlu0 %56  ;;  %861 = vmatpush1.msra.mxu0 %v211_v3  ;;  %v146_v26 = vpop.permute.xlu1 %145  ;;  %v5151_v3 = vsub.s32 6, %v4845_v10 }
  0xb9   :  { %v79_v28 = vsel %vm72_vm7, %v55_v23, %v57_v25  ;;  %v163_v38 = vsel %vm157_vm6, %v144_v51, %v146_v26 }
  0xba   :  { %v126_v29 = vmul.f32 %v92_v2, %v79_v28  ;;  %v213_v56 = vmul.f32 %v182_v34, %v163_v38  ;;  %v5154_v2 = vsub.s32 7, %v4845_v10  ;;  %v632_v10 = vrot.slane %v4882_v22, %v5119_v44 }
  0xbc   :  { %v5114_v41 = vpop.permute.xlu0 %147  ;;  %862 = vmatprep.subr.mxu0 %v126_v29  ;;  %v5116_v43 = vpop.permute.xlu1 %68  ;;  %v628_v29 = vrot.slane %v4882_v22, %v5110_v35 }
  0xbd   :  { %v162_v47 = vsel %vm157_vm6, %v146_v26, %v5114_v41  ;;  %v80_v48 = vsel %vm72_vm7, %v5116_v43, %v55_v23 }
  0xbe   :  { %v125_v51 = vmul.f32 %v88_v31, %v80_v48  ;;  %v214_v52 = vmul.f32 %v186_v32, %v162_v47  ;;  %v722_v48 = vrot.slane %v4865_v16, %v5151_v3 }
  0xc0   :  { %v59_v57 = vpop.permute.xlu0 %58  ;;  %863 = vmatpush1.msra.mxu0 %v125_v51  ;;  %931 = vmatprep.subr.mxu1 %v214_v52  ;;  %v5136_v58 = vpop.permute.xlu1 %60  ;;  %v726_v51 = vrot.slane %v4865_v16, %v5154_v2  ;;  %v640_v16 = vrot.slane %v4882_v22, %v5154_v2 }
  0xc1   :  { %v78_v59 = vsel %vm72_vm7, %v57_v25, %v59_v57  ;;  %v77_v61 = vsel %vm72_vm7, %v59_v57, %v5136_v58  ;;  %932 = vmatpush1.msra.mxu1 %v213_v56  ;;  %4259 = vmatmul.mubr.msk.f32.vlgmr.msra.gmra.mxu0 %vm828_vm8, %v5132_v54  ;;  %v546_v57 = vrot.slane %v4920_v42, %v5119_v44 }
  0xc2   :  { %v128_v62 = vmul.f32 %v100_v49, %v77_v61  ;;  %v127_v9 = vmul.f32 %v96_v55, %v78_v59  ;;  %1038 = vmatprep.mubr.f32.mxu0 %v7509_v6 }
  0xc4   :  { %v676_v23 = vpop.permute.xlu0 %675  ;;  %933 = vmatprep.subr.mxu1 %v128_v62  ;;  %v678_v24 = vpop.permute.xlu1 %677  ;;  %v542_v62 = vrot.slane %v4920_v42, %v5110_v35 }
  0xc5   :  { %v684_v25 = vsel %vm681_vm0, %v4927_v45, %v676_v23  ;;  %v683_v26 = vsel %vm681_vm0, %v676_v23, %v678_v24  ;;  %934 = vmatpush1.msra.mxu1 %v127_v9 }
  0xc6   :  { %v739_v28 = vmul.f32 %v714_v0, %v684_v25  ;;  %4260 = vmatmul.mubr.msk.f32.vlgmr.msra.gmra.mxu1 %vm828_vm8, %v5132_v54  ;;  %v740_v31 = vmul.f32 %v718_v1, %v683_v26  ;;  %v636_v0 = vrot.slane %v4882_v22, %v5151_v3  ;;  %v456_v25 = vrot.slane %v4963_v19, %v5110_v35 }
  0xc7   :  { %1109 = vmatprep.mubr.f32.mxu1 %v7509_v6 }
  0xc8   :  { %v590_v32 = vpop.permute.xlu0 %589  ;;  %988 = vmatprep.subr.mxu0 %v740_v31  ;;  %v592_v45 = vpop.permute.xlu1 %591 }
  0xc9   :  { %v598_v34 = vsel %vm595_vm1, %v4954_v63, %v590_v32  ;;  %v597_v38 = vsel %vm595_vm1, %v590_v32, %v592_v45  ;;  %989 = vmatpush1.msra.mxu0 %v739_v28 }
  0xca   :  { %v653_v47 = vmul.f32 %v628_v29, %v598_v34  ;;  %v654_v49 = vmul.f32 %v632_v10, %v597_v38  ;;  %v460_v29 = vrot.slane %v4963_v19, %v5119_v44  ;;  %v550_v38 = vrot.slane %v4920_v42, %v5151_v3 }
  0xcc   :  { %v680_v52 = vpop.permute.xlu0 %679  ;;  %990 = vmatprep.subr.mxu0 %v654_v49  ;;  %v504_v55 = vpop.permute.xlu1 %503  ;;  %v464_v49 = vrot.slane %v4963_v19, %v5151_v3 }
  0xcd   :  { %v682_v56 = vsel %vm681_vm0, %v678_v24, %v680_v52  ;;  %v689_v63 = vsel %vm681_vm0, %v680_v52, %v4873_v20  ;;  %991 = vmatpush1.msra.mxu0 %v653_v47  ;;  %v512_v9 = vsel %vm509_vm2, %v4989_v39, %v504_v55 }
  0xce   :  { %v741_v59 = vmul.f32 %v722_v48, %v682_v56  ;;  %v742_v61 = vmul.f32 %v726_v51, %v689_v63  ;;  %v567_v31 = vmul.f32 %v542_v62, %v512_v9  ;;  %v554_v48 = vrot.slane %v4920_v42, %v5154_v2 }
  0xd0   :  { %v506_v20 = vpop.permute.xlu0 %505  ;;  %1059 = vmatprep.subr.mxu1 %v742_v61  ;;  %v594_v1 = vpop.permute.xlu1 %593  ;;  %v366_v61 = vrot.slane %v5003_v50, %v5119_v44 }
  0xd1   :  { %v511_v23 = vsel %vm509_vm2, %v504_v55, %v506_v20  ;;  %v596_v24 = vsel %vm595_vm1, %v592_v45, %v594_v1  ;;  %v603_v22 = vsel %vm595_vm1, %v594_v1, %v4929_v46  ;;  %1060 = vmatpush1.msra.mxu1 %v741_v59  ;;  %v362_v59 = vrot.slane %v5003_v50, %v5110_v35 }
  0xd2   :  { %v655_v26 = vmul.f32 %v636_v0, %v596_v24  ;;  %v568_v28 = vmul.f32 %v546_v57, %v511_v23  ;;  %v656_v39 = vmul.f32 %v640_v16, %v603_v22 }
  0xd4   :  { %v418_v10 = vpop.permute.xlu0 %417  ;;  %992 = vmatprep.subr.mxu0 %v568_v28  ;;  %1061 = vmatprep.subr.mxu1 %v656_v39  ;;  %v420_v32 = vpop.permute.xlu1 %419  ;;  %v374_v39 = vrot.slane %v5003_v50, %v5154_v2 }
  0xd5   :  { %v426_v45 = vsel %vm423_vm3, %v5005_v53, %v418_v10  ;;  %v425_v46 = vsel %vm423_vm3, %v418_v10, %v420_v32  ;;  %993 = vmatpush1.msra.mxu0 %v567_v31  ;;  %1062 = vmatpush1.msra.mxu1 %v655_v26  ;;  %v468_v53 = vrot.slane %v4963_v19, %v5154_v2 }
  0xd6   :  { %v481_v34 = vmul.f32 %v456_v25, %v426_v45  ;;  %v482_v47 = vmul.f32 %v460_v29, %v425_v46  ;;  %v370_v26 = vrot.slane %v5003_v50, %v5151_v3  ;;  %v284_v45 = vrot.slane %v5027_v11, %v5151_v3 }
  0xd7   :  { %v288_v50 = vrot.slane %v5027_v11, %v5154_v2  ;;  %v190_v46 = vrot.slane %v5051_v33, %v5110_v35 }
  0xd8   :  { %v508_v51 = vpop.permute.xlu0 %507  ;;  %994 = vmatprep.subr.mxu0 %v482_v47  ;;  %v422_v52 = vpop.permute.xlu1 %421 }
  0xd9   :  { %v510_v55 = vsel %vm509_vm2, %v506_v20, %v508_v51  ;;  %v517_v56 = vsel %vm509_vm2, %v508_v51, %v4965_v21  ;;  %v424_v63 = vsel %vm423_vm3, %v420_v32, %v422_v52  ;;  %v431_v42 = vsel %vm423_vm3, %v422_v52, %v4991_v40  ;;  %995 = vmatpush1.msra.mxu0 %v481_v34 }
  0xda   :  { %v569_v57 = vmul.f32 %v550_v38, %v510_v55  ;;  %v570_v19 = vmul.f32 %v554_v48, %v517_v56  ;;  %996 = vmatprep.subr.mxu0 %v4806_v7  ;;  %v483_v0 = vmul.f32 %v464_v49, %v424_v63  ;;  %v484_v62 = vmul.f32 %v468_v53, %v431_v42 }
  0xdb   :  { %997 = vmatpush1.msra.mxu0 %v4726_v4  ;;  %v276_v7 = vrot.slane %v5027_v11, %v5110_v35  ;;  %v280_v4 = vrot.slane %v5027_v11, %v5119_v44  ;;  %v104_v49 = vrot.slane %v5091_v17, %v5110_v35  ;;  %v108_v53 = vrot.slane %v5091_v17, %v5119_v44 }
  0xdc   :  { %v322_v21 = vpop.permute.xlu0 %321  ;;  %1063 = vmatprep.subr.mxu1 %v570_v19  ;;  %v324_v16 = vpop.permute.xlu1 %323 }
  0xdd   :  { %v333_v40 = vsel %vm329_vm4, %v5057_v36, %v322_v21  ;;  %v332_v9 = vsel %vm329_vm4, %v322_v21, %v324_v16  ;;  %1064 = vmatpush1.msra.mxu1 %v569_v57 }
  0xde   :  { %v387_v20 = vmul.f32 %v362_v59, %v333_v40  ;;  %1065 = vmatprep.subr.mxu1 %v484_v62  ;;  %v388_v1 = vmul.f32 %v366_v61, %v332_v9  ;;  %v198_v59 = vrot.slane %v5051_v33, %v5151_v3  ;;  %v202_v61 = vrot.slane %v5051_v33, %v5154_v2 }
  0xdf   :  { %1066 = vmatpush1.msra.mxu1 %v483_v0  ;;  %v112_v0 = vrot.slane %v5091_v17, %v5151_v3 }
  0xe0   :  { %v236_v23 = vpop.permute.xlu0 %235  ;;  %998 = vmatprep.subr.mxu0 %v388_v1  ;;  %v238_v24 = vpop.permute.xlu1 %237  ;;  %1067 = vmatprep.subr.mxu1 %v4763_v5 }
  0xe1   :  { %v247_v36 = vsel %vm243_vm5, %v5082_v60, %v236_v23  ;;  %v246_v22 = vsel %vm243_vm5, %v236_v23, %v238_v24  ;;  %999 = vmatpush1.msra.mxu0 %v387_v20  ;;  %1068 = vmatpush1.msra.mxu1 %v4811_v8  ;;  %v194_v8 = vrot.slane %v5051_v33, %v5119_v44 }
  0xe2   :  { %v301_v25 = vmul.f32 %v276_v7, %v247_v36  ;;  %v302_v28 = vmul.f32 %v280_v4, %v246_v22 }
  0xe4   :  { %v326_v29 = vpop.permute.xlu0 %325  ;;  %1000 = vmatprep.subr.mxu0 %v302_v28  ;;  %v150_v5 = vpop.permute.xlu1 %149 }
  0xe5   :  { %v330_v60 = vsel %vm329_vm4, %v326_v29, %v5031_v12  ;;  %v331_v31 = vsel %vm329_vm4, %v324_v16, %v326_v29  ;;  %1001 = vmatpush1.msra.mxu0 %v301_v25  ;;  %v161_v12 = vsel %vm157_vm6, %v5114_v41, %v150_v5 }
  0xe6   :  { %v389_v10 = vmul.f32 %v370_v26, %v331_v31  ;;  %v390_v32 = vmul.f32 %v374_v39, %v330_v60  ;;  %v215_v55 = vmul.f32 %v190_v46, %v161_v12 }
  0xe8   :  { %v152_v34 = vpop.permute.xlu0 %151  ;;  %1069 = vmatprep.subr.mxu1 %v390_v32  ;;  %v240_v38 = vpop.permute.xlu1 %239 }
  0xe9   :  { %v160_v47 = vsel %vm157_vm6, %v150_v5, %v152_v34  ;;  %v244_v48 = vsel %vm243_vm5, %v240_v38, %v5059_v37  ;;  %v245_v11 = vsel %vm243_vm5, %v238_v24, %v240_v38  ;;  %1070 = vmatpush1.msra.mxu1 %v389_v10 }
  0xea   :  { %v303_v51 = vmul.f32 %v284_v45, %v245_v11  ;;  %v216_v52 = vmul.f32 %v194_v8, %v160_v47  ;;  %v304_v41 = vmul.f32 %v288_v50, %v244_v48 }
  0xec   :  { %v63_v56 = vpop.permute.xlu0 %62  ;;  %1002 = vmatprep.subr.mxu0 %v216_v52  ;;  %1071 = vmatprep.subr.mxu1 %v304_v41  ;;  %v65_v63 = vpop.permute.xlu1 %64 }
  0xed   :  { %v76_v37 = vsel %vm72_vm7, %v5136_v58, %v63_v56  ;;  %v75_v42 = vsel %vm72_vm7, %v63_v56, %v65_v63  ;;  %1003 = vmatpush1.msra.mxu0 %v215_v55  ;;  %1072 = vmatpush1.msra.mxu1 %v303_v51  ;;  %v116_v58 = vrot.slane %v5091_v17, %v5154_v2 }
  0xee   :  { %v129_v57 = vmul.f32 %v104_v49, %v76_v37  ;;  %v130_v19 = vmul.f32 %v108_v53, %v75_v42  ;;  %v1125_v49 = vld [vmem:[%s7499_s7] sm:$0xff] }
  0xef   :  { %v4276_v37 = vld [vmem:[%s7496_s1 + $0x40] ss:$8 sm:$0xf0] }
  0xf0   :  { %v154_v21 = vpop.permute.xlu0 %153  ;;  %1004 = vmatprep.subr.mxu0 %v130_v19  ;;  %v67_v16 = vpop.permute.xlu1 %66  ;;  %v4273_v19 = vld [vmem:[%s7496_s1 + $0x7] ss:$8 sm:$0xf] }
  0xf1   :  { %v158_v62 = vsel %vm157_vm6, %v154_v21, %v5093_v18  ;;  %v159_v40 = vsel %vm157_vm6, %v152_v34, %v154_v21  ;;  %v73_v33 = vsel %vm72_vm7, %v67_v16, %v5116_v43  ;;  %v74_v9 = vsel %vm72_vm7, %v65_v63, %v67_v16  ;;  %1005 = vmatpush1.msra.mxu0 %v129_v57  ;;  %v4275_v63 = vld [vmem:[%s7496_s1 + $0x40] ss:$8 sm:$0xf] }
  0xf2   :  { %v217_v20 = vmul.f32 %v198_v59, %v159_v40  ;;  %4261 = vmatmul.mubr.msk.f32.vlgmr.msra.gmra.mxu0 %vm828_vm8, %v5132_v54  ;;  %v218_v17 = vmul.f32 %v202_v61, %v158_v62  ;;  %v131_v7 = vmul.f32 %v112_v0, %v74_v9  ;;  %v132_v18 = vmul.f32 %v116_v58, %v73_v33  ;;  %v4274_v61 = vld [vmem:[%s7496_s1 + $0x7] ss:$8 sm:$0xf0] }
  0xf3   :  { %1950 = vmatprep.mubr.f32.mxu0 %v7509_v6  ;;  %v5484_v59 = vor.u32 %v4276_v37, %v4275_v63  ;;  %v5500_v62 = vor.u32 %v4274_v61, %v4273_v19 }
  0xf4   :  { %1073 = vmatprep.subr.mxu1 %v218_v17 }
  0xf5   :  { %1074 = vmatpush1.msra.mxu1 %v217_v20  ;;  %v1753_v16 = vrot.slane %v5484_v59, %v4860_v14  ;;  %v1757_v58 = vrot.slane %v5484_v59, %v4863_v15 }
  0xf6   :  { %1075 = vmatprep.subr.mxu1 %v132_v18  ;;  %v1669_v18 = vrot.slane %v5500_v62, %v4860_v14 }
  0xf7   :  { %1076 = vmatpush1.msra.mxu1 %v131_v7 }
  0xf8   :  { %4262 = vmatmul.mubr.msk.f32.vlgmr.msra.gmra.mxu1 %vm828_vm8, %v5132_v54 }
  0xf9   :  { %2021 = vmatprep.mubr.f32.mxu1 %v7509_v6 }
  0xfd   :  { %v826_v43 = vpop.permute.xlu0 %825 }
 0x181   :  { %v898_v1 = vpop.f32.mrf.mxu0 }
 0x182   :  { %v899_v4 = vadd.f32 %v898_v1, %v826_v43  ;;  %v4271_v1 = vld [vmem:[%s7496_s1 + $0x6] ss:$8 sm:$0xf] }
 0x183   :  { %v900_v54 = vpop.f32.mrf.mxu0 }
 0x184   :  { %v5309_v23 = vmax.f32 %v899_v4, 0.0  ;;  %v901_v25 = vadd.f32 %v900_v54, %v826_v43  ;;  %v4272_v4 = vld [vmem:[%s7496_s1 + $0x6] ss:$8 sm:$0xf0] }
 0x186   :  { %7544 = vst [vmem:[#allocation7_spill] sm:$0xff] %v5309_v23  ;;  %v969_v24 = vpop.f32.mrf.mxu1  ;;  %1722 = vrot.lane.b32.xlu0 %v5309_v23, %s4611_s29  ;;  %v5339_v26 = vmax.f32 %v901_v25, 0.0 }
 0x187   :  { %v970_v36 = vadd.f32 %v969_v24, %v826_v43 }
 0x188   :  { %7546 = vst [vmem:[#allocation9_spill] sm:$0xff] %v5339_v26  ;;  %v971_v28 = vpop.f32.mrf.mxu1 }
 0x189   :  { %v5313_v22 = vmax.f32 %v970_v36, 0.0  ;;  %v972_v39 = vadd.f32 %v971_v28, %v826_v43  ;;  %v4269_v28 = vld [vmem:[%s7496_s1 + $0x5] ss:$8 sm:$0xf] }
 0x18b   :  { %7545 = vst [vmem:[#allocation8_spill] sm:$0xff] %v5313_v22  ;;  %1642 = vrot.lane.b32.xlu0 %v5313_v22, %s4612_s15  ;;  %1726 = vrot.lane.b32.xlu1 %v5313_v22, %s4611_s29  ;;  %v5357_v29 = vmax.f32 %v972_v39, 0.0  ;;  %v4270_v39 = vld [vmem:[%s7496_s1 + $0x5] ss:$8 sm:$0xf0] }
 0x18d   :  { %7547 = vst [vmem:[#allocation10_spill] sm:$0xff] %v5357_v29 }
 0x18f   :  { %1554 = vrot.lane.b32.xlu0 %v5309_v23, %s4613_s20  ;;  %1638 = vrot.lane.b32.xlu1 %v5309_v23, %s4612_s15 }
 0x193   :  { %1474 = vrot.lane.b32.xlu0 %v5313_v22, %s4614_s21  ;;  %1558 = vrot.lane.b32.xlu1 %v5313_v22, %s4613_s20 }
 0x197   :  { %1378 = vrot.lane.b32.xlu0 %v5309_v23, %s4615_s22  ;;  %1470 = vrot.lane.b32.xlu1 %v5309_v23, %s4614_s21 }
 0x19b   :  { %1210 = vrot.lane.b32.xlu0 %v5309_v23, %s4617_s26  ;;  %1294 = vrot.lane.b32.xlu1 %v5309_v23, %s4616_s25 }
 0x19f   :  { %1382 = vrot.lane.b32.xlu0 %v5313_v22, %s4615_s22  ;;  %1126 = vrot.lane.b32.xlu1 %v5309_v23, %s4619_s27 }
 0x1a3   :  { %1298 = vrot.lane.b32.xlu0 %v5313_v22, %s4616_s25  ;;  %1724 = vrot.lane.b32.xlu1 %v5339_v26, %s4611_s29 }
 0x1a7   :  { %1214 = vrot.lane.b32.xlu0 %v5313_v22, %s4617_s26  ;;  %1640 = vrot.lane.b32.xlu1 %v5339_v26, %s4612_s15 }
 0x1ab   :  { %1130 = vrot.lane.b32.xlu0 %v5313_v22, %s4619_s27  ;;  %1472 = vrot.lane.b32.xlu1 %v5339_v26, %s4614_s21 }
 0x1af   :  { %1556 = vrot.lane.b32.xlu0 %v5339_v26, %s4613_s20  ;;  %1380 = vrot.lane.b32.xlu1 %v5339_v26, %s4615_s22 }
 0x1b2   :  { %v1040_v5 = vpop.f32.mrf.mxu0 }
 0x1b3   :  { %1728 = vrot.lane.b32.xlu0 %v5357_v29, %s4611_s29  ;;  %1560 = vrot.lane.b32.xlu1 %v5357_v29, %s4613_s20  ;;  %v1041_v60 = vadd.f32 %v1040_v5, %v826_v43 }
 0x1b4   :  { %v1042_v46 = vpop.f32.mrf.mxu0 }
 0x1b5   :  { %v5379_v31 = vmax.f32 %v1041_v60, 0.0  ;;  %v1043_v12 = vadd.f32 %v1042_v46, %v826_v43  ;;  %v4267_v46 = vld [vmem:[%s7496_s1 + $0x3] ss:$8 sm:$0xf] }
 0x1b7   :  { %1644 = vrot.lane.b32.xlu0 %v5357_v29, %s4612_s15  ;;  %1212 = vrot.lane.b32.xlu1 %v5339_v26, %s4617_s26  ;;  %7548 = vst [vmem:[#allocation11_spill] sm:$0xff] %v5379_v31  ;;  %v5405_v38 = vmax.f32 %v1043_v12, 0.0  ;;  %v4268_v12 = vld [vmem:[%s7496_s1 + $0x3] ss:$8 sm:$0xf0] }
 0x1b8   :  { %v1111_v8 = vpop.f32.mrf.mxu1  ;;  %v5550_v19 = vor.u32 %v4268_v12, %v4267_v46 }
 0x1b9   :  { %v1112_v45 = vadd.f32 %v1111_v8, %v826_v43  ;;  %7551 = vst [vmem:[#allocation14_spill] sm:$0xff] %v5405_v38  ;;  %v5534_v8 = vor.u32 %v4272_v4, %v4271_v1 }
 0x1ba   :  { %v1113_v10 = vpop.f32.mrf.mxu1 }
 0x1bb   :  { %1296 = vrot.lane.b32.xlu0 %v5339_v26, %s4616_s25  ;;  %1384 = vrot.lane.b32.xlu1 %v5357_v29, %s4615_s22  ;;  %v1114_v32 = vadd.f32 %v1113_v10, %v826_v43  ;;  %v5399_v34 = vmax.f32 %v1112_v45, 0.0  ;;  %v1673_v43 = vrot.slane %v5500_v62, %v4863_v15  ;;  %v1589_v63 = vrot.slane %v5534_v8, %v4863_v15 }
 0x1bd   :  { %v5393_v50 = vmax.f32 %v1114_v32, 0.0  ;;  %7550 = vst [vmem:[#allocation13_spill] sm:$0xff] %v5399_v34  ;;  %v5538_v32 = vor.u32 %v4270_v39, %v4269_v28 }
 0x1bf   :  { %1476 = vrot.lane.b32.xlu0 %v5357_v29, %s4614_s21  ;;  %1300 = vrot.lane.b32.xlu1 %v5357_v29, %s4616_s25  ;;  %7549 = vst [vmem:[#allocation12_spill] sm:$0xff] %v5393_v50 }
 0x1c3   :  { %1128 = vrot.lane.b32.xlu0 %v5339_v26, %s4619_s27  ;;  %1216 = vrot.lane.b32.xlu1 %v5357_v29, %s4617_s26 }
 0x1c7   :  { %1132 = vrot.lane.b32.xlu1 %v5357_v29, %s4619_s27  ;;  %1562 = vrot.lane.b32.xlu0 %v5379_v31, %s4613_s20 }
 0x1cb   :  { %1386 = vrot.lane.b32.xlu0 %v5379_v31, %s4615_s22  ;;  %1730 = vrot.lane.b32.xlu1 %v5379_v31, %s4611_s29 }
 0x1cf   :  { %1218 = vrot.lane.b32.xlu0 %v5379_v31, %s4617_s26  ;;  %1646 = vrot.lane.b32.xlu1 %v5379_v31, %s4612_s15 }
 0x1d3   :  { %1478 = vrot.lane.b32.xlu1 %v5379_v31, %s4614_s21  ;;  %1392 = vrot.lane.b32.xlu0 %v5393_v50, %s4615_s22 }
 0x1d7   :  { %1224 = vrot.lane.b32.xlu0 %v5393_v50, %s4617_s26  ;;  %1734 = vrot.lane.b32.xlu1 %v5399_v34, %s4611_s29 }
 0x1db   :  { %1732 = vrot.lane.b32.xlu0 %v5405_v38, %s4611_s29  ;;  %1650 = vrot.lane.b32.xlu1 %v5399_v34, %s4612_s15 }
 0x1df   :  { %1648 = vrot.lane.b32.xlu0 %v5405_v38, %s4612_s15  ;;  %1566 = vrot.lane.b32.xlu1 %v5399_v34, %s4613_s20 }
 0x1e3   :  { %1564 = vrot.lane.b32.xlu0 %v5405_v38, %s4613_s20  ;;  %1482 = vrot.lane.b32.xlu1 %v5399_v34, %s4614_s21 }
 0x1e7   :  { %1480 = vrot.lane.b32.xlu0 %v5405_v38, %s4614_s21  ;;  %1302 = vrot.lane.b32.xlu1 %v5379_v31, %s4616_s25 }
 0x1eb   :  { %1736 = vrot.lane.b32.xlu0 %v5393_v50, %s4611_s29  ;;  %1308 = vrot.lane.b32.xlu1 %v5393_v50, %s4616_s25 }
 0x1ef   :  { %1568 = vrot.lane.b32.xlu0 %v5393_v50, %s4613_s20  ;;  %1140 = vrot.lane.b32.xlu1 %v5393_v50, %s4619_s27 }
 0x1f3   :  { %1304 = vrot.lane.b32.xlu0 %v5405_v38, %s4616_s25  ;;  %1652 = vrot.lane.b32.xlu1 %v5393_v50, %s4612_s15 }
 0x1f7   :  { %1134 = vrot.lane.b32.xlu0 %v5379_v31, %s4619_s27  ;;  %1388 = vrot.lane.b32.xlu1 %v5405_v38, %s4615_s22 }
 0x1f8   :  { %v5439_v47 = vpop.permute.xlu0 %1722 }
 0x1fb   :  { %1390 = vrot.lane.b32.xlu0 %v5399_v34, %s4615_s22  ;;  %1484 = vrot.lane.b32.xlu1 %v5393_v50, %s4614_s21 }
 0x1fd   :  { %v5445_v48 = vpop.permute.xlu0 %1642  ;;  %v5447_v11 = vpop.permute.xlu1 %1726 }
 0x1ff   :  { %1222 = vrot.lane.b32.xlu0 %v5399_v34, %s4617_s26  ;;  %1220 = vrot.lane.b32.xlu1 %v5405_v38, %s4617_s26 }
 0x201   :  { %v5456_v51 = vpop.permute.xlu0 %1554  ;;  %v5458_v52 = vpop.permute.xlu1 %1638 }
 0x203   :  { %1880 = vperm.xlu0 %4609, %v1125_v49   ;;  %1136 = vrot.lane.b32.xlu1 %v5405_v38, %s4619_s27  ;;  %v1585_v49 = vrot.slane %v5534_v8, %v4860_v14 }
 0x205   :  { %v5462_v41 = vpop.permute.xlu0 %1474  ;;  %v5464_v53 = vpop.permute.xlu1 %1558 }
 0x207   :  { %1306 = vrot.lane.b32.xlu1 %v5399_v34, %s4616_s25 }
 0x209   :  { %v5468_v55 = vpop.permute.xlu0 %1378  ;;  %v5470_v56 = vpop.permute.xlu1 %1470 }
 0x20b   :  { %1138 = vrot.lane.b32.xlu1 %v5399_v34, %s4619_s27  ;;  %v1509_v34 = vrot.slane %v5538_v32, %v4899_v30 }
 0x20d   :  { %v5480_v42 = vpop.permute.xlu0 %1210  ;;  %v5482_v57 = vpop.permute.xlu1 %1294 }
 0x211   :  { %v5492_v0 = vpop.permute.xlu0 %1382  ;;  %v5494_v21 = vpop.permute.xlu1 %1126 }
 0x215   :  { %v5502_v40 = vpop.permute.xlu0 %1298  ;;  %v1725_v33 = vpop.permute.xlu1 %1724 }
 0x216   :  { %v1743_v9 = vsel %vm681_vm0, %v1725_v33, %v5447_v11  ;;  %v1744_v20 = vsel %vm681_vm0, %v5439_v47, %v1725_v33 }
 0x217   :  { %v1790_v17 = vmul.f32 %v1753_v16, %v1744_v20  ;;  %v1791_v7 = vmul.f32 %v1757_v58, %v1743_v9  ;;  %v1505_v16 = vrot.slane %v5538_v32, %v4863_v15  ;;  %v1501_v58 = vrot.slane %v5538_v32, %v4860_v14 }
 0x219   :  { %v5520_v24 = vpop.permute.xlu0 %1214  ;;  %1900 = vmatprep.subr.mxu0 %v1791_v7  ;;  %v1641_v36 = vpop.permute.xlu1 %1640 }
 0x21a   :  { %v1659_v54 = vsel %vm595_vm1, %v1641_v36, %v5445_v48  ;;  %v1660_v25 = vsel %vm595_vm1, %v5458_v52, %v1641_v36  ;;  %1901 = vmatpush1.msra.mxu0 %v1790_v17  ;;  %v1413_v36 = vrot.slane %v5550_v19, %v4863_v15 }
 0x21b   :  { %v1706_v5 = vmul.f32 %v1669_v18, %v1660_v25  ;;  %v1707_v60 = vmul.f32 %v1673_v43, %v1659_v54 }
 0x21d   :  { %v5536_v10 = vpop.permute.xlu0 %1130  ;;  %1902 = vmatprep.subr.mxu0 %v1707_v60  ;;  %v1473_v45 = vpop.permute.xlu1 %1472 }
 0x21e   :  { %1903 = vmatpush1.msra.mxu0 %v1706_v5  ;;  %v1491_v33 = vsel %vm423_vm3, %v1473_v45, %v5462_v41  ;;  %v1492_v17 = vsel %vm423_vm3, %v5470_v56, %v1473_v45 }
 0x21f   :  { %v1539_v4 = vmul.f32 %v1505_v16, %v1491_v33  ;;  %v1538_v54 = vmul.f32 %v1501_v58, %v1492_v17  ;;  %v1765_v58 = vrot.slane %v5484_v59, %v4890_v27  ;;  %v1761_v33 = vrot.slane %v5484_v59, %v4899_v30  ;;  %v4266_v17 = vld [vmem:[%s7496_s1 + $0x2] ss:$8 sm:$0xf0] }
 0x221   :  { %v1557_v37 = vpop.permute.xlu0 %1556  ;;  %v5552_v61 = vpop.permute.xlu1 %1380 }
 0x222   :  { %v1575_v9 = vsel %vm509_vm2, %v1557_v37, %v5464_v53  ;;  %v1576_v20 = vsel %vm509_vm2, %v5456_v51, %v1557_v37  ;;  %v1400_v25 = vsel %vm329_vm4, %v5468_v55, %v5552_v61 }
 0x223   :  { %v1622_v7 = vmul.f32 %v1585_v49, %v1576_v20  ;;  %v1623_v18 = vmul.f32 %v1589_v63, %v1575_v9  ;;  %v1447_v5 = vmul.f32 %v1413_v36, %v1400_v25  ;;  %v4265_v20 = vld [vmem:[%s7496_s1 + $0x2] ss:$8 sm:$0xf]  ;;  %v1677_v25 = vrot.slane %v5500_v62, %v4899_v30 }
 0x225   :  { %v1729_v43 = vpop.permute.xlu0 %1728  ;;  %1904 = vmatprep.subr.mxu0 %v1623_v18  ;;  %v1561_v1 = vpop.permute.xlu1 %1560 }
 0x226   :  { %1905 = vmatpush1.msra.mxu0 %v1622_v7  ;;  %v1742_v9 = vsel %vm681_vm0, %v5447_v11, %v1729_v43  ;;  %v1681_v11 = vrot.slane %v5500_v62, %v4890_v27 }
 0x227   :  { %1906 = vmatprep.subr.mxu0 %v1539_v4 }
 0x228   :  { %1907 = vmatpush1.msra.mxu0 %v1538_v54  ;;  %v1792_v54 = vmul.f32 %v1761_v33, %v1742_v9 }
 0x229   :  { %v1645_v28 = vpop.permute.xlu0 %1644  ;;  %1908 = vmatprep.subr.mxu0 %v5339_v26  ;;  %v5577_v39 = vpop.permute.xlu1 %1212  ;;  %v1597_v26 = vrot.slane %v5534_v8, %v4890_v27 }
 0x22a   :  { %1909 = vmatpush1.msra.mxu0 %v5309_v23  ;;  %v1658_v6 = vsel %vm595_vm1, %v5445_v48, %v1645_v28  ;;  %v1574_v48 = vsel %vm509_vm2, %v5464_v53, %v1561_v1  ;;  %v4264_v53 = vld [vmem:[%s7496_s1 + $0x1] ss:$8 sm:$0xf0] }
 0x22b   :  { %1910 = vmatprep.subr.mxu0 %v1447_v5  ;;  %v5618_v5 = vor.u32 %v4266_v17, %v4265_v20  ;;  %v1409_v20 = vrot.slane %v5550_v19, %v4860_v14 }
 0x22d   :  { %v5580_v60 = vpop.permute.xlu0 %1296  ;;  %v5582_v45 = vpop.permute.xlu1 %1384  ;;  %v1329_v50 = vrot.slane %v5618_v5, %v4863_v15 }
 0x231   :  { %v1477_v46 = vpop.permute.xlu0 %1476  ;;  %v5584_v12 = vpop.permute.xlu1 %1300 }
 0x235   :  { %v5586_v49 = vpop.permute.xlu0 %1128  ;;  %v5588_v63 = vpop.permute.xlu1 %1216 }
 0x236   :  { %7552 = vst [vmem:[#allocation15_spill] sm:$0xff] %v5588_v63 }
 0x239   :  { %v5590_v37 = vpop.permute.xlu0 %1562  ;;  %v5592_v16 = vpop.permute.xlu1 %1132 }
 0x23a   :  { %7553 = vst [vmem:[#allocation16_spill] sm:$0xff] %v5592_v16  ;;  %v1573_v33 = vsel %vm509_vm2, %v1561_v1, %v5590_v37  ;;  %v1316_v1 = vsel %vm243_vm5, %v5482_v57, %v5580_v60 }
 0x23d   :  { %v5607_v7 = vpop.permute.xlu0 %1386  ;;  %v5609_v18 = vpop.permute.xlu1 %1730 }
 0x23e   :  { %v1741_v4 = vsel %vm681_vm0, %v1729_v43, %v5609_v18 }
 0x23f   :  { %v1793_v36 = vmul.f32 %v1765_v58, %v1741_v4  ;;  %v1593_v58 = vrot.slane %v5534_v8, %v4899_v30  ;;  %v1513_v4 = vrot.slane %v5538_v32, %v4890_v27 }
 0x241   :  { %v5625_v23 = vpop.permute.xlu0 %1218  ;;  %1971 = vmatprep.subr.mxu1 %v1793_v36  ;;  %v5627_v43 = vpop.permute.xlu1 %1646  ;;  %v1708_v36 = vmul.f32 %v1677_v25, %v1658_v6  ;;  %v1490_v6 = vsel %vm423_vm3, %v5462_v41, %v1477_v46  ;;  %v1417_v41 = vrot.slane %v5550_v19, %v4899_v30 }
 0x242   :  { %7554 = vst [vmem:[#allocation17_spill] sm:$0xff] %v5625_v23  ;;  %v1657_v9 = vsel %vm595_vm1, %v1645_v28, %v5627_v43  ;;  %1972 = vmatpush1.msra.mxu1 %v1792_v54  ;;  %v4263_v28 = vld [vmem:[%s7496_s1 + $0x1] ss:$8 sm:$0xf] }
 0x243   :  { %v1709_v17 = vmul.f32 %v1681_v11, %v1657_v9  ;;  %v1625_v11 = vmul.f32 %v1597_v26, %v1573_v33  ;;  %v1624_v9 = vmul.f32 %v1593_v58, %v1574_v48  ;;  %v1150_v26 = vld [vmem:[%s7496_s1] ss:$8 sm:$0xf] }
 0x244   :  { %v1151_v58 = vld [vmem:[%s7496_s1] ss:$8 sm:$0xf0] }
 0x245   :  { %v5661_v54 = vpop.permute.xlu0 %1392  ;;  %1973 = vmatprep.subr.mxu1 %v1709_v17  ;;  %v5663_v25 = vpop.permute.xlu1 %1478  ;;  %v5682_v17 = vor.u32 %v4264_v53, %v4263_v28  ;;  %v1333_v28 = vrot.slane %v5618_v5, %v4899_v30 }
 0x246   :  { %7555 = vst [vmem:[#allocation18_spill] sm:$0xff] %v5661_v54  ;;  %v1401_v23 = vsel %vm329_vm4, %v5661_v54, %v5468_v55  ;;  %v1489_v31 = vsel %vm423_vm3, %v1477_v46, %v5663_v25  ;;  %1974 = vmatpush1.msra.mxu1 %v1708_v36  ;;  %v1421_v55 = vrot.slane %v5550_v19, %v4890_v27 }
 0x247   :  { %v1446_v33 = vmul.f32 %v1409_v20, %v1401_v23  ;;  %v1541_v48 = vmul.f32 %v1513_v4, %v1489_v31  ;;  %1975 = vmatprep.subr.mxu1 %v1625_v11  ;;  %7556 = vst [vmem:[#allocation19_spill] sm:$0xff] %v5682_v17  ;;  %v1398_v46 = vsel %vm329_vm4, %v5492_v0, %v5582_v45 }
 0x248   :  { %v1540_v36 = vmul.f32 %v1509_v34, %v1490_v6  ;;  %1976 = vmatpush1.msra.mxu1 %v1624_v9  ;;  %v1363_v54 = vmul.f32 %v1329_v50, %v1316_v1  ;;  %v1399_v23 = vsel %vm329_vm4, %v5552_v61, %v5492_v0  ;;  %v1337_v4 = vrot.slane %v5618_v5, %v4890_v27 }
 0x249   :  { %v5692_v31 = vpop.permute.xlu0 %1224  ;;  %1911 = vmatpush1.msra.mxu0 %v1446_v33  ;;  %1977 = vmatprep.subr.mxu1 %v1541_v48  ;;  %v5694_v20 = vpop.permute.xlu1 %1734  ;;  %v1314_v50 = vsel %vm243_vm5, %v5502_v40, %v5584_v12  ;;  %v5704_v34 = vor.u32 %v1151_v58, %v1150_v26  ;;  %v1315_v0 = vsel %vm243_vm5, %v5580_v60, %v5502_v40 }
 0x24a   :  { %7557 = vst [vmem:[#allocation20_spill] sm:$0xff] %v5692_v31  ;;  %1912 = vmatprep.subr.mxu0 %v1363_v54  ;;  %1978 = vmatpush1.msra.mxu1 %v1540_v36  ;;  %v1449_v61 = vmul.f32 %v1421_v55, %v1398_v46  ;;  %v1253_v53 = vrot.slane %v5682_v17, %v4890_v27 }
 0x24b   :  { %1979 = vmatprep.subr.mxu1 %v5357_v29  ;;  %v1448_v1 = vmul.f32 %v1417_v41, %v1399_v23  ;;  %v1249_v6 = vrot.slane %v5682_v17, %v4899_v30  ;;  %v1230_v11 = vsel %vm157_vm6, %v5520_v24, %v5588_v63  ;;  %v1231_v40 = vsel %vm157_vm6, %v5577_v39, %v5520_v24 }
 0x24c   :  { %1980 = vmatpush1.msra.mxu1 %v5313_v22  ;;  %v1365_v9 = vmul.f32 %v1337_v4, %v1314_v50  ;;  %v1169_v41 = vrot.slane %v5704_v34, %v4890_v27  ;;  %v1364_v26 = vmul.f32 %v1333_v28, %v1315_v0  ;;  %v1165_v58 = vrot.slane %v5704_v34, %v4899_v30  ;;  %v5743_v28 = vld [vmem:[%s7500_s6] sm:$0xff] }
 0x24d   :  { %v1733_v60 = vpop.permute.xlu0 %1732  ;;  %1981 = vmatprep.subr.mxu1 %v1449_v61  ;;  %v5724_v54 = vpop.permute.xlu1 %1650  ;;  %v1146_v33 = vsel %vm72_vm7, %v5536_v10, %v5592_v16  ;;  %v1147_v24 = vsel %vm72_vm7, %v5586_v49, %v5536_v10  ;;  %v1281_v48 = vmul.f32 %v1253_v53, %v1230_v11  ;;  %v1280_v55 = vmul.f32 %v1249_v6, %v1231_v40 }
 0x24e   :  { %1982 = vmatpush1.msra.mxu1 %v1448_v1  ;;  %v1197_v23 = vmul.f32 %v1169_v41, %v1146_v33  ;;  %v1196_v4 = vmul.f32 %v1165_v58, %v1147_v24  ;;  %v7558_v0 = vmov 0.0   ;;  %v1245_v1 = vrot.slane %v5682_v17, %v4863_v15 }
 0x24f   :  { %1983 = vmatprep.subr.mxu1 %v1365_v9  ;;  %v1161_v6 = vrot.slane %v5704_v34, %v4863_v15  ;;  %v1241_v11 = vrot.slane %v5682_v17, %v4860_v14  ;;  %v1777_v40 = vrot.slane %v5484_v59, %v5151_v3  ;;  %v1781_v9 = vrot.slane %v5484_v59, %v5154_v2 }
 0x250   :  { %1984 = vmatpush1.msra.mxu1 %v1364_v26  ;;  %v1325_v41 = vrot.slane %v5618_v5, %v4860_v14  ;;  %v1769_v26 = vrot.slane %v5484_v59, %v5110_v35  ;;  %v1773_v58 = vrot.slane %v5484_v59, %v5119_v44  ;;  %v1685_v33 = vrot.slane %v5500_v62, %v5110_v35 }
 0x251   :  { %v1649_v46 = vpop.permute.xlu0 %1648  ;;  %1985 = vmatprep.subr.mxu1 %v1281_v48  ;;  %v5738_v36 = vpop.permute.xlu1 %1566  ;;  %v1689_v24 = vrot.slane %v5500_v62, %v5119_v44  ;;  %v1232_v48 = vsel %vm157_vm6, %v5480_v42, %v5577_v39  ;;  %v1605_v59 = vrot.slane %v5534_v8, %v5119_v44  ;;  %v1157_v30 = vrot.slane %v5704_v34, %v4860_v14 }
 0x252   :  { %1986 = vmatpush1.msra.mxu1 %v1280_v55  ;;  %v1233_v55 = vsel %vm157_vm6, %v5692_v31, %v5480_v42  ;;  %v1148_v27 = vsel %vm72_vm7, %v5494_v21, %v5586_v49  ;;  %v1279_v17 = vmul.f32 %v1245_v1, %v1232_v48  ;;  %v1740_v14 = vsel %vm681_vm0, %v5609_v18, %v1733_v60 }
 0x253   :  { %1987 = vmatprep.subr.mxu1 %v1197_v23  ;;  %v1601_v23 = vrot.slane %v5534_v8, %v5110_v35  ;;  %v1278_v63 = vmul.f32 %v1241_v11, %v1233_v55  ;;  %v1655_v1 = vsel %vm595_vm1, %v1649_v46, %v5724_v54  ;;  %v1195_v18 = vmul.f32 %v1161_v6, %v1148_v27 }
 0x254   :  { %1988 = vmatpush1.msra.mxu1 %v1196_v4 }
 0x255   :  { %v1565_v50 = vpop.permute.xlu0 %1564  ;;  %4278 = vmatmul.mubr.msk.f32.vlgmr.msra.gmra.mxu1 %vm828_vm8, %v5743_v28  ;;  %v5747_v10 = vpop.permute.xlu1 %1482 }
 0x256   :  { %2163 = vmatprep.mubr.f32.mxu1 %v7558_v0  ;;  %v1571_v27 = vsel %vm509_vm2, %v1565_v50, %v5738_v36 }
 0x259   :  { %v5750_v61 = vpop.permute.xlu0 %1480  ;;  %v5752_v53 = vpop.permute.xlu1 %1302 }
 0x25d   :  { %v1737_v4 = vpop.permute.xlu0 %1736  ;;  %v5786_v29 = vpop.permute.xlu1 %1308 }
 0x25e   :  { %v1738_v22 = vsel %vm681_vm0, %v5694_v20, %v1737_v4  ;;  %v1745_v39 = vsel %vm681_vm0, %v1737_v4, %v5439_v47  ;;  %v1317_v42 = vsel %vm243_vm5, %v5786_v29, %v5482_v57  ;;  %v1517_v47 = vrot.slane %v5538_v32, %v5110_v35 }
 0x25f   :  { %v1796_v15 = vmul.f32 %v1777_v40, %v1738_v22  ;;  %v1797_v31 = vmul.f32 %v1781_v9, %v1745_v39  ;;  %v1362_v16 = vmul.f32 %v1325_v41, %v1317_v42  ;;  %v1521_v4 = vrot.slane %v5538_v32, %v5119_v44 }
 0x260   :  { %v1739_v57 = vsel %vm681_vm0, %v1733_v60, %v5694_v20  ;;  %v1656_v22 = vsel %vm595_vm1, %v5627_v43, %v1649_v46  ;;  %v1609_v43 = vrot.slane %v5534_v8, %v5151_v3  ;;  %v1794_v46 = vmul.f32 %v1769_v26, %v1740_v14 }
 0x261   :  { %v1569_v49 = vpop.permute.xlu0 %1568  ;;  %1913 = vmatpush1.msra.mxu0 %v1362_v16  ;;  %2113 = vmatprep.subr.mxu1 %v1797_v31  ;;  %v5817_v11 = vpop.permute.xlu1 %1140  ;;  %v1693_v16 = vrot.slane %v5500_v62, %v5151_v3  ;;  %v1697_v31 = vrot.slane %v5500_v62, %v5154_v2  ;;  %v1795_v40 = vmul.f32 %v1773_v58, %v1739_v57 }
 0x262   :  { %v1149_v20 = vsel %vm72_vm7, %v5817_v11, %v5494_v21  ;;  %1914 = vmatprep.subr.mxu0 %v1279_v17  ;;  %2114 = vmatpush1.msra.mxu1 %v1796_v15  ;;  %v1710_v9 = vmul.f32 %v1685_v33, %v1656_v22  ;;  %v1613_v21 = vrot.slane %v5534_v8, %v5154_v2 }
 0x263   :  { %v1194_v60 = vmul.f32 %v1157_v30, %v1149_v20  ;;  %1915 = vmatpush1.msra.mxu0 %v1278_v63  ;;  %v1711_v15 = vmul.f32 %v1689_v24, %v1655_v1  ;;  %v1572_v30 = vsel %vm509_vm2, %v5590_v37, %v1565_v50  ;;  %v1487_v14 = vsel %vm423_vm3, %v5750_v61, %v5747_v10 }
 0x264   :  { %1916 = vmatprep.subr.mxu0 %v1195_v18  ;;  %v1577_v8 = vsel %vm509_vm2, %v1569_v49, %v5456_v51  ;;  %v1570_v50 = vsel %vm509_vm2, %v5738_v36, %v1569_v49  ;;  %v1425_v51 = vrot.slane %v5550_v19, %v5110_v35  ;;  %v1626_v26 = vmul.f32 %v1601_v23, %v1572_v30 }
 0x265   :  { %v5844_v62 = vpop.permute.xlu0 %1304  ;;  %1917 = vmatpush1.msra.mxu0 %v1194_v60  ;;  %v1653_v63 = vpop.permute.xlu1 %1652  ;;  %v1629_v58 = vmul.f32 %v1613_v21, %v1577_v8  ;;  %v1429_v36 = vrot.slane %v5550_v19, %v5119_v44  ;;  %v1543_v48 = vmul.f32 %v1521_v4, %v1487_v14  ;;  %v1628_v55 = vmul.f32 %v1609_v43, %v1570_v50  ;;  %v7559_v60 = vld [vmem:[#allocation11_spill] sm:$0xff]  ;;  %v7564_v8 = vld [vmem:[#allocation12_spill] sm:$0xff] }
 0x266   :  { %v1654_v17 = vsel %vm595_vm1, %v5724_v54, %v1653_v63  ;;  %v1661_v37 = vsel %vm595_vm1, %v1653_v63, %v5458_v52  ;;  %4277 = vmatmul.mubr.msk.f32.vlgmr.msra.gmra.mxu0 %vm828_vm8, %v5743_v28  ;;  %2042 = vmatprep.subr.mxu0 %v1795_v40  ;;  %v1627_v54 = vmul.f32 %v1605_v59, %v1571_v27  ;;  %v7562_v40 = vld [vmem:[#allocation17_spill] sm:$0xff] }
 0x267   :  { %v1712_v6 = vmul.f32 %v1693_v16, %v1654_v17  ;;  %v1713_v41 = vmul.f32 %v1697_v31, %v1661_v37  ;;  %2043 = vmatpush1.msra.mxu0 %v1794_v46  ;;  %2092 = vmatprep.mubr.f32.mxu0 %v7558_v0  ;;  %v1488_v52 = vsel %vm423_vm3, %v5663_v25, %v5750_v61  ;;  %v7560_v16 = vld [vmem:[#allocation19_spill] sm:$0xff]  ;;  %v7561_v46 = vld [vmem:[#allocation18_spill] sm:$0xff] }
 0x268   :  { %2044 = vmatprep.subr.mxu0 %v1711_v15  ;;  %v1525_v59 = vrot.slane %v5538_v32, %v5151_v3  ;;  %v1542_v39 = vmul.f32 %v1517_v47, %v1488_v52  ;;  %v1529_v61 = vrot.slane %v5538_v32, %v5154_v2  ;;  %v1397_v23 = vsel %vm329_vm4, %v5582_v45, %v5607_v7 }
 0x269   :  { %v5867_v33 = vpop.permute.xlu0 %1134  ;;  %2045 = vmatpush1.msra.mxu0 %v1710_v9  ;;  %2115 = vmatprep.subr.mxu1 %v1713_v41  ;;  %v1389_v24 = vpop.permute.xlu1 %1388  ;;  %v1345_v42 = vrot.slane %v5618_v5, %v5119_v44  ;;  %v1341_v47 = vrot.slane %v5618_v5, %v5110_v35  ;;  %v1312_v4 = vsel %vm243_vm5, %v5752_v53, %v5844_v62  ;;  %v7563_v9 = vld [vmem:[#allocation15_spill] sm:$0xff]  ;;  %v7565_v41 = vld [vmem:[#allocation13_spill] sm:$0xff] }
 0x26a   :  { %2046 = vmatprep.subr.mxu0 %v1627_v54  ;;  %2116 = vmatpush1.msra.mxu1 %v1712_v6  ;;  %v1396_v25 = vsel %vm329_vm4, %v5607_v7, %v1389_v24  ;;  %v1437_v32 = vrot.slane %v5550_v19, %v5154_v2  ;;  %v1313_v45 = vsel %vm243_vm5, %v5584_v12, %v5752_v53 }
 0x26b   :  { %2047 = vmatpush1.msra.mxu0 %v1626_v26  ;;  %2117 = vmatprep.subr.mxu1 %v1629_v58  ;;  %v1451_v7 = vmul.f32 %v1429_v36, %v1396_v25  ;;  %v1450_v20 = vmul.f32 %v1425_v51, %v1397_v23  ;;  %v1261_v31 = vrot.slane %v7560_v16, %v5119_v44  ;;  %v7566_v51 = vld [vmem:[#allocation16_spill] sm:$0xff] }
 0x26c   :  { %2048 = vmatprep.subr.mxu0 %v1543_v48  ;;  %2118 = vmatpush1.msra.mxu1 %v1628_v55  ;;  %v1257_v12 = vrot.slane %v7560_v16, %v5110_v35  ;;  %v1367_v53 = vmul.f32 %v1345_v42, %v1312_v4  ;;  %v1229_v21 = vsel %vm157_vm6, %v7563_v9, %v7562_v40 }
 0x26d   :  { %v1391_v57 = vpop.permute.xlu0 %1390  ;;  %2049 = vmatpush1.msra.mxu0 %v1542_v39  ;;  %v1485_v22 = vpop.permute.xlu1 %1484  ;;  %v1366_v15 = vmul.f32 %v1341_v47, %v1313_v45  ;;  %v1177_v17 = vrot.slane %v5704_v34, %v5119_v44  ;;  %v1173_v50 = vrot.slane %v5704_v34, %v5110_v35  ;;  %v1145_v54 = vsel %vm72_vm7, %v7566_v51, %v5867_v33 }
 0x26e   :  { %v1486_v49 = vsel %vm423_vm3, %v5747_v10, %v1485_v22  ;;  %v1493_v1 = vsel %vm423_vm3, %v1485_v22, %v5470_v56  ;;  %2050 = vmatprep.subr.mxu0 %v5405_v38  ;;  %v1433_v10 = vrot.slane %v5550_v19, %v5151_v3  ;;  %v1394_v56 = vsel %vm329_vm4, %v1391_v57, %v7561_v46 }
 0x26f   :  { %v1544_v18 = vmul.f32 %v1525_v59, %v1486_v49  ;;  %v1545_v43 = vmul.f32 %v1529_v61, %v1493_v1  ;;  %2051 = vmatpush1.msra.mxu0 %v7559_v60  ;;  %v1395_v27 = vsel %vm329_vm4, %v1389_v24, %v1391_v57  ;;  %v1453_v14 = vmul.f32 %v1437_v32, %v1394_v56 }
 0x270   :  { %2052 = vmatprep.subr.mxu0 %v1451_v7  ;;  %v1282_v37 = vmul.f32 %v1257_v12, %v1229_v21  ;;  %v1452_v6 = vmul.f32 %v1433_v10, %v1395_v27  ;;  %v1349_v24 = vrot.slane %v5618_v5, %v5151_v3  ;;  %v1353_v48 = vrot.slane %v5618_v5, %v5154_v2 }
 0x271   :  { %2053 = vmatpush1.msra.mxu0 %v1450_v20  ;;  %2119 = vmatprep.subr.mxu1 %v1545_v43  ;;  %v1221_v30 = vpop.permute.xlu1 %1220  ;;  %v1223_v58 = vpop.permute.xlu0 %1222  ;;  %v1198_v55 = vmul.f32 %v1173_v50, %v1145_v54  ;;  %v1269_v59 = vrot.slane %v7560_v16, %v5154_v2  ;;  %v1265_v39 = vrot.slane %v7560_v16, %v5151_v3 }
 0x272   :  { %v1228_v19 = vsel %vm157_vm6, %v7562_v40, %v1221_v30  ;;  %2054 = vmatprep.subr.mxu0 %v1367_v53  ;;  %2120 = vmatpush1.msra.mxu1 %v1544_v18  ;;  %v1181_v42 = vrot.slane %v5704_v34, %v5151_v3  ;;  %v1227_v47 = vsel %vm157_vm6, %v1221_v30, %v1223_v58 }
 0x273   :  { %v1283_v63 = vmul.f32 %v1261_v31, %v1228_v19  ;;  %2055 = vmatpush1.msra.mxu0 %v1366_v15  ;;  %2121 = vmatprep.subr.mxu1 %v7564_v8  ;;  %v1185_v57 = vrot.slane %v5704_v34, %v5154_v2  ;;  %v1284_v22 = vmul.f32 %v1265_v39, %v1227_v47 }
 0x274   :  { %2122 = vmatpush1.msra.mxu1 %v7565_v41 }
 0x275   :  { %2056 = vmatprep.subr.mxu0 %v1283_v63  ;;  %2123 = vmatprep.subr.mxu1 %v1453_v14  ;;  %v1137_v52 = vpop.permute.xlu1 %1136 }
 0x276   :  { %v1144_v26 = vsel %vm72_vm7, %v5867_v33, %v1137_v52  ;;  %2057 = vmatpush1.msra.mxu0 %v1282_v37  ;;  %2124 = vmatpush1.msra.mxu1 %v1452_v6  ;;  %v7567_v33 = vld [vmem:[#allocation20_spill] sm:$0xff] }
 0x277   :  { %v1199_v36 = vmul.f32 %v1177_v17, %v1144_v26  ;;  %v1226_v61 = vsel %vm157_vm6, %v1223_v58, %v7567_v33 }
 0x279   :  { %2058 = vmatprep.subr.mxu0 %v1199_v36  ;;  %v1307_v25 = vpop.permute.xlu1 %1306  ;;  %v4223_v36 = vld [vmem:[%s7501_s12] sm:$0xff] }
 0x27a   :  { %v1310_v23 = vsel %vm243_vm5, %v1307_v25, %v5786_v29  ;;  %v1311_v5 = vsel %vm243_vm5, %v5844_v62, %v1307_v25  ;;  %2059 = vmatpush1.msra.mxu0 %v1198_v55  ;;  %v1285_v29 = vmul.f32 %v1269_v59, %v1226_v61  ;;  %v4224_v59 = vld [vmem:[%s7501_s12 + $0x8] sm:$0x3] }
 0x27b   :  { %v1368_v4 = vmul.f32 %v1349_v24, %v1311_v5  ;;  %v1369_v32 = vmul.f32 %v1353_v48, %v1310_v23  ;;  %4279 = vmatmul.mubr.msk.f32.vlgmr.msra.gmra.mxu0 %vm828_vm8, %v5743_v28  ;;  %v2179_v24 = vld [vmem:[%s7502_s9] sm:$0xff] }
 0x27c   :  { %3004 = vmatprep.mubr.f32.mxu0 %v7558_v0  ;;  %v4293_v23 = vld [vmem:[%s7496_s1 + $0x40] ss:$8 sm:$0xf] }
 0x27d   :  { %2125 = vmatprep.subr.mxu1 %v1369_v32  ;;  %v1139_v62 = vpop.permute.xlu1 %1138  ;;  %v4294_v5 = vld [vmem:[%s7496_s1 + $0x40] ss:$8 sm:$0xf0]  ;;  %v4292_v32 = vld [vmem:[%s7496_s1 + $0x7] ss:$8 sm:$0xf0] }
 0x27e   :  { %v1142_v45 = vsel %vm72_vm7, %v1139_v62, %v5817_v11  ;;  %v1143_v7 = vsel %vm72_vm7, %v1137_v52, %v1139_v62  ;;  %2126 = vmatpush1.msra.mxu1 %v1368_v4  ;;  %v5969_v34 = vpop.permute.xlu0 %1880  ;;  %v4291_v4 = vld [vmem:[%s7496_s1 + $0x7] ss:$8 sm:$0xf]  ;;  %v4290_v62 = vld [vmem:[%s7496_s1 + $0x6] ss:$8 sm:$0xf0] }
 0x27f   :  { %v1200_v49 = vmul.f32 %v1181_v42, %v1143_v7  ;;  %v1201_v1 = vmul.f32 %v1185_v57, %v1142_v45  ;;  %2127 = vmatprep.subr.mxu1 %v1285_v29  ;;  %v6164_v57 = vor.u32 %v4294_v5, %v4293_v23  ;;  %v4289_v29 = vld [vmem:[%s7496_s1 + $0x6] ss:$8 sm:$0xf]  ;;  %v6176_v7 = vor.u32 %v4292_v32, %v4291_v4 }
 0x280   :  { %2128 = vmatpush1.msra.mxu1 %v1284_v22 }
 0x281   :  { %2129 = vmatprep.subr.mxu1 %v1201_v1  ;;  %v4288_v1 = vld [vmem:[%s7496_s1 + $0x5] ss:$8 sm:$0xf0] }
 0x282   :  { %2130 = vmatpush1.msra.mxu1 %v1200_v49  ;;  %v4287_v49 = vld [vmem:[%s7496_s1 + $0x5] ss:$8 sm:$0xf] }
 0x283   :  { %4280 = vmatmul.mubr.msk.f32.vlgmr.msra.gmra.mxu1 %vm828_vm8, %v5743_v28 }
 0x284   :  { %3075 = vmatprep.mubr.f32.mxu1 %v7558_v0 }
 0x315   :  { %v2023_v31 = vpop.f32.mrf.mxu1 }
 0x316   :  { %v2024_v12 = vadd.f32 %v2023_v31, %v5969_v34 }
 0x317   :  { %v2025_v10 = vpop.f32.mrf.mxu1 }
 0x318   :  { %v6010_v53 = vmax.f32 %v2024_v12, 0.0  ;;  %v2026_v46 = vadd.f32 %v2025_v10, %v5969_v34 }
 0x31a   :  { %v6029_v56 = vmax.f32 %v2026_v46, 0.0 }
 0x326   :  { %v1952_v20 = vpop.f32.mrf.mxu0 }
 0x327   :  { %v1953_v11 = vadd.f32 %v1952_v20, %v5969_v34 }
 0x328   :  { %v1954_v28 = vpop.f32.mrf.mxu0 }
 0x329   :  { %v5972_v18 = vmax.f32 %v1953_v11, 0.0  ;;  %v1955_v43 = vadd.f32 %v1954_v28, %v5969_v34  ;;  %v7572_v11 = vld [vmem:[#allocation3_spill] sm:$0xff] }
 0x32a   :  { %v2807_v28 = vrot.slane %v6164_v57, %v7572_v11 }
 0x32b   :  { %2692 = vrot.lane.b32.xlu0 %v5972_v18, %s4612_s15  ;;  %2776 = vrot.lane.b32.xlu1 %v5972_v18, %s4611_s29  ;;  %v5991_v16 = vmax.f32 %v1955_v43, 0.0  ;;  %v6188_v43 = vor.u32 %v4290_v62, %v4289_v29 }
 0x32f   :  { %2524 = vrot.lane.b32.xlu0 %v5972_v18, %s4614_s21  ;;  %2608 = vrot.lane.b32.xlu1 %v5972_v18, %s4613_s20 }
 0x333   :  { %2348 = vrot.lane.b32.xlu0 %v5972_v18, %s4616_s25  ;;  %2432 = vrot.lane.b32.xlu1 %v5972_v18, %s4615_s22 }
 0x337   :  { %2180 = vrot.lane.b32.xlu0 %v5972_v18, %s4619_s27  ;;  %2264 = vrot.lane.b32.xlu1 %v5972_v18, %s4617_s26 }
 0x33b   :  { %2694 = vrot.lane.b32.xlu0 %v5991_v16, %s4612_s15  ;;  %2778 = vrot.lane.b32.xlu1 %v5991_v16, %s4611_s29  ;;  %v2094_v40 = vpop.f32.mrf.mxu0 }
 0x33c   :  { %v2095_v9 = vadd.f32 %v2094_v40, %v5969_v34  ;;  %v2723_v40 = vrot.slane %v6176_v7, %v7572_v11 }
 0x33d   :  { %v2096_v15 = vpop.f32.mrf.mxu0 }
 0x33e   :  { %v6048_v21 = vmax.f32 %v2095_v9, 0.0  ;;  %v2097_v27 = vadd.f32 %v2096_v15, %v5969_v34  ;;  %v6199_v9 = vor.u32 %v4288_v1, %v4287_v49  ;;  %v4285_v15 = vld [vmem:[%s7496_s1 + $0x3] ss:$8 sm:$0xf] }
 0x33f   :  { %2526 = vrot.lane.b32.xlu0 %v5991_v16, %s4614_s21  ;;  %2610 = vrot.lane.b32.xlu1 %v5991_v16, %s4613_s20 }
 0x340   :  { %v6059_v19 = vmax.f32 %v2097_v27, 0.0  ;;  %v4286_v27 = vld [vmem:[%s7496_s1 + $0x3] ss:$8 sm:$0xf0]  ;;  %v2555_v62 = vrot.slane %v6199_v9, %v7572_v11 }
 0x341   :  { %v6222_v23 = vor.u32 %v4286_v27, %v4285_v15 }
 0x343   :  { %2434 = vrot.lane.b32.xlu0 %v5991_v16, %s4615_s22  ;;  %2350 = vrot.lane.b32.xlu1 %v5991_v16, %s4616_s25  ;;  %v2165_v30 = vpop.f32.mrf.mxu1 }
 0x344   :  { %v2166_v14 = vadd.f32 %v2165_v30, %v5969_v34 }
 0x345   :  { %v2167_v17 = vpop.f32.mrf.mxu1 }
 0x346   :  { %v6066_v63 = vmax.f32 %v2166_v14, 0.0  ;;  %v2168_v37 = vadd.f32 %v2167_v17, %v5969_v34  ;;  %v7571_v34 = vld [vmem:[#allocation4_spill] sm:$0xff] }
 0x347   :  { %2266 = vrot.lane.b32.xlu0 %v5991_v16, %s4617_s26  ;;  %2182 = vrot.lane.b32.xlu1 %v5991_v16, %s4619_s27  ;;  %v2811_v20 = vrot.slane %v6164_v57, %v7571_v34  ;;  %v2727_v10 = vrot.slane %v6176_v7, %v7571_v34 }
 0x348   :  { %7568 = vst [vmem:[#allocation19_spill] sm:$0xff] %v6066_v63  ;;  %v6077_v50 = vmax.f32 %v2168_v37, 0.0 }
 0x34a   :  { %7569 = vst [vmem:[#allocation18_spill] sm:$0xff] %v6077_v50 }
 0x34b   :  { %2780 = vrot.lane.b32.xlu0 %v6010_v53, %s4611_s29  ;;  %2696 = vrot.lane.b32.xlu1 %v6010_v53, %s4612_s15 }
 0x34f   :  { %2612 = vrot.lane.b32.xlu0 %v6010_v53, %s4613_s20  ;;  %2528 = vrot.lane.b32.xlu1 %v6010_v53, %s4614_s21 }
 0x353   :  { %2436 = vrot.lane.b32.xlu0 %v6010_v53, %s4615_s22  ;;  %2352 = vrot.lane.b32.xlu1 %v6010_v53, %s4616_s25 }
 0x357   :  { %2268 = vrot.lane.b32.xlu0 %v6010_v53, %s4617_s26  ;;  %2184 = vrot.lane.b32.xlu1 %v6010_v53, %s4619_s27 }
 0x35b   :  { %2782 = vrot.lane.b32.xlu0 %v6029_v56, %s4611_s29  ;;  %2698 = vrot.lane.b32.xlu1 %v6029_v56, %s4612_s15 }
 0x35f   :  { %2614 = vrot.lane.b32.xlu0 %v6029_v56, %s4613_s20  ;;  %2530 = vrot.lane.b32.xlu1 %v6029_v56, %s4614_s21 }
 0x363   :  { %2354 = vrot.lane.b32.xlu0 %v6029_v56, %s4616_s25  ;;  %2438 = vrot.lane.b32.xlu1 %v6029_v56, %s4615_s22 }
 0x367   :  { %2186 = vrot.lane.b32.xlu0 %v6029_v56, %s4619_s27  ;;  %2270 = vrot.lane.b32.xlu1 %v6029_v56, %s4617_s26 }
 0x36b   :  { %2700 = vrot.lane.b32.xlu0 %v6048_v21, %s4612_s15  ;;  %2784 = vrot.lane.b32.xlu1 %v6048_v21, %s4611_s29 }
 0x36f   :  { %2532 = vrot.lane.b32.xlu0 %v6048_v21, %s4614_s21  ;;  %2616 = vrot.lane.b32.xlu1 %v6048_v21, %s4613_s20 }
 0x373   :  { %2618 = vrot.lane.b32.xlu0 %v6059_v19, %s4613_s20  ;;  %2786 = vrot.lane.b32.xlu1 %v6059_v19, %s4611_s29 }
 0x377   :  { %2702 = vrot.lane.b32.xlu1 %v6059_v19, %s4612_s15  ;;  %2788 = vrot.lane.b32.xlu0 %v6066_v63, %s4611_s29 }
 0x37b   :  { %2620 = vrot.lane.b32.xlu1 %v6066_v63, %s4613_s20  ;;  %2704 = vrot.lane.b32.xlu0 %v6066_v63, %s4612_s15 }
 0x37f   :  { %2446 = vrot.lane.b32.xlu1 %v6077_v50, %s4615_s22  ;;  %2362 = vrot.lane.b32.xlu0 %v6077_v50, %s4616_s25 }
 0x383   :  { %2278 = vrot.lane.b32.xlu1 %v6077_v50, %s4617_s26  ;;  %2194 = vrot.lane.b32.xlu0 %v6077_v50, %s4619_s27 }
 0x387   :  { %2534 = vrot.lane.b32.xlu1 %v6059_v19, %s4614_s21  ;;  %2536 = vrot.lane.b32.xlu0 %v6066_v63, %s4614_s21 }
 0x38b   :  { %2440 = vrot.lane.b32.xlu1 %v6048_v21, %s4615_s22  ;;  %2442 = vrot.lane.b32.xlu0 %v6059_v19, %s4615_s22 }
 0x38f   :  { %2356 = vrot.lane.b32.xlu1 %v6048_v21, %s4616_s25  ;;  %2358 = vrot.lane.b32.xlu0 %v6059_v19, %s4616_s25 }
 0x393   :  { %2444 = vrot.lane.b32.xlu1 %v6066_v63, %s4615_s22  ;;  %2272 = vrot.lane.b32.xlu0 %v6048_v21, %s4617_s26 }
 0x397   :  { %2790 = vrot.lane.b32.xlu1 %v6077_v50, %s4611_s29  ;;  %2706 = vrot.lane.b32.xlu0 %v6077_v50, %s4612_s15 }
 0x39b   :  { %2622 = vrot.lane.b32.xlu1 %v6077_v50, %s4613_s20  ;;  %2538 = vrot.lane.b32.xlu0 %v6077_v50, %s4614_s21 }
 0x39d   :  { %v6111_v6 = vpop.permute.xlu0 %2692  ;;  %v6113_v51 = vpop.permute.xlu1 %2776 }
 0x39f   :  { %2274 = vrot.lane.b32.xlu1 %v6059_v19, %s4617_s26  ;;  %2360 = vrot.lane.b32.xlu0 %v6066_v63, %s4616_s25 }
 0x3a1   :  { %v6119_v54 = vpop.permute.xlu0 %2524  ;;  %v6121_v52 = vpop.permute.xlu1 %2608 }
 0x3a2   :  { %7570 = vst [vmem:[#allocation17_spill] sm:$0xff] %v6121_v52 }
 0x3a3   :  { %2188 = vrot.lane.b32.xlu1 %v6048_v21, %s4619_s27  ;;  %2190 = vrot.lane.b32.xlu0 %v6059_v19, %s4619_s27 }
 0x3a5   :  { %v6127_v26 = vpop.permute.xlu0 %2348  ;;  %v6129_v58 = vpop.permute.xlu1 %2432 }
 0x3a7   :  { %2276 = vrot.lane.b32.xlu1 %v6066_v63, %s4617_s26  ;;  %2192 = vrot.lane.b32.xlu0 %v6066_v63, %s4619_s27 }
 0x3a9   :  { %v6141_v48 = vpop.permute.xlu0 %2180  ;;  %v6143_v55 = vpop.permute.xlu1 %2264 }
 0x3ab   :  { %4227 = vperm.xlu0 %4609, %v4223_v36   ;;  %2934 = vperm.xlu1 %4610, %v2179_v24   ;;  %v2643_v36 = vrot.slane %v6188_v43, %v7571_v34 }
 0x3ad   :  { %v2695_v39 = vpop.permute.xlu0 %2694  ;;  %v2779_v25 = vpop.permute.xlu1 %2778 }
 0x3ae   :  { %v2798_v31 = vsel %vm681_vm0, %v6113_v51, %v2779_v25  ;;  %v2714_v17 = vsel %vm595_vm1, %v6111_v6, %v2695_v39 }
 0x3af   :  { %4232 = vperm.xlu1 %4610, %v4224_v59   ;;  %v2844_v24 = vmul.f32 %v2807_v28, %v2798_v31  ;;  %v2639_v59 = vrot.slane %v6188_v43, %v7572_v11  ;;  %v2760_v29 = vmul.f32 %v2723_v40, %v2714_v17 }
 0x3b1   :  { %v2527_v33 = vpop.permute.xlu0 %2526  ;;  %v2611_v61 = vpop.permute.xlu1 %2610 }
 0x3b5   :  { %v6154_v42 = vpop.permute.xlu0 %2434  ;;  %v6156_v47 = vpop.permute.xlu1 %2350 }
 0x3b9   :  { %v6172_v22 = vpop.permute.xlu0 %2266  ;;  %v6174_v45 = vpop.permute.xlu1 %2182 }
 0x3bd   :  { %v2781_v12 = vpop.permute.xlu0 %2780  ;;  %v6195_v46 = vpop.permute.xlu1 %2696 }
 0x3be   :  { %v2797_v30 = vsel %vm681_vm0, %v2779_v25, %v2781_v12  ;;  %v2713_v14 = vsel %vm595_vm1, %v2695_v39, %v6195_v46  ;;  %v2630_v25 = vsel %vm509_vm2, %v6121_v52, %v2611_v61  ;;  %v2559_v39 = vrot.slane %v6199_v9, %v7571_v34 }
 0x3bf   :  { %v2845_v37 = vmul.f32 %v2811_v20, %v2797_v30  ;;  %v2761_v5 = vmul.f32 %v2727_v10, %v2713_v14  ;;  %v2546_v20 = vsel %vm423_vm3, %v6119_v54, %v2527_v33  ;;  %v2676_v31 = vmul.f32 %v2639_v59, %v2630_v25 }
 0x3c0   :  { %v2467_v10 = vrot.slane %v6222_v23, %v7571_v34  ;;  %v2592_v27 = vmul.f32 %v2555_v62, %v2546_v20  ;;  %v2454_v30 = vsel %vm329_vm4, %v6129_v58, %v6154_v42  ;;  %v7573_v62 = vld [vmem:[#allocation5_spill] sm:$0xff] }
 0x3c1   :  { %v2613_v4 = vpop.permute.xlu0 %2612  ;;  %2954 = vmatprep.subr.mxu0 %v2845_v37  ;;  %v6226_v32 = vpop.permute.xlu1 %2528  ;;  %v2735_v20 = vrot.slane %v6176_v7, %v7573_v62  ;;  %v2567_v63 = vrot.slane %v6199_v9, %v7573_v62 }
 0x3c2   :  { %v2629_v49 = vsel %vm509_vm2, %v2611_v61, %v2613_v4  ;;  %v2545_v1 = vsel %vm423_vm3, %v2527_v33, %v6226_v32  ;;  %2955 = vmatpush1.msra.mxu0 %v2844_v24  ;;  %v2501_v33 = vmul.f32 %v2467_v10, %v2454_v30 }
 0x3c3   :  { %v2677_v28 = vmul.f32 %v2643_v36, %v2629_v49  ;;  %2956 = vmatprep.subr.mxu0 %v2761_v5  ;;  %v2593_v40 = vmul.f32 %v2559_v39, %v2545_v1  ;;  %v7574_v49 = vld [vmem:[#allocation6_spill] sm:$0xff] }
 0x3c4   :  { %2957 = vmatpush1.msra.mxu0 %v2760_v29  ;;  %v2815_v1 = vrot.slane %v6164_v57, %v7574_v49  ;;  %v2731_v10 = vrot.slane %v6176_v7, %v7574_v49  ;;  %v2647_v41 = vrot.slane %v6188_v43, %v7574_v49 }
 0x3c5   :  { %v6240_v15 = vpop.permute.xlu0 %2436  ;;  %2958 = vmatprep.subr.mxu0 %v2677_v28  ;;  %v6242_v61 = vpop.permute.xlu1 %2352 }
 0x3c6   :  { %2959 = vmatpush1.msra.mxu0 %v2676_v31 }
 0x3c7   :  { %2960 = vmatprep.subr.mxu0 %v2593_v40 }
 0x3c8   :  { %2961 = vmatpush1.msra.mxu0 %v2592_v27 }
 0x3c9   :  { %v6248_v14 = vpop.permute.xlu0 %2268  ;;  %2962 = vmatprep.subr.mxu0 %v5991_v16  ;;  %v6251_v17 = vpop.permute.xlu1 %2184  ;;  %v2819_v16 = vrot.slane %v6164_v57, %v7573_v62 }
 0x3ca   :  { %2963 = vmatpush1.msra.mxu0 %v5972_v18 }
 0x3cb   :  { %2964 = vmatprep.subr.mxu0 %v2501_v33  ;;  %v2651_v33 = vrot.slane %v6188_v43, %v7573_v62 }
 0x3cd   :  { %v2783_v37 = vpop.permute.xlu0 %2782  ;;  %v2699_v36 = vpop.permute.xlu1 %2698 }
 0x3ce   :  { %v2796_v18 = vsel %vm681_vm0, %v2781_v12, %v2783_v37  ;;  %v2712_v12 = vsel %vm595_vm1, %v6195_v46, %v2699_v36  ;;  %v4283_v46 = vld [vmem:[%s7496_s1 + $0x2] ss:$8 sm:$0xf] }
 0x3cf   :  { %v2846_v8 = vmul.f32 %v2815_v1, %v2796_v18 }
 0x3d1   :  { %v2615_v24 = vpop.permute.xlu0 %2614  ;;  %v2531_v59 = vpop.permute.xlu1 %2530 }
 0x3d2   :  { %v2628_v38 = vsel %vm509_vm2, %v2613_v4, %v2615_v24  ;;  %v2563_v4 = vrot.slane %v6199_v9, %v7574_v49 }
 0x3d5   :  { %v6254_v25 = vpop.permute.xlu0 %2354  ;;  %v6256_v5 = vpop.permute.xlu1 %2438 }
 0x3d9   :  { %v6258_v39 = vpop.permute.xlu0 %2186  ;;  %v6260_v29 = vpop.permute.xlu1 %2270 }
 0x3dd   :  { %v6270_v28 = vpop.permute.xlu0 %2700  ;;  %v6272_v31 = vpop.permute.xlu1 %2784 }
 0x3de   :  { %v2711_v40 = vsel %vm595_vm1, %v2699_v36, %v6270_v28  ;;  %v2795_v27 = vsel %vm681_vm0, %v2783_v37, %v6272_v31  ;;  %v4284_v36 = vld [vmem:[%s7496_s1 + $0x2] ss:$8 sm:$0xf0] }
 0x3df   :  { %v2847_v30 = vmul.f32 %v2819_v16, %v2795_v27  ;;  %v2763_v60 = vmul.f32 %v2735_v20, %v2711_v40  ;;  %v2762_v16 = vmul.f32 %v2731_v10, %v2712_v12  ;;  %v2544_v20 = vsel %vm423_vm3, %v6226_v32, %v2531_v59  ;;  %v4281_v10 = vld [vmem:[%s7496_s1 + $0x1] ss:$8 sm:$0xf]  ;;  %v2204_v32 = vld [vmem:[%s7496_s1] ss:$8 sm:$0xf] }
 0x3e0   :  { %v4282_v27 = vld [vmem:[%s7496_s1 + $0x1] ss:$8 sm:$0xf0]  ;;  %v2678_v12 = vmul.f32 %v2647_v41, %v2628_v38  ;;  %v2205_v38 = vld [vmem:[%s7496_s1] ss:$8 sm:$0xf0]  ;;  %v2471_v41 = vrot.slane %v6222_v23, %v7574_v49 }
 0x3e1   :  { %v6293_v37 = vpop.permute.xlu0 %2532  ;;  %3025 = vmatprep.subr.mxu1 %v2847_v30  ;;  %v6295_v50 = vpop.permute.xlu1 %2616  ;;  %v6320_v30 = vor.u32 %v4284_v36, %v4283_v46  ;;  %v2453_v46 = vsel %vm329_vm4, %v6154_v42, %v6240_v15  ;;  %v2369_v42 = vsel %vm243_vm5, %v6156_v47, %v6242_v61 }
 0x3e2   :  { %v2543_v1 = vsel %vm423_vm3, %v2531_v59, %v6293_v37  ;;  %v2627_v18 = vsel %vm509_vm2, %v2615_v24, %v6295_v50  ;;  %3026 = vmatpush1.msra.mxu1 %v2846_v8  ;;  %v2475_v8 = vrot.slane %v6222_v23, %v7573_v62  ;;  %v2594_v59 = vmul.f32 %v2563_v4, %v2544_v20 }
 0x3e3   :  { %v2679_v40 = vmul.f32 %v2651_v33, %v2627_v18  ;;  %3027 = vmatprep.subr.mxu1 %v2763_v60  ;;  %v2595_v24 = vmul.f32 %v2567_v63, %v2543_v1  ;;  %v2452_v63 = vsel %vm329_vm4, %v6240_v15, %v6256_v5  ;;  %v6340_v33 = vor.u32 %v4282_v27, %v4281_v10 }
 0x3e4   :  { %3028 = vmatpush1.msra.mxu1 %v2762_v16  ;;  %v2391_v36 = vrot.slane %v6320_v30, %v7573_v62  ;;  %v2387_v16 = vrot.slane %v6320_v30, %v7574_v49  ;;  %v2368_v4 = vsel %vm243_vm5, %v6242_v61, %v6254_v25  ;;  %v6354_v1 = vor.u32 %v2205_v38, %v2204_v32 }
 0x3e5   :  { %v6324_v52 = vpop.permute.xlu0 %2618  ;;  %3029 = vmatprep.subr.mxu1 %v2679_v40  ;;  %v6326_v60 = vpop.permute.xlu1 %2786  ;;  %v2503_v15 = vmul.f32 %v2475_v8, %v2452_v63  ;;  %v2307_v18 = vrot.slane %v6340_v33, %v7573_v62  ;;  %v2502_v10 = vmul.f32 %v2471_v41, %v2453_v46  ;;  %v2303_v27 = vrot.slane %v6340_v33, %v7574_v49 }
 0x3e6   :  { %3030 = vmatpush1.msra.mxu1 %v2678_v12  ;;  %v2284_v12 = vsel %vm157_vm6, %v6248_v14, %v6260_v29  ;;  %v2285_v61 = vsel %vm157_vm6, %v6172_v22, %v6248_v14  ;;  %v2419_v8 = vmul.f32 %v2391_v36, %v2368_v4  ;;  %v2219_v32 = vrot.slane %v6354_v1, %v7574_v49 }
 0x3e7   :  { %3031 = vmatprep.subr.mxu1 %v2595_v24  ;;  %v2418_v24 = vmul.f32 %v2387_v16, %v2369_v42  ;;  %v2200_v38 = vsel %vm72_vm7, %v6251_v17, %v6258_v39  ;;  %v2335_v14 = vmul.f32 %v2307_v18, %v2284_v12  ;;  %v2463_v63 = vrot.slane %v6222_v23, %v7572_v11 }
 0x3e8   :  { %3032 = vmatpush1.msra.mxu1 %v2594_v59  ;;  %v2334_v59 = vmul.f32 %v2303_v27, %v2285_v61  ;;  %v2383_v46 = vrot.slane %v6320_v30, %v7571_v34  ;;  %v2370_v16 = vsel %vm243_vm5, %v6127_v26, %v6156_v47  ;;  %v2379_v4 = vrot.slane %v6320_v30, %v7572_v11 }
 0x3e9   :  { %v6362_v20 = vpop.permute.xlu0 %2788  ;;  %3033 = vmatprep.subr.mxu1 %v6029_v56  ;;  %v6365_v40 = vpop.permute.xlu1 %2702  ;;  %v2223_v56 = vrot.slane %v6354_v1, %v7573_v62  ;;  %v2299_v18 = vrot.slane %v6340_v33, %v7571_v34  ;;  %v2286_v27 = vsel %vm157_vm6, %v6143_v55, %v6172_v22  ;;  %v2295_v61 = vrot.slane %v6340_v33, %v7572_v11 }
 0x3ea   :  { %3034 = vmatpush1.msra.mxu1 %v6010_v53  ;;  %v2201_v53 = vsel %vm72_vm7, %v6174_v45, %v6251_v17  ;;  %v6401_v17 = vld [vmem:[%s7503_s8] sm:$0xff]  ;;  %v2211_v22 = vrot.slane %v6354_v1, %v7572_v11  ;;  %v2823_v11 = vrot.slane %v6164_v57, %v5110_v35 }
 0x3eb   :  { %3035 = vmatprep.subr.mxu1 %v2503_v15  ;;  %v2251_v49 = vmul.f32 %v2223_v56, %v2200_v38  ;;  %v2250_v36 = vmul.f32 %v2219_v32, %v2201_v53  ;;  %v2333_v38 = vmul.f32 %v2299_v18, %v2286_v27 }
 0x3ec   :  { %3036 = vmatpush1.msra.mxu1 %v2502_v10 }
 0x3ed   :  { %v6390_v41 = vpop.permute.xlu0 %2704  ;;  %3037 = vmatprep.subr.mxu1 %v2419_v8  ;;  %v6392_v62 = vpop.permute.xlu1 %2620  ;;  %v2417_v8 = vmul.f32 %v2383_v46, %v2370_v16 }
 0x3ee   :  { %3038 = vmatpush1.msra.mxu1 %v2418_v24  ;;  %v2709_v46 = vsel %vm595_vm1, %v6365_v40, %v6390_v41  ;;  %v2625_v27 = vsel %vm509_vm2, %v6324_v52, %v6392_v62 }
 0x3ef   :  { %3039 = vmatprep.subr.mxu1 %v2335_v14  ;;  %v2793_v14 = vsel %vm681_vm0, %v6326_v60, %v6362_v20 }
 0x3f0   :  { %3040 = vmatpush1.msra.mxu1 %v2334_v59 }
 0x3f1   :  { %v6409_v42 = vpop.permute.xlu0 %2362  ;;  %3041 = vmatprep.subr.mxu1 %v2251_v49  ;;  %v6411_v15 = vpop.permute.xlu1 %2446 }
 0x3f2   :  { %v2371_v10 = vsel %vm243_vm5, %v6409_v42, %v6127_v26  ;;  %v2455_v47 = vsel %vm329_vm4, %v6411_v15, %v6129_v58  ;;  %3042 = vmatpush1.msra.mxu1 %v2250_v36  ;;  %v2215_v26 = vrot.slane %v6354_v1, %v7571_v34  ;;  %v2202_v58 = vsel %vm72_vm7, %v6141_v48, %v6174_v45 }
 0x3f3   :  { %v2500_v12 = vmul.f32 %v2463_v63, %v2455_v47  ;;  %4296 = vmatmul.mubr.msk.f32.vlgmr.msra.gmra.mxu1 %vm828_vm8, %v6401_v17  ;;  %v2416_v56 = vmul.f32 %v2379_v4, %v2371_v10  ;;  %v2827_v34 = vrot.slane %v6164_v57, %v5119_v44  ;;  %v2739_v63 = vrot.slane %v6176_v7, %v5110_v35 }
 0x3f4   :  { %3217 = vmatprep.mubr.f32.mxu1 %v7558_v0  ;;  %v2249_v49 = vmul.f32 %v2215_v26, %v2202_v58  ;;  %v2655_v10 = vrot.slane %v6188_v43, %v5110_v35 }
 0x3f5   :  { %v6440_v24 = vpop.permute.xlu0 %2194  ;;  %2965 = vmatpush1.msra.mxu0 %v2500_v12  ;;  %v6442_v32 = vpop.permute.xlu1 %2278  ;;  %v2849_v18 = vmul.f32 %v2827_v34, %v2793_v14  ;;  %v2626_v12 = vsel %vm509_vm2, %v6295_v50, %v6324_v52  ;;  %v2483_v34 = vrot.slane %v6222_v23, %v5119_v44 }
 0x3f6   :  { %v2203_v53 = vsel %vm72_vm7, %v6440_v24, %v6141_v48  ;;  %v2287_v45 = vsel %vm157_vm6, %v6442_v32, %v6143_v55  ;;  %2966 = vmatprep.subr.mxu0 %v2417_v8  ;;  %v2794_v48 = vsel %vm681_vm0, %v6272_v31, %v6326_v60  ;;  %v2743_v55 = vrot.slane %v6176_v7, %v5119_v44 }
 0x3f7   :  { %v2332_v59 = vmul.f32 %v2295_v61, %v2287_v45  ;;  %2967 = vmatpush1.msra.mxu0 %v2416_v56  ;;  %v2248_v36 = vmul.f32 %v2211_v22, %v2203_v53  ;;  %v2710_v31 = vsel %vm595_vm1, %v6270_v28, %v6365_v40  ;;  %v2659_v60 = vrot.slane %v6188_v43, %v5119_v44 }
 0x3f8   :  { %2968 = vmatprep.subr.mxu0 %v2333_v38  ;;  %v2848_v47 = vmul.f32 %v2823_v11, %v2794_v48  ;;  %v2765_v28 = vmul.f32 %v2743_v55, %v2709_v46  ;;  %v2575_v40 = vrot.slane %v6199_v9, %v5119_v44  ;;  %v2764_v61 = vmul.f32 %v2739_v63, %v2710_v31 }
 0x3f9   :  { %v6472_v16 = vpop.permute.xlu0 %2536  ;;  %2969 = vmatpush1.msra.mxu0 %v2332_v59  ;;  %v2535_v4 = vpop.permute.xlu1 %2534  ;;  %v2571_v8 = vrot.slane %v6199_v9, %v5110_v35  ;;  %v2681_v52 = vmul.f32 %v2659_v60, %v2625_v27  ;;  %v2680_v22 = vmul.f32 %v2655_v10, %v2626_v12  ;;  %v2479_v45 = vrot.slane %v6222_v23, %v5110_v35 }
 0x3fa   :  { %2970 = vmatprep.subr.mxu0 %v2249_v49  ;;  %v2541_v26 = vsel %vm423_vm3, %v2535_v4, %v6472_v16  ;;  %v2542_v56 = vsel %vm423_vm3, %v6293_v37, %v2535_v4  ;;  %v2399_v59 = vrot.slane %v6320_v30, %v5119_v44  ;;  %v2395_v49 = vrot.slane %v6320_v30, %v5110_v35 }
 0x3fb   :  { %2971 = vmatpush1.msra.mxu0 %v2248_v36  ;;  %v2597_v38 = vmul.f32 %v2575_v40, %v2541_v26  ;;  %v2596_v53 = vmul.f32 %v2571_v8, %v2542_v56  ;;  %v2831_v31 = vrot.slane %v6164_v57, %v5151_v3  ;;  %v2835_v60 = vrot.slane %v6164_v57, %v5154_v2 }
 0x3fc   :  { %4295 = vmatmul.mubr.msk.f32.vlgmr.msra.gmra.mxu0 %vm828_vm8, %v6401_v17  ;;  %3096 = vmatprep.subr.mxu0 %v2849_v18  ;;  %v2663_v12 = vrot.slane %v6188_v43, %v5151_v3  ;;  %v2583_v8 = vrot.slane %v6199_v9, %v5154_v2 }
 0x3fd   :  { %v6499_v58 = vpop.permute.xlu0 %2442  ;;  %3097 = vmatpush1.msra.mxu0 %v2848_v47  ;;  %v2441_v50 = vpop.permute.xlu1 %2440  ;;  %3146 = vmatprep.mubr.f32.mxu0 %v7558_v0 }
 0x3fe   :  { %3098 = vmatprep.subr.mxu0 %v2765_v28  ;;  %v2450_v0 = vsel %vm329_vm4, %v2441_v50, %v6499_v58  ;;  %v2451_v14 = vsel %vm329_vm4, %v6256_v5, %v2441_v50 }
 0x3ff   :  { %3099 = vmatpush1.msra.mxu0 %v2764_v61  ;;  %v2505_v55 = vmul.f32 %v2483_v34, %v2450_v0  ;;  %v2504_v5 = vmul.f32 %v2479_v45, %v2451_v14  ;;  %v2315_v34 = vrot.slane %v6340_v33, %v5119_v44 }
 0x400   :  { %3100 = vmatprep.subr.mxu0 %v2681_v52 }
 0x401   :  { %v6512_v11 = vpop.permute.xlu0 %2358  ;;  %3101 = vmatpush1.msra.mxu0 %v2680_v22  ;;  %v2357_v37 = vpop.permute.xlu1 %2356 }
 0x402   :  { %3102 = vmatprep.subr.mxu0 %v2597_v38  ;;  %v2366_v48 = vsel %vm243_vm5, %v2357_v37, %v6512_v11  ;;  %v2367_v63 = vsel %vm243_vm5, %v6254_v25, %v2357_v37  ;;  %v2747_v25 = vrot.slane %v6176_v7, %v5151_v3 }
 0x403   :  { %3103 = vmatpush1.msra.mxu0 %v2596_v53  ;;  %v2421_v4 = vmul.f32 %v2399_v59, %v2366_v48  ;;  %v2420_v18 = vmul.f32 %v2395_v49, %v2367_v63  ;;  %v2487_v53 = vrot.slane %v6222_v23, %v5151_v3 }
 0x404   :  { %3104 = vmatprep.subr.mxu0 %v6059_v19  ;;  %v2751_v19 = vrot.slane %v6176_v7, %v5154_v2 }
 0x405   :  { %v2273_v46 = vpop.permute.xlu0 %2272  ;;  %3105 = vmatpush1.msra.mxu0 %v6048_v21  ;;  %v2445_v36 = vpop.permute.xlu1 %2444 }
 0x406   :  { %3106 = vmatprep.subr.mxu0 %v2505_v55  ;;  %v2448_v14 = vsel %vm329_vm4, %v2445_v36, %v6411_v15  ;;  %v2449_v59 = vsel %vm329_vm4, %v6499_v58, %v2445_v36  ;;  %v2227_v55 = vrot.slane %v6354_v1, %v5110_v35  ;;  %v2231_v15 = vrot.slane %v6354_v1, %v5119_v44 }
 0x407   :  { %3107 = vmatpush1.msra.mxu0 %v2504_v5  ;;  %v2403_v58 = vrot.slane %v6320_v30, %v5151_v3 }
 0x408   :  { %3108 = vmatprep.subr.mxu0 %v2421_v4 }
 0x409   :  { %v2707_v10 = vpop.permute.xlu0 %2706  ;;  %3109 = vmatpush1.msra.mxu0 %v2420_v18  ;;  %v2791_v21 = vpop.permute.xlu1 %2790  ;;  %v7576_v18 = vld [vmem:[#allocation18_spill] sm:$0xff] }
 0x40a   :  { %v2715_v47 = vsel %vm595_vm1, %v2707_v10, %v6111_v6  ;;  %v2792_v27 = vsel %vm681_vm0, %v6362_v20, %v2791_v21  ;;  %v2799_v57 = vsel %vm681_vm0, %v2791_v21, %v6113_v51  ;;  %v2708_v7 = vsel %vm595_vm1, %v6390_v41, %v2707_v10 }
 0x40b   :  { %v2850_v28 = vmul.f32 %v2831_v31, %v2792_v27  ;;  %v2851_v40 = vmul.f32 %v2835_v60, %v2799_v57  ;;  %v2667_v6 = vrot.slane %v6188_v43, %v5154_v2  ;;  %v2767_v61 = vmul.f32 %v2751_v19, %v2715_v47  ;;  %v7575_v43 = vld [vmem:[#allocation17_spill] sm:$0xff]  ;;  %v7577_v60 = vld [vmem:[#allocation19_spill] sm:$0xff] }
 0x40c   :  { %v2579_v20 = vrot.slane %v6199_v9, %v5151_v3  ;;  %v2766_v50 = vmul.f32 %v2747_v25, %v2708_v7  ;;  %v2323_v21 = vrot.slane %v6340_v33, %v5154_v2 }
 0x40d   :  { %v2539_v51 = vpop.permute.xlu0 %2538  ;;  %3167 = vmatprep.subr.mxu1 %v2851_v40  ;;  %v2623_v26 = vpop.permute.xlu1 %2622 }
 0x40e   :  { %v2547_v41 = vsel %vm423_vm3, %v2539_v51, %v6119_v54  ;;  %v2624_v52 = vsel %vm509_vm2, %v6392_v62, %v2623_v26  ;;  %v2631_v56 = vsel %vm509_vm2, %v2623_v26, %v7575_v43  ;;  %3168 = vmatpush1.msra.mxu1 %v2850_v28  ;;  %v2540_v9 = vsel %vm423_vm3, %v6472_v16, %v2539_v51  ;;  %v3255_v28 = vld [vmem:[%s7504_s2 + $0x78] sm:$0xff]  ;;  %v3253_v51 = vld [vmem:[%s7504_s2 + $0x68] sm:$0xff]  ;;  %v3302_v26 = vld [vmem:[%s7504_s2 + $0x1f0] sm:$0xff] }
 0x40f   :  { %v2682_v22 = vmul.f32 %v2663_v12, %v2624_v52  ;;  %v2683_v38 = vmul.f32 %v2667_v6, %v2631_v56  ;;  %3169 = vmatprep.subr.mxu1 %v2767_v61  ;;  %v2311_v54 = vrot.slane %v6340_v33, %v5110_v35  ;;  %v2283_v62 = vsel %vm157_vm6, %v6260_v29, %v2273_v46  ;;  %v3252_v52 = vld [vmem:[%s7504_s2 + $0x60] sm:$0xff]  ;;  %v3301_v43 = vld [vmem:[%s7504_s2 + $0x1e8] sm:$0xff]  ;;  %v3267_v56 = vld [vmem:[%s7504_s2 + $0xd8] sm:$0xff] }
 0x410   :  { %3170 = vmatpush1.msra.mxu1 %v2766_v50  ;;  %v2491_v16 = vrot.slane %v6222_v23, %v5154_v2  ;;  %v2599_v45 = vmul.f32 %v2583_v8, %v2547_v41  ;;  %v2598_v49 = vmul.f32 %v2579_v20, %v2540_v9  ;;  %v2407_v23 = vrot.slane %v6320_v30, %v5154_v2  ;;  %v3303_v20 = vld [vmem:[%s7504_s2 + $0x1f8] sm:$0xff]  ;;  %v3268_v50 = vld [vmem:[%s7504_s2 + $0xe0] sm:$0xff]  ;;  %v3286_v41 = vld [vmem:[%s7504_s2 + $0x170] sm:$0xff] }
 0x411   :  { %v2361_v0 = vpop.permute.xlu0 %2360  ;;  %3171 = vmatprep.subr.mxu1 %v2683_v38  ;;  %v2275_v37 = vpop.permute.xlu1 %2274  ;;  %v2336_v63 = vmul.f32 %v2311_v54, %v2283_v62  ;;  %v2319_v35 = vrot.slane %v6340_v33, %v5151_v3  ;;  %v2235_v12 = vrot.slane %v6354_v1, %v5151_v3  ;;  %v3287_v8 = vld [vmem:[%s7504_s2 + $0x178] sm:$0xff]  ;;  %v3266_v38 = vld [vmem:[%s7504_s2 + $0xd0] sm:$0xff] }
 0x412   :  { %v2282_v29 = vsel %vm157_vm6, %v2273_v46, %v2275_v37  ;;  %3172 = vmatpush1.msra.mxu1 %v2682_v22  ;;  %v2364_v5 = vsel %vm243_vm5, %v2361_v0, %v6409_v42  ;;  %v2506_v46 = vmul.f32 %v2487_v53, %v2449_v59  ;;  %v2507_v36 = vmul.f32 %v2491_v16, %v2448_v14  ;;  %v3251_v9 = vld [vmem:[%s7504_s2 + $0x58] sm:$0xff]  ;;  %v3300_v22 = vld [vmem:[%s7504_s2 + $0x1e0] sm:$0xff]  ;;  %v3250_v54 = vld [vmem:[%s7504_s2 + $0x50] sm:$0xff] }
 0x413   :  { %v2337_v48 = vmul.f32 %v2315_v34, %v2282_v29  ;;  %3173 = vmatprep.subr.mxu1 %v2599_v45  ;;  %v2365_v44 = vsel %vm243_vm5, %v6512_v11, %v2361_v0  ;;  %v2423_v25 = vmul.f32 %v2407_v23, %v2364_v5  ;;  %v2239_v11 = vrot.slane %v6354_v1, %v5154_v2  ;;  %v3284_v34 = vld [vmem:[%s7504_s2 + $0x160] sm:$0xff]  ;;  %v3299_v62 = vld [vmem:[%s7504_s2 + $0x1d8] sm:$0xff]  ;;  %v3265_v53 = vld [vmem:[%s7504_s2 + $0xc8] sm:$0xff] }
 0x414   :  { %3174 = vmatpush1.msra.mxu1 %v2598_v49  ;;  %v2422_v47 = vmul.f32 %v2403_v58, %v2365_v44  ;;  %v3283_v16 = vld [vmem:[%s7504_s2 + $0x158] sm:$0xff]  ;;  %v3249_v45 = vld [vmem:[%s7504_s2 + $0x48] sm:$0xff]  ;;  %v3298_v0 = vld [vmem:[%s7504_s2 + $0x1d0] sm:$0xff] }
 0x415   :  { %v2191_v4 = vpop.permute.xlu0 %2190  ;;  %3110 = vmatprep.subr.mxu0 %v2337_v48  ;;  %3175 = vmatprep.subr.mxu1 %v7576_v18  ;;  %v2189_v31 = vpop.permute.xlu1 %2188  ;;  %v3297_v14 = vld [vmem:[%s7504_s2 + $0x1c8] sm:$0xff]  ;;  %v3296_v49 = vld [vmem:[%s7504_s2 + $0x1c0] sm:$0xff]  ;;  %v3295_v23 = vld [vmem:[%s7504_s2 + $0x1b8] sm:$0xff] }
 0x416   :  { %v2198_v30 = vsel %vm72_vm7, %v2189_v31, %v2191_v4  ;;  %v2199_v42 = vsel %vm72_vm7, %v6258_v39, %v2189_v31  ;;  %3111 = vmatpush1.msra.mxu0 %v2336_v63  ;;  %3176 = vmatpush1.msra.mxu1 %v7577_v60  ;;  %v3271_v39 = vld [vmem:[%s7504_s2 + $0xf8] sm:$0xff]  ;;  %v3281_v59 = vld [vmem:[%s7504_s2 + $0x148] sm:$0xff]  ;;  %v3280_v29 = vld [vmem:[%s7504_s2 + $0x140] sm:$0xff] }
 0x417   :  { %v2252_v19 = vmul.f32 %v2227_v55, %v2199_v42  ;;  %v2253_v10 = vmul.f32 %v2231_v15, %v2198_v30  ;;  %3177 = vmatprep.subr.mxu1 %v2507_v36  ;;  %v3279_v48 = vld [vmem:[%s7504_s2 + $0x138] sm:$0xff]  ;;  %v3294_v55 = vld [vmem:[%s7504_s2 + $0x1b0] sm:$0xff]  ;;  %v3293_v63 = vld [vmem:[%s7504_s2 + $0x1a8] sm:$0xff] }
 0x418   :  { %3178 = vmatpush1.msra.mxu1 %v2506_v46  ;;  %v3278_v15 = vld [vmem:[%s7504_s2 + $0x130] sm:$0xff]  ;;  %v3277_v58 = vld [vmem:[%s7504_s2 + $0x128] sm:$0xff]  ;;  %v3264_v5 = vld [vmem:[%s7504_s2 + $0xc0] sm:$0xff] }
 0x419   :  { %v2193_v27 = vpop.permute.xlu0 %2192  ;;  %3112 = vmatprep.subr.mxu0 %v2253_v10  ;;  %3179 = vmatprep.subr.mxu1 %v2423_v25  ;;  %v2277_v57 = vpop.permute.xlu1 %2276  ;;  %v3248_v46 = vld [vmem:[%s7504_s2 + $0x40] sm:$0xff]  ;;  %v3263_v18 = vld [vmem:[%s7504_s2 + $0xb8] sm:$0xff]  ;;  %v3262_v30 = vld [vmem:[%s7504_s2 + $0xb0] sm:$0xff] }
 0x41a   :  { %v2196_v33 = vsel %vm72_vm7, %v2193_v27, %v6440_v24  ;;  %v2280_v7 = vsel %vm157_vm6, %v2277_v57, %v6442_v32  ;;  %v2281_v2 = vsel %vm157_vm6, %v2275_v37, %v2277_v57  ;;  %3113 = vmatpush1.msra.mxu0 %v2252_v19  ;;  %v2197_v40 = vsel %vm72_vm7, %v2191_v4, %v2193_v27  ;;  %v3270_v24 = vld [vmem:[%s7504_s2 + $0xf0] sm:$0xff]  ;;  %v3292_v36 = vld [vmem:[%s7504_s2 + $0x1a0] sm:$0xff]  ;;  %v3291_v31 = vld [vmem:[%s7504_s2 + $0x198] sm:$0xff] }
 0x41b   :  { %v2338_v3 = vmul.f32 %v2319_v35, %v2281_v2  ;;  %v2339_v1 = vmul.f32 %v2323_v21, %v2280_v7  ;;  %3180 = vmatpush1.msra.mxu1 %v2422_v47  ;;  %4297 = vmatmul.mubr.msk.f32.vlgmr.msra.gmra.mxu0 %vm828_vm8, %v6401_v17  ;;  %v3254_v32 = vld [vmem:[%s7504_s2 + $0x70] sm:$0xff]  ;;  %v2255_v6 = vmul.f32 %v2239_v11, %v2196_v33  ;;  %v3276_v4 = vld [vmem:[%s7504_s2 + $0x120] sm:$0xff]  ;;  %v3247_v35 = vld [vmem:[%s7504_s2 + $0x38] sm:$0xff] }
 0x41c   :  { %4303 = vmatprep.subr.mxu0 %v3271_v39  ;;  %v2254_v61 = vmul.f32 %v2235_v12, %v2197_v40  ;;  %v3282_v37 = vld [vmem:[%s7504_s2 + $0x150] sm:$0xff]  ;;  %v3275_v44 = vld [vmem:[%s7504_s2 + $0x118] sm:$0xff]  ;;  %v3261_v19 = vld [vmem:[%s7504_s2 + $0xa8] sm:$0xff] }
 0x41d   :  { %3181 = vmatprep.subr.mxu1 %v2339_v1  ;;  %4304 = vmatpush3.msra.mxu0 %v3255_v28  ;;  %v3290_v42 = vld [vmem:[%s7504_s2 + $0x190] sm:$0xff]  ;;  %v3289_v10 = vld [vmem:[%s7504_s2 + $0x188] sm:$0xff]  ;;  %v3260_v47 = vld [vmem:[%s7504_s2 + $0xa0] sm:$0xff] }
 0x41e   :  { %3182 = vmatpush1.msra.mxu1 %v2338_v3  ;;  %4305 = vmatprep.subr.mxu0 %v3270_v24  ;;  %v3246_v60 = vld [vmem:[%s7504_s2 + $0x30] sm:$0xff]  ;;  %v3245_v21 = vld [vmem:[%s7504_s2 + $0x28] sm:$0xff]  ;;  %v3288_v27 = vld [vmem:[%s7504_s2 + $0x180] sm:$0xff] }
 0x41f   :  { %3183 = vmatprep.subr.mxu1 %v2255_v6  ;;  %4306 = vmatpush3.msra.mxu0 %v3254_v32  ;;  %v3274_v25 = vld [vmem:[%s7504_s2 + $0x110] sm:$0xff]  ;;  %v3273_v11 = vld [vmem:[%s7504_s2 + $0x108] sm:$0xff]  ;;  %v3244_v57 = vld [vmem:[%s7504_s2 + $0x20] sm:$0xff] }
 0x420   :  { %3184 = vmatpush1.msra.mxu1 %v2254_v61  ;;  %4307 = vmatprep.subr.mxu0 %v3269_v13  ;;  %v3272_v39 = vld [vmem:[%s7504_s2 + $0x100] sm:$0xff]  ;;  %v3259_v12 = vld [vmem:[%s7504_s2 + $0x98] sm:$0xff]  ;;  %v3258_v7 = vld [vmem:[%s7504_s2 + $0x90] sm:$0xff] }
 0x421   :  { %4298 = vmatmul.mubr.msk.f32.vlgmr.msra.gmra.mxu1 %vm828_vm8, %v6401_v17  ;;  %4338 = vmatprep.subr.mxu1 %v3303_v20  ;;  %v3285_v17 = vld [vmem:[%s7504_s2 + $0x168] sm:$0xff]  ;;  %v3243_v33 = vld [vmem:[%s7504_s2 + $0x18] sm:$0xff]  ;;  %v3242_v2 = vld [vmem:[%s7504_s2 + $0x10] sm:$0xff] }
 0x422   :  { %4339 = vmatpush3.msra.mxu1 %v3287_v8  ;;  %4308 = vmatpush3.msra.mxu0 %v3253_v51  ;;  %v3257_v28 = vld [vmem:[%s7504_s2 + $0x88] sm:$0xff]  ;;  %v3256_v3 = vld [vmem:[%s7504_s2 + $0x80] sm:$0xff]  ;;  %v3335_v24 = vld [vmem:[%s7504_s2 + $0x2f8] sm:$0xff] }
 0x423   :  { %4340 = vmatprep.subr.mxu1 %v3302_v26  ;;  %4309 = vmatprep.subr.mxu0 %v3268_v50  ;;  %v3241_v40 = vld [vmem:[%s7504_s2 + $0x8] sm:$0xff]  ;;  %v3240_v1 = vld [vmem:[%s7504_s2] sm:$0xff]  ;;  %v3367_v32 = vld [vmem:[%s7504_s2 + $0x3f8] sm:$0xff] }
 0x424   :  { %4341 = vmatpush3.msra.mxu1 %v3286_v41  ;;  %4310 = vmatpush3.msra.mxu0 %v3252_v52  ;;  %v7578_v51 = vld [vmem:[#allocation8_spill] sm:$0xff]  ;;  %v7579_v50 = vld [vmem:[#allocation10_spill] sm:$0xff] }
 0x425   :  { %4342 = vmatprep.subr.mxu1 %v3301_v43  ;;  %4311 = vmatprep.subr.mxu0 %v3267_v56  ;;  %v3351_v56 = vld [vmem:[%s7504_s2 + $0x378] sm:$0xff] }
 0x426   :  { %4343 = vmatpush3.msra.mxu1 %v3285_v17  ;;  %4312 = vmatpush3.msra.mxu0 %v3251_v9  ;;  %v6829_v6 = vpop.permute.xlu1 %2934  ;;  %v3366_v9 = vld [vmem:[%s7504_s2 + $0x3f0] sm:$0xff] }
 0x427   :  { %4344 = vmatprep.subr.mxu1 %v3300_v22  ;;  %4313 = vmatprep.subr.mxu0 %v3266_v38  ;;  %v3350_v38 = vld [vmem:[%s7504_s2 + $0x370] sm:$0xff] }
 0x428   :  { %4345 = vmatpush3.msra.mxu1 %v3284_v34  ;;  %4314 = vmatpush3.msra.mxu0 %v3250_v54  ;;  %v3365_v54 = vld [vmem:[%s7504_s2 + $0x3e8] sm:$0xff] }
 0x429   :  { %4346 = vmatprep.subr.mxu1 %v3299_v62  ;;  %4315 = vmatprep.subr.mxu0 %v3265_v53  ;;  %v3349_v53 = vld [vmem:[%s7504_s2 + $0x368] sm:$0xff] }
 0x42a   :  { %4347 = vmatpush3.msra.mxu1 %v3283_v16  ;;  %4316 = vmatpush3.msra.mxu0 %v3249_v45  ;;  %v7580_v16 = vld [vmem:[#allocation7_spill] sm:$0xff] }
 0x42b   :  { %4348 = vmatprep.subr.mxu1 %v3298_v0  ;;  %4317 = vmatprep.subr.mxu0 %v3264_v5  ;;  %v3364_v0 = vld [vmem:[%s7504_s2 + $0x3e0] sm:$0xff]  ;;  %v3318_v5 = vld [vmem:[%s7504_s2 + $0x270] sm:$0xff] }
 0x42c   :  { %4349 = vmatpush3.msra.mxu1 %v3282_v37  ;;  %4318 = vmatpush3.msra.mxu0 %v3248_v46  ;;  %v7581_v37 = vld [vmem:[#allocation9_spill] sm:$0xff]  ;;  %v3361_v46 = vld [vmem:[%s7504_s2 + $0x3c8] sm:$0xff] }
 0x42d   :  { %4350 = vmatprep.subr.mxu1 %v3297_v14  ;;  %4319 = vmatprep.subr.mxu0 %v3263_v18  ;;  %v3317_v18 = vld [vmem:[%s7504_s2 + $0x268] sm:$0xff] }
 0x42e   :  { %4351 = vmatpush3.msra.mxu1 %v3281_v59  ;;  %4320 = vmatpush3.msra.mxu0 %v3247_v35  ;;  %v3348_v59 = vld [vmem:[%s7504_s2 + $0x360] sm:$0xff] }
 0x42f   :  { %4352 = vmatprep.subr.mxu1 %v3296_v49  ;;  %4321 = vmatprep.subr.mxu0 %v3262_v30  ;;  %v3363_v49 = vld [vmem:[%s7504_s2 + $0x3d8] sm:$0xff]  ;;  %v3332_v35 = vld [vmem:[%s7504_s2 + $0x2e0] sm:$0xff] }
 0x430   :  { %4353 = vmatpush3.msra.mxu1 %v3280_v29  ;;  %4322 = vmatpush3.msra.mxu0 %v3246_v60  ;;  %v3316_v30 = vld [vmem:[%s7504_s2 + $0x260] sm:$0xff]  ;;  %v3331_v60 = vld [vmem:[%s7504_s2 + $0x2d8] sm:$0xff] }
 0x431   :  { %4354 = vmatprep.subr.mxu1 %v3295_v23  ;;  %4323 = vmatprep.subr.mxu0 %v3261_v19  ;;  %v3347_v23 = vld [vmem:[%s7504_s2 + $0x358] sm:$0xff] }
 0x432   :  { %4355 = vmatpush3.msra.mxu1 %v3279_v48  ;;  %4324 = vmatpush3.msra.mxu0 %v3245_v21  ;;  %v3315_v19 = vld [vmem:[%s7504_s2 + $0x258] sm:$0xff]  ;;  %v3330_v21 = vld [vmem:[%s7504_s2 + $0x2d0] sm:$0xff] }
 0x433   :  { %4356 = vmatprep.subr.mxu1 %v3294_v55  ;;  %4325 = vmatprep.subr.mxu0 %v3260_v47  ;;  %v3319_v55 = vld [vmem:[%s7504_s2 + $0x278] sm:$0xff]  ;;  %v3342_v47 = vld [vmem:[%s7504_s2 + $0x330] sm:$0xff] }
 0x434   :  { %4357 = vmatpush3.msra.mxu1 %v3278_v15  ;;  %4326 = vmatpush3.msra.mxu0 %v3244_v57  ;;  %v3362_v15 = vld [vmem:[%s7504_s2 + $0x3d0] sm:$0xff]  ;;  %v3329_v57 = vld [vmem:[%s7504_s2 + $0x2c8] sm:$0xff] }
 0x435   :  { %4358 = vmatprep.subr.mxu1 %v3293_v63  ;;  %4327 = vmatprep.subr.mxu0 %v3259_v12  ;;  %v3334_v63 = vld [vmem:[%s7504_s2 + $0x2f0] sm:$0xff]  ;;  %v3313_v12 = vld [vmem:[%s7504_s2 + $0x248] sm:$0xff] }
 0x436   :  { %4359 = vmatpush3.msra.mxu1 %v3277_v58  ;;  %4328 = vmatpush3.msra.mxu0 %v3243_v33  ;;  %v3346_v58 = vld [vmem:[%s7504_s2 + $0x350] sm:$0xff]  ;;  %v3356_v33 = vld [vmem:[%s7504_s2 + $0x3a0] sm:$0xff] }
 0x437   :  { %4360 = vmatprep.subr.mxu1 %v3292_v36  ;;  %4329 = vmatprep.subr.mxu0 %v3258_v7  ;;  %v3333_v36 = vld [vmem:[%s7504_s2 + $0x2e8] sm:$0xff]  ;;  %v3328_v7 = vld [vmem:[%s7504_s2 + $0x2c0] sm:$0xff] }
 0x438   :  { %4361 = vmatpush3.msra.mxu1 %v3276_v4  ;;  %4330 = vmatpush3.msra.mxu0 %v3242_v2  ;;  %v3345_v4 = vld [vmem:[%s7504_s2 + $0x348] sm:$0xff]  ;;  %v3340_v2 = vld [vmem:[%s7504_s2 + $0x320] sm:$0xff] }
 0x439   :  { %4362 = vmatprep.subr.mxu1 %v3291_v31  ;;  %4331 = vmatprep.subr.mxu0 %v3257_v28  ;;  %v3360_v31 = vld [vmem:[%s7504_s2 + $0x3c0] sm:$0xff] }
 0x43a   :  { %4363 = vmatpush3.msra.mxu1 %v3275_v44  ;;  %4332 = vmatpush3.msra.mxu0 %v3241_v40  ;;  %v3344_v44 = vld [vmem:[%s7504_s2 + $0x340] sm:$0xff]  ;;  %v3355_v40 = vld [vmem:[%s7504_s2 + $0x398] sm:$0xff] }
 0x43b   :  { %4364 = vmatprep.subr.mxu1 %v3290_v42  ;;  %4333 = vmatprep.subr.mxu0 %v3256_v3  ;;  %v3359_v42 = vld [vmem:[%s7504_s2 + $0x3b8] sm:$0xff]  ;;  %v3312_v28 = vld [vmem:[%s7504_s2 + $0x240] sm:$0xff] }
 0x43c   :  { %4365 = vmatpush3.msra.mxu1 %v3274_v25  ;;  %4334 = vmatpush3.msra.mxu0 %v3240_v1  ;;  %v3343_v25 = vld [vmem:[%s7504_s2 + $0x338] sm:$0xff] }
 0x43d   :  { %4366 = vmatprep.subr.mxu1 %v3289_v10  ;;  %4373 = vmatprep.subr.mxu0 %v3335_v24  ;;  %v3358_v10 = vld [vmem:[%s7504_s2 + $0x3b0] sm:$0xff]  ;;  %v3327_v3 = vld [vmem:[%s7504_s2 + $0x2b8] sm:$0xff] }
 0x43e   :  { %4367 = vmatpush3.msra.mxu1 %v3273_v11  ;;  %v3314_v11 = vld [vmem:[%s7504_s2 + $0x250] sm:$0xff]  ;;  %v3339_v1 = vld [vmem:[%s7504_s2 + $0x318] sm:$0xff] }
 0x43f   :  { %4368 = vmatprep.subr.mxu1 %v3288_v27  ;;  %v3357_v27 = vld [vmem:[%s7504_s2 + $0x3a8] sm:$0xff]  ;;  %v3311_v24 = vld [vmem:[%s7504_s2 + $0x238] sm:$0xff] }
 0x440   :  { %4369 = vmatpush3.msra.mxu1 %v3272_v39  ;;  %v3341_v39 = vld [vmem:[%s7504_s2 + $0x328] sm:$0xff] }
 0x441   :  { %4408 = vmatprep.subr.mxu1 %v3367_v32  ;;  %v3354_v32 = vld [vmem:[%s7504_s2 + $0x390] sm:$0xff] }
 0x4b3   :  { %v3077_v13 = vpop.f32.mrf.mxu1 }
 0x4b4   :  { %v3078_v61 = vadd.f32 %v3077_v13, %v6829_v6  ;;  %v3326_v13 = vld [vmem:[%s7504_s2 + $0x2b0] sm:$0xff] }
 0x4b5   :  { %v3079_v20 = vpop.f32.mrf.mxu1 }
 0x4b6   :  { %v3080_v8 = vadd.f32 %v3079_v20, %v6829_v6  ;;  %v6834_v26 = vadd.f32 %v3078_v61, %v7578_v51  ;;  %v3338_v61 = vld [vmem:[%s7504_s2 + $0x310] sm:$0xff]  ;;  %v3325_v51 = vld [vmem:[%s7504_s2 + $0x2a8] sm:$0xff] }
 0x4b7   :  { %v3310_v20 = vld [vmem:[%s7504_s2 + $0x230] sm:$0xff] }
 0x4b8   :  { %v6837_v41 = vadd.f32 %v3080_v8, %v7579_v50  ;;  %v3234_v43 = vmax.f32 %v6834_v26, 0.0  ;;  %v3353_v8 = vld [vmem:[%s7504_s2 + $0x388] sm:$0xff]  ;;  %v3758_v26 = vld [vmem:[%s7505_s3 + $0x370] sm:$0xff] }
 0x4b9   :  { %v3337_v50 = vld [vmem:[%s7504_s2 + $0x308] sm:$0xff] }
 0x4ba   :  { %v3235_v52 = vmax.f32 %v6837_v41, 0.0  ;;  %v3673_v41 = vld [vmem:[%s7505_s3 + $0xc8] sm:$0xff] }
 0x4bc   :  { %v3006_v17 = vpop.f32.mrf.mxu0  ;;  %3502 = vmatprep.mubr.f32.mxu1 %v3235_v52 }
 0x4bd   :  { %v3007_v22 = vadd.f32 %v3006_v17, %v6829_v6  ;;  %3503 = vmatmul.mubr.f32.vlgmr.msra.gmra.mxu1 %v3234_v43  ;;  %v3352_v17 = vld [vmem:[%s7504_s2 + $0x380] sm:$0xff] }
 0x4be   :  { %v3008_v34 = vpop.f32.mrf.mxu0  ;;  %4409 = vmatpush3.msra.mxu1 %v3351_v56  ;;  %v3309_v56 = vld [vmem:[%s7504_s2 + $0x228] sm:$0xff] }
 0x4bf   :  { %v3009_v62 = vadd.f32 %v3008_v34, %v6829_v6  ;;  %4410 = vmatprep.subr.mxu1 %v3366_v9  ;;  %v6863_v45 = vadd.f32 %v3007_v22, %v7580_v16  ;;  %v3324_v9 = vld [vmem:[%s7504_s2 + $0x2a0] sm:$0xff]  ;;  %v3711_v34 = vld [vmem:[%s7505_s3 + $0x1f8] sm:$0xff] }
 0x4c0   :  { %4411 = vmatpush3.msra.mxu1 %v3350_v38  ;;  %v3336_v22 = vld [vmem:[%s7504_s2 + $0x300] sm:$0xff] }
 0x4c1   :  { %v6869_v14 = vadd.f32 %v3009_v62, %v7581_v37  ;;  %4412 = vmatprep.subr.mxu1 %v3365_v54  ;;  %v3232_v48 = vmax.f32 %v6863_v45, 0.0  ;;  %v3308_v38 = vld [vmem:[%s7504_s2 + $0x220] sm:$0xff]  ;;  %v3323_v54 = vld [vmem:[%s7504_s2 + $0x298] sm:$0xff]  ;;  %v3726_v45 = vld [vmem:[%s7505_s3 + $0x270] sm:$0xff] }
 0x4c2   :  { %4413 = vmatpush3.msra.mxu1 %v3349_v53  ;;  %v3307_v53 = vld [vmem:[%s7504_s2 + $0x218] sm:$0xff] }
 0x4c3   :  { %v3233_v29 = vmax.f32 %v6869_v14, 0.0  ;;  %4414 = vmatprep.subr.mxu1 %v3364_v0  ;;  %v3322_v0 = vld [vmem:[%s7504_s2 + $0x290] sm:$0xff]  ;;  %v3695_v14 = vld [vmem:[%s7505_s3 + $0x178] sm:$0xff] }
 0x4c4   :  { %4415 = vmatpush3.msra.mxu1 %v3348_v59  ;;  %v3306_v59 = vld [vmem:[%s7504_s2 + $0x210] sm:$0xff] }
 0x4c5   :  { %3432 = vmatprep.mubr.f32.mxu0 %v3233_v29  ;;  %4416 = vmatprep.subr.mxu1 %v3363_v49 }
 0x4c6   :  { %3433 = vmatmul.mubr.f32.vlgmr.msra.gmra.mxu0 %v3232_v48  ;;  %4417 = vmatpush3.msra.mxu1 %v3347_v23  ;;  %v3321_v23 = vld [vmem:[%s7504_s2 + $0x288] sm:$0xff] }
 0x4c7   :  { %4374 = vmatpush3.msra.mxu0 %v3319_v55  ;;  %4418 = vmatprep.subr.mxu1 %v3362_v15  ;;  %v7582_v55 = vld [vmem:[#allocation11_spill] sm:$0xff] }
 0x4c8   :  { %4375 = vmatprep.subr.mxu0 %v3334_v63  ;;  %4419 = vmatpush3.msra.mxu1 %v3346_v58  ;;  %v3305_v63 = vld [vmem:[%s7504_s2 + $0x208] sm:$0xff]  ;;  %v7583_v58 = vld [vmem:[#allocation14_spill] sm:$0xff] }
 0x4c9   :  { %4376 = vmatpush3.msra.mxu0 %v3318_v5  ;;  %4420 = vmatprep.subr.mxu1 %v3361_v46 }
 0x4ca   :  { %4377 = vmatprep.subr.mxu0 %v3333_v36  ;;  %4421 = vmatpush3.msra.mxu1 %v3345_v4  ;;  %v3320_v36 = vld [vmem:[%s7504_s2 + $0x280] sm:$0xff] }
 0x4cb   :  { %4378 = vmatpush3.msra.mxu0 %v3317_v18  ;;  %4422 = vmatprep.subr.mxu1 %v3360_v31  ;;  %v3304_v18 = vld [vmem:[%s7504_s2 + $0x200] sm:$0xff] }
 0x4cc   :  { %4379 = vmatprep.subr.mxu0 %v3332_v35  ;;  %4423 = vmatpush3.msra.mxu1 %v3344_v44  ;;  %v3679_v44 = vld [vmem:[%s7505_s3 + $0xf8] sm:$0xff] }
 0x4cd   :  { %4380 = vmatpush3.msra.mxu0 %v3316_v30  ;;  %4424 = vmatprep.subr.mxu1 %v3359_v42 }
 0x4ce   :  { %4381 = vmatprep.subr.mxu0 %v3331_v60  ;;  %4425 = vmatpush3.msra.mxu1 %v3343_v25  ;;  %v3663_v60 = vld [vmem:[%s7505_s3 + $0x78] sm:$0xff]  ;;  %v7584_v25 = vld [vmem:[#allocation13_spill] sm:$0xff] }
 0x4cf   :  { %4382 = vmatpush3.msra.mxu0 %v3315_v19  ;;  %4426 = vmatprep.subr.mxu1 %v3358_v10  ;;  %v3678_v10 = vld [vmem:[%s7505_s3 + $0xf0] sm:$0xff] }
 0x4d0   :  { %4383 = vmatprep.subr.mxu0 %v3330_v21  ;;  %4427 = vmatpush3.msra.mxu1 %v3342_v47  ;;  %v7585_v21 = vld [vmem:[#allocation12_spill] sm:$0xff] }
 0x4d1   :  { %4384 = vmatpush3.msra.mxu0 %v3314_v11  ;;  %4428 = vmatprep.subr.mxu1 %v3357_v27  ;;  %v3677_v11 = vld [vmem:[%s7505_s3 + $0xe8] sm:$0xff] }
 0x4d2   :  { %4385 = vmatprep.subr.mxu0 %v3329_v57  ;;  %4429 = vmatpush3.msra.mxu1 %v3341_v39  ;;  %v3661_v57 = vld [vmem:[%s7505_s3 + $0x68] sm:$0xff] }
 0x4d3   :  { %4386 = vmatpush3.msra.mxu0 %v3313_v12  ;;  %4430 = vmatprep.subr.mxu1 %v3356_v33  ;;  %v3676_v12 = vld [vmem:[%s7505_s3 + $0xe0] sm:$0xff]  ;;  %v3710_v33 = vld [vmem:[%s7505_s3 + $0x1f0] sm:$0xff] }
 0x4d4   :  { %4387 = vmatprep.subr.mxu0 %v3328_v7  ;;  %4431 = vmatpush3.msra.mxu1 %v3340_v2  ;;  %v3675_v7 = vld [vmem:[%s7505_s3 + $0xd8] sm:$0xff]  ;;  %v3694_v2 = vld [vmem:[%s7505_s3 + $0x170] sm:$0xff] }
 0x4d5   :  { %4388 = vmatpush3.msra.mxu0 %v3312_v28  ;;  %4432 = vmatprep.subr.mxu1 %v3355_v40  ;;  %v3659_v28 = vld [vmem:[%s7505_s3 + $0x58] sm:$0xff]  ;;  %v3709_v40 = vld [vmem:[%s7505_s3 + $0x1e8] sm:$0xff] }
 0x4d6   :  { %4389 = vmatprep.subr.mxu0 %v3327_v3  ;;  %4433 = vmatpush3.msra.mxu1 %v3339_v1  ;;  %v3674_v3 = vld [vmem:[%s7505_s3 + $0xd0] sm:$0xff]  ;;  %v3693_v1 = vld [vmem:[%s7505_s3 + $0x168] sm:$0xff] }
 0x4d7   :  { %4390 = vmatpush3.msra.mxu0 %v3311_v24  ;;  %4434 = vmatprep.subr.mxu1 %v3354_v32  ;;  %v3658_v24 = vld [vmem:[%s7505_s3 + $0x50] sm:$0xff]  ;;  %v3708_v32 = vld [vmem:[%s7505_s3 + $0x1e0] sm:$0xff] }
 0x4d8   :  { %4391 = vmatprep.subr.mxu0 %v3326_v13  ;;  %4435 = vmatpush3.msra.mxu1 %v3338_v61  ;;  %v3657_v13 = vld [vmem:[%s7505_s3 + $0x48] sm:$0xff]  ;;  %v3707_v61 = vld [vmem:[%s7505_s3 + $0x1d8] sm:$0xff] }
 0x4d9   :  { %4392 = vmatpush3.msra.mxu0 %v3310_v20  ;;  %4436 = vmatprep.subr.mxu1 %v3353_v8  ;;  %v3672_v20 = vld [vmem:[%s7505_s3 + $0xc0] sm:$0xff]  ;;  %v3691_v8 = vld [vmem:[%s7505_s3 + $0x158] sm:$0xff] }
 0x4da   :  { %4393 = vmatprep.subr.mxu0 %v3325_v51  ;;  %4437 = vmatpush3.msra.mxu1 %v3337_v50  ;;  %v3656_v51 = vld [vmem:[%s7505_s3 + $0x40] sm:$0xff]  ;;  %v3706_v50 = vld [vmem:[%s7505_s3 + $0x1d0] sm:$0xff] }
 0x4db   :  { %4394 = vmatpush3.msra.mxu0 %v3309_v56  ;;  %4438 = vmatprep.subr.mxu1 %v3352_v17  ;;  %v3148_v62 = vpop.f32.mrf.mxu0  ;;  %v3671_v56 = vld [vmem:[%s7505_s3 + $0xb8] sm:$0xff]  ;;  %v3690_v17 = vld [vmem:[%s7505_s3 + $0x150] sm:$0xff] }
 0x4dc   :  { %4395 = vmatprep.subr.mxu0 %v3324_v9  ;;  %4439 = vmatpush3.msra.mxu1 %v3336_v22  ;;  %v3149_v16 = vadd.f32 %v3148_v62, %v6829_v6  ;;  %v3655_v9 = vld [vmem:[%s7505_s3 + $0x38] sm:$0xff]  ;;  %v3705_v22 = vld [vmem:[%s7505_s3 + $0x1c8] sm:$0xff]  ;;  %v3704_v62 = vld [vmem:[%s7505_s3 + $0x1c0] sm:$0xff] }
 0x4dd   :  { %4396 = vmatpush3.msra.mxu0 %v3308_v38  ;;  %4478 = vmatprep.subr.mxu1 %v3711_v34  ;;  %v3150_v37 = vpop.f32.mrf.mxu0  ;;  %v3670_v38 = vld [vmem:[%s7505_s3 + $0xb0] sm:$0xff]  ;;  %v3689_v34 = vld [vmem:[%s7505_s3 + $0x148] sm:$0xff] }
 0x4de   :  { %4397 = vmatprep.subr.mxu0 %v3323_v54  ;;  %v3151_v49 = vadd.f32 %v3150_v37, %v6829_v6  ;;  %v7042_v15 = vadd.f32 %v3149_v16, %v7582_v55  ;;  %v3654_v54 = vld [vmem:[%s7505_s3 + $0x30] sm:$0xff]  ;;  %v3688_v16 = vld [vmem:[%s7505_s3 + $0x140] sm:$0xff]  ;;  %v3703_v37 = vld [vmem:[%s7505_s3 + $0x1b8] sm:$0xff] }
 0x4df   :  { %4398 = vmatpush3.msra.mxu0 %v3307_v53  ;;  %v3669_v53 = vld [vmem:[%s7505_s3 + $0xa8] sm:$0xff]  ;;  %v3702_v55 = vld [vmem:[%s7505_s3 + $0x1b0] sm:$0xff] }
 0x4e0   :  { %4399 = vmatprep.subr.mxu0 %v3322_v0  ;;  %v7048_v5 = vadd.f32 %v3151_v49, %v7583_v58  ;;  %v3236_v30 = vmax.f32 %v7042_v15, 0.0  ;;  %v3653_v0 = vld [vmem:[%s7505_s3 + $0x28] sm:$0xff]  ;;  %v3687_v49 = vld [vmem:[%s7505_s3 + $0x138] sm:$0xff]  ;;  %v3686_v58 = vld [vmem:[%s7505_s3 + $0x130] sm:$0xff] }
 0x4e1   :  { %4400 = vmatpush3.msra.mxu0 %v3306_v59  ;;  %v3219_v46 = vpop.f32.mrf.mxu1  ;;  %v3668_v59 = vld [vmem:[%s7505_s3 + $0xa0] sm:$0xff] }
 0x4e2   :  { %v3220_v4 = vadd.f32 %v3219_v46, %v6829_v6  ;;  %4401 = vmatprep.subr.mxu0 %v3321_v23  ;;  %v3237_v31 = vmax.f32 %v7048_v5, 0.0  ;;  %v3652_v23 = vld [vmem:[%s7505_s3 + $0x20] sm:$0xff]  ;;  %v3651_v46 = vld [vmem:[%s7505_s3 + $0x18] sm:$0xff] }
 0x4e3   :  { %4402 = vmatpush3.msra.mxu0 %v3305_v63  ;;  %v3221_v35 = vpop.f32.mrf.mxu1  ;;  %v3667_v63 = vld [vmem:[%s7505_s3 + $0x98] sm:$0xff]  ;;  %v3740_v5 = vld [vmem:[%s7505_s3 + $0x2e0] sm:$0xff] }
 0x4e4   :  { %v3222_v42 = vadd.f32 %v3221_v35, %v6829_v6  ;;  %4403 = vmatprep.subr.mxu0 %v3320_v36  ;;  %v7067_v19 = vadd.f32 %v3220_v4, %v7584_v25  ;;  %3572 = vmatprep.mubr.f32.mxu0 %v3237_v31  ;;  %v3662_v6 = vld [vmem:[%s7505_s3 + $0x70] sm:$0xff]  ;;  %v3701_v36 = vld [vmem:[%s7505_s3 + $0x1a8] sm:$0xff]  ;;  %v4056_v15 = vld [vmem:[%s7506_s10] sm:$0xff] }
 0x4e5   :  { %4404 = vmatpush3.msra.mxu0 %v3304_v18  ;;  %v3666_v4 = vld [vmem:[%s7505_s3 + $0x90] sm:$0xff]  ;;  %v3685_v18 = vld [vmem:[%s7505_s3 + $0x128] sm:$0xff] }
 0x4e6   :  { %v7075_v47 = vadd.f32 %v3222_v42, %v7585_v21  ;;  %3573 = vmatmul.mubr.f32.vlgmr.msra.gmra.mxu0 %v3236_v30  ;;  %4443 = vmatprep.subr.mxu0 %v3679_v44  ;;  %v3238_v39 = vmax.f32 %v7067_v19, 0.0  ;;  %v3650_v35 = vld [vmem:[%s7505_s3 + $0x10] sm:$0xff]  ;;  %v3700_v44 = vld [vmem:[%s7505_s3 + $0x1a0] sm:$0xff]  ;;  %v3665_v42 = vld [vmem:[%s7505_s3 + $0x88] sm:$0xff] }
 0x4e7   :  { %4444 = vmatpush3.msra.mxu0 %v3663_v60  ;;  %3840 = vmatprep.mubr.f32.mxu0 %v3233_v29  ;;  %v3660_v29 = vld [vmem:[%s7505_s3 + $0x60] sm:$0xff]  ;;  %v3649_v25 = vld [vmem:[%s7505_s3 + $0x8] sm:$0xff] }
 0x4e8   :  { %v3239_v27 = vmax.f32 %v7075_v47, 0.0  ;;  %4445 = vmatprep.subr.mxu0 %v3678_v10  ;;  %v3684_v60 = vld [vmem:[%s7505_s3 + $0x120] sm:$0xff]  ;;  %v3699_v10 = vld [vmem:[%s7505_s3 + $0x198] sm:$0xff]  ;;  %v3722_v47 = vld [vmem:[%s7505_s3 + $0x250] sm:$0xff] }
 0x4e9   :  { %4446 = vmatpush3.msra.mxu0 %v3662_v6  ;;  %v3664_v21 = vld [vmem:[%s7505_s3 + $0x80] sm:$0xff]  ;;  %v3683_v6 = vld [vmem:[%s7505_s3 + $0x118] sm:$0xff] }
 0x4ea   :  { %4447 = vmatprep.subr.mxu0 %v3677_v11  ;;  %3642 = vmatprep.mubr.f32.mxu1 %v3239_v27  ;;  %v3648_v11 = vld [vmem:[%s7505_s3] sm:$0xff] }
 0x4eb   :  { %4448 = vmatpush3.msra.mxu0 %v3661_v57  ;;  %3643 = vmatmul.mubr.f32.vlgmr.msra.gmra.mxu1 %v3238_v39  ;;  %v3698_v57 = vld [vmem:[%s7505_s3 + $0x190] sm:$0xff] }
 0x4ec   :  { %4449 = vmatprep.subr.mxu0 %v3676_v12  ;;  %4479 = vmatpush3.msra.mxu1 %v3695_v14  ;;  %v3682_v12 = vld [vmem:[%s7505_s3 + $0x110] sm:$0xff]  ;;  %v3743_v14 = vld [vmem:[%s7505_s3 + $0x2f8] sm:$0xff] }
 0x4ed   :  { %4450 = vmatpush3.msra.mxu0 %v3660_v29  ;;  %4480 = vmatprep.subr.mxu1 %v3710_v33  ;;  %v3697_v29 = vld [vmem:[%s7505_s3 + $0x188] sm:$0xff]  ;;  %v3727_v33 = vld [vmem:[%s7505_s3 + $0x278] sm:$0xff] }
 0x4ee   :  { %3910 = vmatprep.mubr.f32.mxu1 %v3235_v52  ;;  %4451 = vmatprep.subr.mxu0 %v3675_v7  ;;  %v3692_v52 = vld [vmem:[%s7505_s3 + $0x160] sm:$0xff]  ;;  %v3681_v7 = vld [vmem:[%s7505_s3 + $0x108] sm:$0xff] }
 0x4ef   :  { %4481 = vmatpush3.msra.mxu1 %v3694_v2  ;;  %4452 = vmatpush3.msra.mxu0 %v3659_v28  ;;  %v3742_v2 = vld [vmem:[%s7505_s3 + $0x2f0] sm:$0xff]  ;;  %v3696_v28 = vld [vmem:[%s7505_s3 + $0x180] sm:$0xff] }
 0x4f0   :  { %4482 = vmatprep.subr.mxu1 %v3709_v40  ;;  %4453 = vmatprep.subr.mxu0 %v3674_v3  ;;  %v3741_v40 = vld [vmem:[%s7505_s3 + $0x2e8] sm:$0xff] }
 0x4f1   :  { %4483 = vmatpush3.msra.mxu1 %v3693_v1  ;;  %4454 = vmatpush3.msra.mxu0 %v3658_v24  ;;  %v3725_v3 = vld [vmem:[%s7505_s3 + $0x268] sm:$0xff]  ;;  %v3775_v1 = vld [vmem:[%s7505_s3 + $0x3f8] sm:$0xff]  ;;  %v3724_v24 = vld [vmem:[%s7505_s3 + $0x260] sm:$0xff] }
 0x4f2   :  { %4484 = vmatprep.subr.mxu1 %v3708_v32  ;;  %4455 = vmatprep.subr.mxu0 %v3673_v41  ;;  %v3774_v32 = vld [vmem:[%s7505_s3 + $0x3f0] sm:$0xff]  ;;  %v3739_v41 = vld [vmem:[%s7505_s3 + $0x2d8] sm:$0xff] }
 0x4f3   :  { %4485 = vmatpush3.msra.mxu1 %v3692_v52  ;;  %4456 = vmatpush3.msra.mxu0 %v3657_v13  ;;  %v3773_v52 = vld [vmem:[%s7505_s3 + $0x3e8] sm:$0xff]  ;;  %v3738_v13 = vld [vmem:[%s7505_s3 + $0x2d0] sm:$0xff] }
 0x4f4   :  { %4486 = vmatprep.subr.mxu1 %v3707_v61  ;;  %4457 = vmatprep.subr.mxu0 %v3672_v20  ;;  %v3757_v61 = vld [vmem:[%s7505_s3 + $0x368] sm:$0xff] }
 0x4f5   :  { %4487 = vmatpush3.msra.mxu1 %v3691_v8  ;;  %4458 = vmatpush3.msra.mxu0 %v3656_v51  ;;  %v3737_v20 = vld [vmem:[%s7505_s3 + $0x2c8] sm:$0xff]  ;;  %v3756_v8 = vld [vmem:[%s7505_s3 + $0x360] sm:$0xff] }
 0x4f6   :  { %4488 = vmatprep.subr.mxu1 %v3706_v50  ;;  %4459 = vmatprep.subr.mxu0 %v3671_v56  ;;  %v3721_v51 = vld [vmem:[%s7505_s3 + $0x248] sm:$0xff]  ;;  %v3771_v50 = vld [vmem:[%s7505_s3 + $0x3d8] sm:$0xff]  ;;  %v3736_v56 = vld [vmem:[%s7505_s3 + $0x2c0] sm:$0xff] }
 0x4f7   :  { %4489 = vmatpush3.msra.mxu1 %v3690_v17  ;;  %4460 = vmatpush3.msra.mxu0 %v3655_v9  ;;  %v3755_v17 = vld [vmem:[%s7505_s3 + $0x358] sm:$0xff]  ;;  %v3720_v9 = vld [vmem:[%s7505_s3 + $0x240] sm:$0xff] }
 0x4f8   :  { %4490 = vmatprep.subr.mxu1 %v3705_v22  ;;  %4461 = vmatprep.subr.mxu0 %v3670_v38  ;;  %v3770_v22 = vld [vmem:[%s7505_s3 + $0x3d0] sm:$0xff]  ;;  %v3735_v38 = vld [vmem:[%s7505_s3 + $0x2b8] sm:$0xff] }
 0x4f9   :  { %4491 = vmatpush3.msra.mxu1 %v3689_v34  ;;  %4462 = vmatpush3.msra.mxu0 %v3654_v54  ;;  %v3754_v34 = vld [vmem:[%s7505_s3 + $0x350] sm:$0xff]  ;;  %v3719_v54 = vld [vmem:[%s7505_s3 + $0x238] sm:$0xff] }
 0x4fa   :  { %4492 = vmatprep.subr.mxu1 %v3704_v62  ;;  %4463 = vmatprep.subr.mxu0 %v3669_v53  ;;  %v3769_v62 = vld [vmem:[%s7505_s3 + $0x3c8] sm:$0xff]  ;;  %v3734_v53 = vld [vmem:[%s7505_s3 + $0x2b0] sm:$0xff] }
 0x4fb   :  { %4493 = vmatpush3.msra.mxu1 %v3688_v16  ;;  %4464 = vmatpush3.msra.mxu0 %v3653_v0  ;;  %v3753_v16 = vld [vmem:[%s7505_s3 + $0x348] sm:$0xff]  ;;  %v3718_v0 = vld [vmem:[%s7505_s3 + $0x230] sm:$0xff] }
 0x4fc   :  { %4494 = vmatprep.subr.mxu1 %v3703_v37  ;;  %4465 = vmatprep.subr.mxu0 %v3668_v59  ;;  %v3768_v37 = vld [vmem:[%s7505_s3 + $0x3c0] sm:$0xff]  ;;  %v3733_v59 = vld [vmem:[%s7505_s3 + $0x2a8] sm:$0xff] }
 0x4fd   :  { %4495 = vmatpush3.msra.mxu1 %v3687_v49  ;;  %4466 = vmatpush3.msra.mxu0 %v3652_v23  ;;  %v3752_v49 = vld [vmem:[%s7505_s3 + $0x340] sm:$0xff]  ;;  %v3717_v23 = vld [vmem:[%s7505_s3 + $0x228] sm:$0xff] }
 0x4fe   :  { %4496 = vmatprep.subr.mxu1 %v3702_v55  ;;  %4467 = vmatprep.subr.mxu0 %v3667_v63  ;;  %v3767_v55 = vld [vmem:[%s7505_s3 + $0x3b8] sm:$0xff]  ;;  %v3732_v63 = vld [vmem:[%s7505_s3 + $0x2a0] sm:$0xff] }
 0x4ff   :  { %4497 = vmatpush3.msra.mxu1 %v3686_v58  ;;  %4468 = vmatpush3.msra.mxu0 %v3651_v46  ;;  %v3751_v58 = vld [vmem:[%s7505_s3 + $0x338] sm:$0xff]  ;;  %v3716_v46 = vld [vmem:[%s7505_s3 + $0x220] sm:$0xff] }
 0x500   :  { %4498 = vmatprep.subr.mxu1 %v3701_v36  ;;  %4469 = vmatprep.subr.mxu0 %v3666_v4  ;;  %v3766_v36 = vld [vmem:[%s7505_s3 + $0x3b0] sm:$0xff]  ;;  %v3731_v4 = vld [vmem:[%s7505_s3 + $0x298] sm:$0xff] }
 0x501   :  { %4499 = vmatpush3.msra.mxu1 %v3685_v18  ;;  %4470 = vmatpush3.msra.mxu0 %v3650_v35  ;;  %v3750_v18 = vld [vmem:[%s7505_s3 + $0x330] sm:$0xff]  ;;  %v3715_v35 = vld [vmem:[%s7505_s3 + $0x218] sm:$0xff] }
 0x502   :  { %4500 = vmatprep.subr.mxu1 %v3700_v44  ;;  %4471 = vmatprep.subr.mxu0 %v3665_v42  ;;  %v3765_v44 = vld [vmem:[%s7505_s3 + $0x3a8] sm:$0xff]  ;;  %v3730_v42 = vld [vmem:[%s7505_s3 + $0x290] sm:$0xff] }
 0x503   :  { %4501 = vmatpush3.msra.mxu1 %v3684_v60  ;;  %4472 = vmatpush3.msra.mxu0 %v3649_v25  ;;  %v3749_v60 = vld [vmem:[%s7505_s3 + $0x328] sm:$0xff]  ;;  %v3714_v25 = vld [vmem:[%s7505_s3 + $0x210] sm:$0xff] }
 0x504   :  { %4502 = vmatprep.subr.mxu1 %v3699_v10  ;;  %4473 = vmatprep.subr.mxu0 %v3664_v21  ;;  %v3764_v10 = vld [vmem:[%s7505_s3 + $0x3a0] sm:$0xff]  ;;  %v3729_v21 = vld [vmem:[%s7505_s3 + $0x288] sm:$0xff] }
 0x505   :  { %4503 = vmatpush3.msra.mxu1 %v3683_v6  ;;  %4474 = vmatpush3.msra.mxu0 %v3648_v11  ;;  %v3748_v6 = vld [vmem:[%s7505_s3 + $0x320] sm:$0xff]  ;;  %v3713_v11 = vld [vmem:[%s7505_s3 + $0x208] sm:$0xff] }
 0x506   :  { %4504 = vmatprep.subr.mxu1 %v3698_v57  ;;  %3841 = vmatmul.mubr.f32.vlgmr.msra.gmra.mxu0 %v3232_v48  ;;  %v3680_v48 = vld [vmem:[%s7505_s3 + $0x100] sm:$0xff]  ;;  %v3763_v57 = vld [vmem:[%s7505_s3 + $0x398] sm:$0xff] }
 0x507   :  { %4505 = vmatpush3.msra.mxu1 %v3682_v12  ;;  %4513 = vmatprep.subr.mxu0 %v3743_v14  ;;  %v3728_v12 = vld [vmem:[%s7505_s3 + $0x280] sm:$0xff]  ;;  %v3747_v14 = vld [vmem:[%s7505_s3 + $0x318] sm:$0xff] }
 0x508   :  { %4506 = vmatprep.subr.mxu1 %v3697_v29  ;;  %4514 = vmatpush3.msra.mxu0 %v3727_v33  ;;  %v3712_v29 = vld [vmem:[%s7505_s3 + $0x200] sm:$0xff]  ;;  %v3762_v33 = vld [vmem:[%s7505_s3 + $0x390] sm:$0xff] }
 0x509   :  { %3980 = vmatprep.mubr.f32.mxu0 %v3237_v31  ;;  %4507 = vmatpush3.msra.mxu1 %v3681_v7  ;;  %v3759_v31 = vld [vmem:[%s7505_s3 + $0x378] sm:$0xff]  ;;  %v3746_v7 = vld [vmem:[%s7505_s3 + $0x310] sm:$0xff] }
 0x50a   :  { %4515 = vmatprep.subr.mxu0 %v3742_v2  ;;  %4508 = vmatprep.subr.mxu1 %v3696_v28  ;;  %v3761_v2 = vld [vmem:[%s7505_s3 + $0x388] sm:$0xff] }
 0x50b   :  { %4516 = vmatpush3.msra.mxu0 %v3726_v45  ;;  %4509 = vmatpush3.msra.mxu1 %v3680_v48  ;;  %v3745_v28 = vld [vmem:[%s7505_s3 + $0x308] sm:$0xff]  ;;  %v3760_v45 = vld [vmem:[%s7505_s3 + $0x380] sm:$0xff] }
 0x50c   :  { %4517 = vmatprep.subr.mxu0 %v3741_v40  ;;  %3911 = vmatmul.mubr.f32.vlgmr.msra.gmra.mxu1 %v3234_v43  ;;  %v3723_v43 = vld [vmem:[%s7505_s3 + $0x258] sm:$0xff]  ;;  %v3744_v48 = vld [vmem:[%s7505_s3 + $0x300] sm:$0xff] }
 0x50d   :  { %4518 = vmatpush3.msra.mxu0 %v3725_v3  ;;  %4548 = vmatprep.subr.mxu1 %v3775_v1 }
 0x50e   :  { %4519 = vmatprep.subr.mxu0 %v3740_v5  ;;  %4549 = vmatpush3.msra.mxu1 %v3759_v31 }
 0x50f   :  { %4050 = vmatprep.mubr.f32.mxu1 %v3239_v27  ;;  %4520 = vmatpush3.msra.mxu0 %v3724_v24  ;;  %v3772_v27 = vld [vmem:[%s7505_s3 + $0x3e0] sm:$0xff] }
 0x510   :  { %4550 = vmatprep.subr.mxu1 %v3774_v32  ;;  %4521 = vmatprep.subr.mxu0 %v3739_v41 }
 0x511   :  { %4551 = vmatpush3.msra.mxu1 %v3758_v26  ;;  %4522 = vmatpush3.msra.mxu0 %v3723_v43 }
 0x512   :  { %4552 = vmatprep.subr.mxu1 %v3773_v52  ;;  %4523 = vmatprep.subr.mxu0 %v3738_v13 }
 0x513   :  { %4553 = vmatpush3.msra.mxu1 %v3757_v61  ;;  %4524 = vmatpush3.msra.mxu0 %v3722_v47  ;;  %v4057_v47 = vld [vmem:[%s7506_s10 + $0x8] sm:$0x3] }
 0x514   :  { %4554 = vmatprep.subr.mxu1 %v3772_v27  ;;  %4525 = vmatprep.subr.mxu0 %v3737_v20 }
 0x515   :  { %4555 = vmatpush3.msra.mxu1 %v3756_v8  ;;  %4526 = vmatpush3.msra.mxu0 %v3721_v51 }
 0x516   :  { %4556 = vmatprep.subr.mxu1 %v3771_v50  ;;  %4527 = vmatprep.subr.mxu0 %v3736_v56 }
 0x517   :  { %4557 = vmatpush3.msra.mxu1 %v3755_v17  ;;  %4528 = vmatpush3.msra.mxu0 %v3720_v9 }
 0x518   :  { %4558 = vmatprep.subr.mxu1 %v3770_v22  ;;  %4529 = vmatprep.subr.mxu0 %v3735_v38 }
 0x519   :  { %4559 = vmatpush3.msra.mxu1 %v3754_v34  ;;  %4530 = vmatpush3.msra.mxu0 %v3719_v54 }
 0x51a   :  { %4560 = vmatprep.subr.mxu1 %v3769_v62  ;;  %4531 = vmatprep.subr.mxu0 %v3734_v53 }
 0x51b   :  { %4561 = vmatpush3.msra.mxu1 %v3753_v16  ;;  %4532 = vmatpush3.msra.mxu0 %v3718_v0  ;;  %v4059_v0 = vld [vmem:[%s7507_s11 + $0x8] sm:$0x3] }
 0x51c   :  { %4562 = vmatprep.subr.mxu1 %v3768_v37  ;;  %4533 = vmatprep.subr.mxu0 %v3733_v59 }
 0x51d   :  { %4563 = vmatpush3.msra.mxu1 %v3752_v49  ;;  %4534 = vmatpush3.msra.mxu0 %v3717_v23  ;;  %v4233_v49 = vpop.permute.xlu1 %4232 }
 0x51e   :  { %4564 = vmatprep.subr.mxu1 %v3767_v55  ;;  %4535 = vmatprep.subr.mxu0 %v3732_v63 }
 0x51f   :  { %4565 = vmatpush3.msra.mxu1 %v3751_v58  ;;  %4536 = vmatpush3.msra.mxu0 %v3716_v46 }
 0x520   :  { %4566 = vmatprep.subr.mxu1 %v3766_v36  ;;  %4537 = vmatprep.subr.mxu0 %v3731_v4  ;;  %v4228_v36 = vpop.permute.xlu0 %4227 }
 0x521   :  { %4567 = vmatpush3.msra.mxu1 %v3750_v18  ;;  %4538 = vmatpush3.msra.mxu0 %v3715_v35 }
 0x522   :  { %4568 = vmatprep.subr.mxu1 %v3765_v44  ;;  %4539 = vmatprep.subr.mxu0 %v3730_v42 }
 0x523   :  { %4569 = vmatpush3.msra.mxu1 %v3749_v60  ;;  %4540 = vmatpush3.msra.mxu0 %v3714_v25 }
 0x524   :  { %4570 = vmatprep.subr.mxu1 %v3764_v10  ;;  %4541 = vmatprep.subr.mxu0 %v3729_v21 }
 0x525   :  { %4571 = vmatpush3.msra.mxu1 %v3748_v6  ;;  %4542 = vmatpush3.msra.mxu0 %v3713_v11 }
 0x526   :  { %4572 = vmatprep.subr.mxu1 %v3763_v57  ;;  %4543 = vmatprep.subr.mxu0 %v3728_v12 }
 0x527   :  { %4573 = vmatpush3.msra.mxu1 %v3747_v14  ;;  %4544 = vmatpush3.msra.mxu0 %v3712_v29 }
 0x528   :  { %4574 = vmatprep.subr.mxu1 %v3762_v33  ;;  %3981 = vmatmul.mubr.f32.vlgmr.msra.gmra.mxu0 %v3236_v30  ;;  %v4058_v30 = vld [vmem:[%s7507_s11] sm:$0xff] }
 0x529   :  { %4575 = vmatpush3.msra.mxu1 %v3746_v7  ;;  %4591 = vmatprep.mubr.msk.f32.mxu0 %vm4060_vm9, %v4058_v30 }
 0x52a   :  { %4576 = vmatprep.subr.mxu1 %v3761_v2 }
 0x52b   :  { %4577 = vmatpush3.msra.mxu1 %v3745_v28 }
 0x52c   :  { %4578 = vmatprep.subr.mxu1 %v3760_v45 }
 0x52d   :  { %4579 = vmatpush3.msra.mxu1 %v3744_v48 }
 0x52e   :  { %4051 = vmatmul.mubr.f32.vlgmr.msra.gmra.mxu1 %v3238_v39 }
 0x52f   :  { %4596 = vmatprep.mubr.msk.f32.mxu1 %vm4060_vm9, %v4056_v15 }
 0x57d   :  { %v4370_v3 = vpop.f32.mrf.mxu1 }
 0x57f   :  { %v4371_v31 = vpop.f32.mrf.mxu1 }
 0x580   :  { %v4372_v24 = vadd.f32 %v4371_v31, %v4370_v3 }
 0x586   :  { %v4335_v40 = vpop.f32.mrf.mxu0 }
 0x588   :  { %v4336_v1 = vpop.f32.mrf.mxu0 }
 0x589   :  { %v4337_v19 = vadd.f32 %v4336_v1, %v4335_v40 }
 0x58b   :  { %v3505_v26 = vadd.f32 %v4372_v24, %v4337_v19 }
 0x5a6   :  { %v4405_v5 = vpop.f32.mrf.mxu0 }
 0x5a8   :  { %v4406_v39 = vpop.f32.mrf.mxu0 }
 0x5a9   :  { %v4407_v32 = vadd.f32 %v4406_v39, %v4405_v5 }
 0x5ab   :  { %v4440_v41 = vpop.f32.mrf.mxu1  ;;  %v3575_v52 = vadd.f32 %v4407_v32, %v3505_v26 }
 0x5ad   :  { %v4441_v43 = vpop.f32.mrf.mxu1 }
 0x5ae   :  { %v4442_v13 = vadd.f32 %v4441_v43, %v4440_v41 }
 0x5b0   :  { %v3645_v61 = vadd.f32 %v4442_v13, %v3575_v52 }
 0x5b2   :  { %4594 = vmatprep.subr.mxu1 %v3645_v61 }
 0x5b3   :  { %4595 = vmatpush3.msra.mxu1 %v3645_v61 }
 0x5b4   :  { %4597 = vmatmul.mubr.msk.f32.vlgmr.msra.gmra.mxu1 %vm4060_vm9, %v4057_v47 }
 0x5c6   :  { %v4475_v27 = vpop.f32.mrf.mxu0 }
 0x5c8   :  { %v4476_v8 = vpop.f32.mrf.mxu0 }
 0x5c9   :  { %v4477_v9 = vadd.f32 %v4476_v8, %v4475_v27 }
 0x5cc   :  { %v4510_v20 = vpop.f32.mrf.mxu1 }
 0x5ce   :  { %v4511_v51 = vpop.f32.mrf.mxu1 }
 0x5cf   :  { %v4512_v17 = vadd.f32 %v4511_v51, %v4510_v20 }
 0x5d1   :  { %v3913_v34 = vadd.f32 %v4512_v17, %v4477_v9 }
 0x5e8   :  { %v4545_v50 = vpop.f32.mrf.mxu0 }
 0x5ea   :  { %v4546_v56 = vpop.f32.mrf.mxu0 }
 0x5eb   :  { %v4547_v22 = vadd.f32 %v4546_v56, %v4545_v50 }
 0x5ed   :  { %v3983_v62 = vadd.f32 %v4547_v22, %v3913_v34 }
 0x5ee   :  { %v4580_v38 = vpop.f32.mrf.mxu1 }
 0x5f0   :  { %v4581_v54 = vpop.f32.mrf.mxu1 }
 0x5f1   :  { %v4582_v53 = vadd.f32 %v4581_v54, %v4580_v38 }
 0x5f3   :  { %v4053_v16 = vadd.f32 %v4582_v53, %v3983_v62 }
 0x5f5   :  { %4589 = vmatprep.subr.mxu0 %v4053_v16 }
 0x5f6   :  { %4590 = vmatpush3.msra.mxu0 %v4053_v16 }
 0x5f7   :  { %4592 = vmatmul.mubr.msk.f32.vlgmr.msra.gmra.mxu0 %vm4060_vm9, %v4059_v0 }
 0x674   :  { %v4598_v37 = vpop.f32.mrf.mxu1 }
 0x676   :  { %v4214_v63 = vpop.f32.mrf.mxu1 }
 0x6b7   :  { %v4593_v59 = vpop.f32.mrf.mxu0 }
 0x6b8   :  { %v4220_v23 = vadd.f32 %v4598_v37, %v4593_v59 }
 0x6b9   :  { %v4133_v55 = vpop.f32.mrf.mxu0 }
 0x6ba   :  { %v4236_v58 = vadd.f32 %v4233_v49, %v4220_v23  ;;  %v4215_v46 = vadd.f32 %v4214_v63, %v4133_v55 }
 0x6bc   :  { %4240 = vst.msk [vmem:[%s7508_s13 + $0x8] sm:$0x3] %vm4239_vm10, %v4236_v58  ;;  %v4235_v4 = vadd.f32 %v4228_v36, %v4215_v46 }
 0x6be   :  { %4238 = vst.msk [vmem:[%s7508_s13] sm:$0xff] %vm4237_vm11, %v4235_v4 }

</bundles_post_ra>
